<compile_context>
chip_gen: v5e
topology: v5e:2x2
jax: 0.10.0
libtpu: 0.0.40
codegen_flags: <defaults>
</compile_context>

<pallas_src>
import functools

import jax
import jax.numpy as jnp
from jax.experimental import pallas as pl
from jax.experimental.pallas import tpu as pltpu


# ----------------------------------------------------------------------------
# attention cores
# ----------------------------------------------------------------------------
def _attention_core_batched(q, k, v, bias, heads, head_dim):
    """All heads at once via batched dot_general (one MXU stream per matmul)."""
    tq, model_dim = q.shape
    s = k.shape[0]
    # (T, D) -> (H, T, hd); the transposes only swap the two major dims.
    qh = jnp.transpose(q.reshape(tq, heads, head_dim), (1, 0, 2))
    kh = jnp.transpose(k.reshape(s, heads, head_dim), (1, 0, 2))
    vh = jnp.transpose(v.reshape(s, heads, head_dim), (1, 0, 2))

    scores = jax.lax.dot_general(                      # (H, T, S), f32 acc
        qh.astype(jnp.bfloat16), kh.astype(jnp.bfloat16),
        dimension_numbers=(((2,), (2,)), ((0,), (0,))),
        preferred_element_type=jnp.float32)
    scores = scores + bias[None, None, :]              # additive padding bias

    m = jnp.max(scores, axis=-1, keepdims=True)
    p = jnp.exp(scores - m)                            # f32 on VPU/EUP
    denom = jnp.sum(p, axis=-1, keepdims=True)         # (H, T, 1)

    o = jax.lax.dot_general(                           # (H, T, hd)
        p.astype(jnp.bfloat16), vh.astype(jnp.bfloat16),
        dimension_numbers=(((2,), (1,)), ((0,), (0,))),
        preferred_element_type=jnp.float32)
    # normalize AFTER the PV matmul: divide (H,T,hd) instead of (H,T,S)
    o = o * pl.reciprocal(denom, approx=True)
    return jnp.transpose(o, (1, 0, 2)).reshape(tq, model_dim)


def _attention_core_looped(q, k, v, bias, heads, head_dim):
    """Fallback: static per-head loop restricted to widely-supported ops."""
    k_t = k.T                                          # single hoisted transpose
    outs = []
    for h in range(heads):
        lo = h * head_dim
        qh = q[:, lo:lo + head_dim].astype(jnp.bfloat16)
        kh = k_t[lo:lo + head_dim, :].astype(jnp.bfloat16)
        vh = v[:, lo:lo + head_dim].astype(jnp.bfloat16)
        scores = jnp.dot(qh, kh, preferred_element_type=jnp.float32)   # (T, S)
        scores = scores + bias[None, :]
        m = jnp.max(scores, axis=-1, keepdims=True)
        p = jnp.exp(scores - m)
        denom = jnp.sum(p, axis=-1, keepdims=True)
        oh = jnp.dot(p.astype(jnp.bfloat16), vh,
                     preferred_element_type=jnp.float32)               # (T, hd)
        outs.append(oh * pl.reciprocal(denom, approx=True))
    return jnp.concatenate(outs, axis=-1)


# ----------------------------------------------------------------------------
# kernel
# ----------------------------------------------------------------------------
def _mha_kernel(q_in_ref, kv_in_ref, *rest,
                heads, head_dim, eps, kv_same, batched_heads):
    if kv_same:
        (mask_ref, wq_ref, bq_ref, wkv_ref, bkv_ref,
         gamma_ref, beta_ref, out_ref) = rest
        v_in_ref = None
    else:
        (v_in_ref, mask_ref, wq_ref, bq_ref, wkv_ref, bkv_ref,
         gamma_ref, beta_ref, out_ref) = rest

    model_dim = heads * head_dim
    query = q_in_ref[0]                 # (Tq, D) f32 — also the residual
    x_kv = kv_in_ref[0]                 # (S, D)  f32
    mask = mask_ref[0, 0]               # (S,)    f32, >0 marks padding

    # --- fused in-projections: bf16 MXU operands, f32 accumulation.
    # The 1/sqrt(head_dim) scaling is already folded into wq / bq.
    q = jnp.dot(query.astype(jnp.bfloat16), wq_ref[...],
                preferred_element_type=jnp.float32) + bq_ref[0]        # (Tq, D)

    w_kv = wkv_ref[...]                 # (D, 2D) bf16
    b_kv = bkv_ref[0]                   # (2D,)   f32
    if kv_same:
        kv = jnp.dot(x_kv.astype(jnp.bfloat16), w_kv,
                     preferred_element_type=jnp.float32) + b_kv        # (S, 2D)
        k = kv[:, :model_dim]
        v = kv[:, model_dim:]
    else:
        k = jnp.dot(x_kv.astype(jnp.bfloat16), w_kv[:, :model_dim],
                    preferred_element_type=jnp.float32) + b_kv[:model_dim]
        v = jnp.dot(v_in_ref[0].astype(jnp.bfloat16), w_kv[:, model_dim:],
                    preferred_element_type=jnp.float32) + b_kv[model_dim:]

    # --- key-padding handled once as an additive bias (not per-head selects).
    bias = jnp.where(mask > 0.0, jnp.float32(-jnp.inf), jnp.float32(0.0))
    # TODO(synk): mask_diag=True (diagonal masking) not implemented; the module
    #             default is mask_diag=False.

    if batched_heads:
        attn_out = _attention_core_batched(q, k, v, bias, heads, head_dim)
    else:
        attn_out = _attention_core_looped(q, k, v, bias, heads, head_dim)

    # TODO(synk): dropout omitted (p=0.0 / eval mode in the reference module).

    # --- residual + LayerNorm, all in f32 on the VPU.
    y = attn_out + query
    mean = jnp.mean(y, axis=-1, keepdims=True)
    var = jnp.mean(jnp.square(y - mean), axis=-1, keepdims=True)
    y = (y - mean) * jax.lax.rsqrt(var + eps)
    y = y * gamma_ref[0] + beta_ref[0]
    out_ref[0] = y.astype(out_ref.dtype)


# ----------------------------------------------------------------------------
# wrapper
# ----------------------------------------------------------------------------
def _build_mha_call(*, batch, tgt_len, src_len, model_dim, tq, heads, head_dim,
                    eps, kv_same, batched_heads, single_buffer_weights):
    n_t = tgt_len // tq
    weight_mode = pl.Buffered(1) if single_buffer_weights else None

    def const_spec(shape):
        if weight_mode is None:
            return pl.BlockSpec(shape, lambda b, t: (0, 0))
        return pl.BlockSpec(shape, lambda b, t: (0, 0), pipeline_mode=weight_mode)

    in_specs = [
        pl.BlockSpec((1, tq, model_dim), lambda b, t: (b, t, 0)),     # query
        pl.BlockSpec((1, src_len, model_dim), lambda b, t: (b, 0, 0)),  # key (=value if kv_same)
    ]
    if not kv_same:
        in_specs.append(pl.BlockSpec((1, src_len, model_dim), lambda b, t: (b, 0, 0)))
    in_specs += [
        pl.BlockSpec((1, 1, src_len), lambda b, t: (b, 0, 0)),        # key-padding mask
        const_spec((model_dim, model_dim)),       # wq  (pre-scaled, bf16)
        const_spec((1, model_dim)),               # bq  (pre-scaled)
        const_spec((model_dim, 2 * model_dim)),   # wkv (bf16, K|V fused)
        const_spec((1, 2 * model_dim)),           # bkv
        const_spec((1, model_dim)),               # LayerNorm gamma
        const_spec((1, model_dim)),               # LayerNorm beta
    ]

    kernel = functools.partial(
        _mha_kernel, heads=heads, head_dim=head_dim, eps=eps,
        kv_same=kv_same, batched_heads=batched_heads)

    return pl.pallas_call(
        kernel,
        out_shape=jax.ShapeDtypeStruct((batch, tgt_len, model_dim), jnp.float32),
        grid_spec=pltpu.PrefetchScalarGridSpec(
            num_scalar_prefetch=0,
            grid=(batch, n_t),
            in_specs=in_specs,
            out_specs=pl.BlockSpec((1, tq, model_dim), lambda b, t: (b, t, 0)),
        ),
        compiler_params=pltpu.CompilerParams(
            dimension_semantics=("parallel", "parallel"),
            vmem_limit_bytes=64 * 1024 * 1024),
    )


def multi_head_attention(query, key, value, key_mask, params, *, heads,
                         eps=1e-5, q_tile=256):
    """query: (B,T,D); key/value: (B,S,D); key_mask: (B,S) float, >0 = padding."""
    batch, tgt_len, model_dim = query.shape
    src_len = key.shape[1]
    head_dim = model_dim // heads
    assert head_dim * heads == model_dim, "model_dim must be divisible by heads"

    kv_same = key is value                    # mirrors the torch data_ptr() check
    mask3 = key_mask.reshape(batch, 1, src_len).astype(jnp.float32)

    tq = min(tgt_len, q_tile)
    if tgt_len % tq != 0:
        tq = tgt_len   # TODO(synk): pad T to a multiple of the query tile instead

    operands = [query, key] + ([] if kv_same else [value]) + [
        mask3, params["wq"], params["bq"], params["wkv"], params["bkv"],
        params["gamma"], params["beta"]]

    # Preferred config first; fall back if a Mosaic feature (batched-head
    # relayouts, single-buffered weights) is unavailable on this jax/TPU combo.
    configs = [(True, True), (True, False), (False, True), (False, False)]
    last_err = None
    for batched_heads, single_buf in configs:
        try:
            call = _build_mha_call(
                batch=batch, tgt_len=tgt_len, src_len=src_len,
                model_dim=model_dim, tq=tq, heads=heads, head_dim=head_dim,
                eps=eps, kv_same=kv_same, batched_heads=batched_heads,
                single_buffer_weights=single_buf)
            return call(*operands)
        except Exception as e:  # noqa: BLE001 — retry with a safer configuration
            last_err = e
    raise last_err


# ----------------------------------------------------------------------------
# parameters
# ----------------------------------------------------------------------------
def init_params(key, model_dim):
    """Mirrors reset_parameters: xavier_uniform per (D,D) block, zero bias,
    LayerNorm weight=1 / bias=0.  Weights stored pre-transposed as (D_in, D_out)."""
    kq, kk, kv = jax.random.split(key, 3)
    bound = (6.0 / (model_dim + model_dim)) ** 0.5
    uni = lambda k: jax.random.uniform(
        k, (model_dim, model_dim), jnp.float32, minval=-bound, maxval=bound).T
    return {
        "wq": uni(kq), "wk": uni(kk), "wv": uni(kv),
        "bq": jnp.zeros((1, model_dim), jnp.float32),
        "bk": jnp.zeros((1, model_dim), jnp.float32),
        "bv": jnp.zeros((1, model_dim), jnp.float32),
        "gamma": jnp.ones((1, model_dim), jnp.float32),
        "beta": jnp.zeros((1, model_dim), jnp.float32),
    }


def prepare_mha_params(params, *, heads):
    """One-time packing: fold 1/sqrt(head_dim) into the Q projection, fuse the
    K|V weights into a single (D, 2D) matmul, and store weights in bf16
    (MXU-native, halves weight DMA).  Biases and LayerNorm params stay f32."""
    model_dim = params["wq"].shape[0]
    scaling = float(model_dim // heads) ** (-0.5)
    return {
        "wq": (params["wq"] * scaling).astype(jnp.bfloat16),
        "bq": params["bq"] * scaling,
        "wkv": jnp.concatenate([params["wk"], params["wv"]], axis=1).astype(jnp.bfloat16),
        "bkv": jnp.concatenate([params["bk"], params["bv"]], axis=1),
        "gamma": params["gamma"],
        "beta": params["beta"],
    }


def reference_mha(query, key, value, key_mask, params, *, heads, eps=1e-5):
    """Pure-JAX f32 reference mirroring the torch forward."""
    batch, tgt_len, model_dim = query.shape
    src_len = key.shape[1]
    hd = model_dim // heads
    scaling = float(hd) ** (-0.5)
    q = (query @ params["wq"] + params["bq"][0]) * scaling
    k = key @ params["wk"] + params["bk"][0]
    v = value @ params["wv"] + params["bv"][0]
    q = q.reshape(batch, tgt_len, heads, hd).transpose(0, 2, 1, 3)
    k = k.reshape(batch, src_len, heads, hd).transpose(0, 2, 1, 3)
    v = v.reshape(batch, src_len, heads, hd).transpose(0, 2, 1, 3)
    scores = jnp.einsum("bhtd,bhsd->bhts", q, k)
    scores = jnp.where(key_mask[:, None, None, :] > 0, -jnp.inf, scores)
    attn = jax.nn.softmax(scores, axis=-1)
    out = jnp.einsum("bhts,bhsd->bhtd", attn, v)
    out = out.transpose(0, 2, 1, 3).reshape(batch, tgt_len, model_dim)
    y = out + query
    mean = jnp.mean(y, axis=-1, keepdims=True)
    var = jnp.mean(jnp.square(y - mean), axis=-1, keepdims=True)
    y = (y - mean) / jnp.sqrt(var + eps)
    return y * params["gamma"][0] + params["beta"][0]


if __name__ == "__main__":
    B, T, S, D, H = 2, 8, 8, 32, 4

    root = jax.random.PRNGKey(0)
    k_p, k_q, k_k, k_v = jax.random.split(root, 4)
    raw_params = init_params(k_p, D)
    packed_params = prepare_mha_params(raw_params, heads=H)

    query = jax.random.normal(k_q, (B, T, D), jnp.float32)
    key = jax.random.normal(k_k, (B, S, D), jnp.float32)
    value = jax.random.normal(k_v, (B, S, D), jnp.float32)
    # padding mask: last two source positions of batch element 1 are padded
    key_mask = jnp.zeros((B, S), jnp.float32).at[1, -2:].set(1.0)

    # The model's usual path: key is value (kv_same) -> fused K|V projection.
    out = multi_head_attention(query, key, key, key_mask, packed_params, heads=H)
    out = jax.block_until_ready(out)
    ref = reference_mha(query, key, key, key_mask, raw_params, heads=H)
    assert out.shape == (B, T, D)
    assert jnp.allclose(out, ref, atol=5e-2, rtol=5e-2), "kv_same path mismatch"

    # General path: distinct value tensor.
    out_g = multi_head_attention(query, key, value, key_mask, packed_params, heads=H)
    out_g = jax.block_until_ready(out_g)
    ref_g = reference_mha(query, key, value, key_mask, raw_params, heads=H)
    assert jnp.allclose(out_g, ref_g, atol=5e-2, rtol=5e-2), "general path mismatch"

    print("KERNEL_OK")
</pallas_src>

<mosaic_0001>
module attributes {stable_mosaic.version = 11 : i64} {
  func.func @_mha_kernel(%arg0: i32, %arg1: i32, %arg2: memref<1x8x32xf32, #tpu.memory_space<vmem>>, %arg3: memref<1x8x32xf32, #tpu.memory_space<vmem>>, %arg4: memref<1x1x8xf32, #tpu.memory_space<vmem>>, %arg5: memref<32x32xbf16, #tpu.memory_space<vmem>>, %arg6: memref<1x32xf32, #tpu.memory_space<vmem>>, %arg7: memref<32x64xbf16, #tpu.memory_space<vmem>>, %arg8: memref<1x64xf32, #tpu.memory_space<vmem>>, %arg9: memref<1x32xf32, #tpu.memory_space<vmem>>, %arg10: memref<1x32xf32, #tpu.memory_space<vmem>>, %arg11: memref<1x8x32xf32, #tpu.memory_space<vmem>>) attributes {dimension_semantics = [#tpu.dimension_semantics<parallel>, #tpu.dimension_semantics<parallel>], iteration_bounds = array<i64: 2, 1>, scalar_prefetch = 0 : i64, scratch_operands = 0 : i64, tpu.core_type = #tpu.core_type<tc>, window_params = [{transform_indices = @transform_0, window_bounds = array<i64: 1, 8, 32>}, {transform_indices = @transform_1, window_bounds = array<i64: 1, 8, 32>}, {transform_indices = @transform_2, window_bounds = array<i64: 1, 1, 8>}, {pipeline_mode = #tpu.pipeline_mode<synchronous>, transform_indices = @transform_3, window_bounds = array<i64: 32, 32>}, {pipeline_mode = #tpu.pipeline_mode<synchronous>, transform_indices = @transform_4, window_bounds = array<i64: 1, 32>}, {pipeline_mode = #tpu.pipeline_mode<synchronous>, transform_indices = @transform_5, window_bounds = array<i64: 32, 64>}, {pipeline_mode = #tpu.pipeline_mode<synchronous>, transform_indices = @transform_6, window_bounds = array<i64: 1, 64>}, {pipeline_mode = #tpu.pipeline_mode<synchronous>, transform_indices = @transform_7, window_bounds = array<i64: 1, 32>}, {pipeline_mode = #tpu.pipeline_mode<synchronous>, transform_indices = @transform_8, window_bounds = array<i64: 1, 32>}, {transform_indices = @transform_9, window_bounds = array<i64: 1, 8, 32>}]} {
    %c0 = arith.constant 0 : index
    %c0_0 = arith.constant 0 : index
    %c0_1 = arith.constant 0 : index
    %0 = vector.load %arg2[%c0, %c0_0, %c0_1] : memref<1x8x32xf32, #tpu.memory_space<vmem>>, vector<1x8x32xf32>
    %1 = vector.shape_cast %0 : vector<1x8x32xf32> to vector<8x32xf32>
    %c0_2 = arith.constant 0 : index
    %c0_3 = arith.constant 0 : index
    %c0_4 = arith.constant 0 : index
    %2 = vector.load %arg3[%c0_2, %c0_3, %c0_4] : memref<1x8x32xf32, #tpu.memory_space<vmem>>, vector<1x8x32xf32>
    %3 = vector.shape_cast %2 : vector<1x8x32xf32> to vector<8x32xf32>
    %c0_5 = arith.constant 0 : index
    %c0_6 = arith.constant 0 : index
    %c0_7 = arith.constant 0 : index
    %4 = vector.load %arg4[%c0_5, %c0_6, %c0_7] : memref<1x1x8xf32, #tpu.memory_space<vmem>>, vector<1x1x8xf32>
    %5 = vector.shape_cast %4 : vector<1x1x8xf32> to vector<8xf32>
    %6 = arith.truncf %1 : vector<8x32xf32> to vector<8x32xbf16>
    %c0_8 = arith.constant 0 : index
    %c0_9 = arith.constant 0 : index
    %7 = vector.load %arg5[%c0_8, %c0_9] : memref<32x32xbf16, #tpu.memory_space<vmem>>, vector<32x32xbf16>
    %cst = arith.constant dense<0.000000e+00> : vector<8x32xf32>
    %8 = tpu.matmul %6, %7, %cst {dimension_numbers = #tpu.dot_dimension_numbers<[1], [0], [0], [1], [0, 0, 1, 1], [], []>} : vector<8x32xbf16>, vector<32x32xbf16>, vector<8x32xf32> -> vector<8x32xf32>
    %c0_10 = arith.constant 0 : index
    %c0_11 = arith.constant 0 : index
    %9 = vector.load %arg6[%c0_10, %c0_11] : memref<1x32xf32, #tpu.memory_space<vmem>>, vector<1x32xf32>
    %10 = vector.shape_cast %9 : vector<1x32xf32> to vector<32xf32>
    %11 = vector.shape_cast %10 : vector<32xf32> to vector<1x32xf32>
    %12 = vector.broadcast %11 : vector<1x32xf32> to vector<8x32xf32>
    %13 = arith.addf %8, %12 : vector<8x32xf32>
    %c0_12 = arith.constant 0 : index
    %c0_13 = arith.constant 0 : index
    %14 = vector.load %arg7[%c0_12, %c0_13] : memref<32x64xbf16, #tpu.memory_space<vmem>>, vector<32x64xbf16>
    %c0_14 = arith.constant 0 : index
    %c0_15 = arith.constant 0 : index
    %15 = vector.load %arg8[%c0_14, %c0_15] : memref<1x64xf32, #tpu.memory_space<vmem>>, vector<1x64xf32>
    %16 = vector.shape_cast %15 : vector<1x64xf32> to vector<64xf32>
    %17 = arith.truncf %3 : vector<8x32xf32> to vector<8x32xbf16>
    %cst_16 = arith.constant dense<0.000000e+00> : vector<8x64xf32>
    %18 = tpu.matmul %17, %14, %cst_16 {dimension_numbers = #tpu.dot_dimension_numbers<[1], [0], [0], [1], [0, 0, 1, 1], [], []>} : vector<8x32xbf16>, vector<32x64xbf16>, vector<8x64xf32> -> vector<8x64xf32>
    %19 = vector.shape_cast %16 : vector<64xf32> to vector<1x64xf32>
    %20 = vector.broadcast %19 : vector<1x64xf32> to vector<8x64xf32>
    %21 = arith.addf %18, %20 : vector<8x64xf32>
    %22 = vector.extract_strided_slice %21 {offsets = [0, 0], sizes = [8, 32], strides = [1, 1]} : vector<8x64xf32> to vector<8x32xf32>
    %23 = vector.extract_strided_slice %21 {offsets = [0, 32], sizes = [8, 32], strides = [1, 1]} : vector<8x64xf32> to vector<8x32xf32>
    %cst_17 = arith.constant 0.000000e+00 : f32
    %24 = vector.broadcast %cst_17 : f32 to vector<8xf32>
    %25 = arith.cmpf ogt, %5, %24 : vector<8xf32>
    %cst_18 = arith.constant 0xFF800000 : f32
    %cst_19 = arith.constant 0.000000e+00 : f32
    %26 = vector.broadcast %cst_18 : f32 to vector<8xf32>
    %27 = vector.broadcast %cst_19 : f32 to vector<8xf32>
    %28 = arith.select %25, %26, %27 : vector<8xi1>, vector<8xf32>
    %29 = vector.shape_cast %13 : vector<8x32xf32> to vector<8x4x8xf32>
    %30 = tpu.transpose %29, [1, 0, 2] : vector<8x4x8xf32> -> vector<4x8x8xf32>
    %31 = vector.shape_cast %22 : vector<8x32xf32> to vector<8x4x8xf32>
    %32 = tpu.transpose %31, [1, 0, 2] : vector<8x4x8xf32> -> vector<4x8x8xf32>
    %33 = vector.shape_cast %23 : vector<8x32xf32> to vector<8x4x8xf32>
    %34 = tpu.transpose %33, [1, 0, 2] : vector<8x4x8xf32> -> vector<4x8x8xf32>
    %35 = arith.truncf %30 : vector<4x8x8xf32> to vector<4x8x8xbf16>
    %36 = arith.truncf %32 : vector<4x8x8xf32> to vector<4x8x8xbf16>
    %cst_20 = arith.constant dense<0.000000e+00> : vector<4x8x8xf32>
    %37 = tpu.matmul %35, %36, %cst_20 {dimension_numbers = #tpu.dot_dimension_numbers<[2], [2], [1], [1], [0, 0, 0, 1, 1, 1], [0], [0]>} : vector<4x8x8xbf16>, vector<4x8x8xbf16>, vector<4x8x8xf32> -> vector<4x8x8xf32>
    %38 = vector.shape_cast %28 : vector<8xf32> to vector<1x1x8xf32>
    %39 = vector.broadcast %38 : vector<1x1x8xf32> to vector<4x8x8xf32>
    %40 = arith.addf %37, %39 : vector<4x8x8xf32>
    %cst_21 = arith.constant dense<0xFF800000> : vector<4x8xf32>
    %41 = vector.multi_reduction <maximumf>, %40, %cst_21 [2] : vector<4x8x8xf32> to vector<4x8xf32>
    %42 = vector.shape_cast %41 : vector<4x8xf32> to vector<4x8x1xf32>
    %43 = vector.broadcast %42 : vector<4x8x1xf32> to vector<4x8x8xf32>
    %44 = arith.subf %40, %43 : vector<4x8x8xf32>
    %45 = math.exp %44 : vector<4x8x8xf32>
    %cst_22 = arith.constant dense<0.000000e+00> : vector<4x8xf32>
    %46 = vector.multi_reduction <add>, %45, %cst_22 [2] : vector<4x8x8xf32> to vector<4x8xf32>
    %47 = vector.shape_cast %46 : vector<4x8xf32> to vector<4x8x1xf32>
    %48 = arith.truncf %45 : vector<4x8x8xf32> to vector<4x8x8xbf16>
    %49 = arith.truncf %34 : vector<4x8x8xf32> to vector<4x8x8xbf16>
    %cst_23 = arith.constant dense<0.000000e+00> : vector<4x8x8xf32>
    %50 = tpu.matmul %48, %49, %cst_23 {dimension_numbers = #tpu.dot_dimension_numbers<[2], [1], [1], [2], [0, 0, 0, 1, 1, 2], [0], [0]>} : vector<4x8x8xbf16>, vector<4x8x8xbf16>, vector<4x8x8xf32> -> vector<4x8x8xf32>
    %51 = tpu.reciprocal %47 {approx = true} : vector<4x8x1xf32> -> vector<4x8x1xf32>
    %52 = vector.broadcast %51 : vector<4x8x1xf32> to vector<4x8x8xf32>
    %53 = arith.mulf %50, %52 : vector<4x8x8xf32>
    %54 = tpu.transpose %53, [1, 0, 2] : vector<4x8x8xf32> -> vector<8x4x8xf32>
    %55 = vector.shape_cast %54 : vector<8x4x8xf32> to vector<8x32xf32>
    %56 = arith.addf %55, %1 : vector<8x32xf32>
    %cst_24 = arith.constant dense<0.000000e+00> : vector<8xf32>
    %57 = vector.multi_reduction <add>, %56, %cst_24 [1] : vector<8x32xf32> to vector<8xf32>
    %58 = vector.shape_cast %57 : vector<8xf32> to vector<8x1xf32>
    %cst_25 = arith.constant 3.200000e+01 : f32
    %59 = vector.broadcast %cst_25 : f32 to vector<8x1xf32>
    %60 = arith.divf %58, %59 : vector<8x1xf32>
    %61 = vector.broadcast %60 : vector<8x1xf32> to vector<8x32xf32>
    %62 = arith.subf %56, %61 : vector<8x32xf32>
    %63 = arith.mulf %62, %62 : vector<8x32xf32>
    %cst_26 = arith.constant dense<0.000000e+00> : vector<8xf32>
    %64 = vector.multi_reduction <add>, %63, %cst_26 [1] : vector<8x32xf32> to vector<8xf32>
    %65 = vector.shape_cast %64 : vector<8xf32> to vector<8x1xf32>
    %cst_27 = arith.constant 3.200000e+01 : f32
    %66 = vector.broadcast %cst_27 : f32 to vector<8x1xf32>
    %67 = arith.divf %65, %66 : vector<8x1xf32>
    %68 = vector.broadcast %60 : vector<8x1xf32> to vector<8x32xf32>
    %69 = arith.subf %56, %68 : vector<8x32xf32>
    %cst_28 = arith.constant 9.99999974E-6 : f32
    %70 = vector.broadcast %cst_28 : f32 to vector<8x1xf32>
    %71 = arith.addf %67, %70 : vector<8x1xf32>
    %72 = math.rsqrt %71 : vector<8x1xf32>
    %73 = vector.broadcast %72 : vector<8x1xf32> to vector<8x32xf32>
    %74 = arith.mulf %69, %73 : vector<8x32xf32>
    %c0_29 = arith.constant 0 : index
    %c0_30 = arith.constant 0 : index
    %75 = vector.load %arg9[%c0_29, %c0_30] : memref<1x32xf32, #tpu.memory_space<vmem>>, vector<1x32xf32>
    %76 = vector.shape_cast %75 : vector<1x32xf32> to vector<32xf32>
    %77 = vector.shape_cast %76 : vector<32xf32> to vector<1x32xf32>
    %78 = vector.broadcast %77 : vector<1x32xf32> to vector<8x32xf32>
    %79 = arith.mulf %74, %78 : vector<8x32xf32>
    %c0_31 = arith.constant 0 : index
    %c0_32 = arith.constant 0 : index
    %80 = vector.load %arg10[%c0_31, %c0_32] : memref<1x32xf32, #tpu.memory_space<vmem>>, vector<1x32xf32>
    %81 = vector.shape_cast %80 : vector<1x32xf32> to vector<32xf32>
    %82 = vector.shape_cast %81 : vector<32xf32> to vector<1x32xf32>
    %83 = vector.broadcast %82 : vector<1x32xf32> to vector<8x32xf32>
    %84 = arith.addf %79, %83 : vector<8x32xf32>
    %c0_33 = arith.constant 0 : index
    %c0_34 = arith.constant 0 : index
    %c0_35 = arith.constant 0 : index
    %85 = vector.load %arg11[%c0_33, %c0_34, %c0_35] : memref<1x8x32xf32, #tpu.memory_space<vmem>>, vector<1x8x32xf32>
    %86 = vector.shape_cast %85 : vector<1x8x32xf32> to vector<8x32xf32>
    %87 = vector.shape_cast %84 : vector<8x32xf32> to vector<1x8x32xf32>
    tpu.vector_store %arg11[%c0_33, %c0_34, %c0_35], %87 {strides = array<i32>} : memref<1x8x32xf32, #tpu.memory_space<vmem>>, vector<1x8x32xf32>,
    return
  }
  func.func @transform_0(%arg0: i32, %arg1: i32) -> (i32, i32, i32) {
    %c0_i32 = arith.constant 0 : i32
    %c0_i32_0 = arith.constant 0 : i32
    return %arg0, %arg1, %c0_i32 : i32, i32, i32
  }
  func.func @transform_1(%arg0: i32, %arg1: i32) -> (i32, i32, i32) {
    %c0_i32 = arith.constant 0 : i32
    %c0_i32_0 = arith.constant 0 : i32
    %c0_i32_1 = arith.constant 0 : i32
    return %arg0, %c0_i32, %c0_i32_0 : i32, i32, i32
  }
  func.func @transform_2(%arg0: i32, %arg1: i32) -> (i32, i32, i32) {
    %c0_i32 = arith.constant 0 : i32
    %c0_i32_0 = arith.constant 0 : i32
    %c0_i32_1 = arith.constant 0 : i32
    return %arg0, %c0_i32, %c0_i32_0 : i32, i32, i32
  }
  func.func @transform_3(%arg0: i32, %arg1: i32) -> (i32, i32) {
    %c0_i32 = arith.constant 0 : i32
    %c0_i32_0 = arith.constant 0 : i32
    %c0_i32_1 = arith.constant 0 : i32
    return %c0_i32, %c0_i32_0 : i32, i32
  }
  func.func @transform_4(%arg0: i32, %arg1: i32) -> (i32, i32) {
    %c0_i32 = arith.constant 0 : i32
    %c0_i32_0 = arith.constant 0 : i32
    %c0_i32_1 = arith.constant 0 : i32
    return %c0_i32, %c0_i32_0 : i32, i32
  }
  func.func @transform_5(%arg0: i32, %arg1: i32) -> (i32, i32) {
    %c0_i32 = arith.constant 0 : i32
    %c0_i32_0 = arith.constant 0 : i32
    %c0_i32_1 = arith.constant 0 : i32
    return %c0_i32, %c0_i32_0 : i32, i32
  }
  func.func @transform_6(%arg0: i32, %arg1: i32) -> (i32, i32) {
    %c0_i32 = arith.constant 0 : i32
    %c0_i32_0 = arith.constant 0 : i32
    %c0_i32_1 = arith.constant 0 : i32
    return %c0_i32, %c0_i32_0 : i32, i32
  }
  func.func @transform_7(%arg0: i32, %arg1: i32) -> (i32, i32) {
    %c0_i32 = arith.constant 0 : i32
    %c0_i32_0 = arith.constant 0 : i32
    %c0_i32_1 = arith.constant 0 : i32
    return %c0_i32, %c0_i32_0 : i32, i32
  }
  func.func @transform_8(%arg0: i32, %arg1: i32) -> (i32, i32) {
    %c0_i32 = arith.constant 0 : i32
    %c0_i32_0 = arith.constant 0 : i32
    %c0_i32_1 = arith.constant 0 : i32
    return %c0_i32, %c0_i32_0 : i32, i32
  }
  func.func @transform_9(%arg0: i32, %arg1: i32) -> (i32, i32, i32) {
    %c0_i32 = arith.constant 0 : i32
    %c0_i32_0 = arith.constant 0 : i32
    return %arg0, %arg1, %c0_i32 : i32, i32, i32
  }
}

module attributes {stable_mosaic.version = 11 : i64} {
  func.func @_mha_kernel(%arg0: i32, %arg1: i32, %arg2: memref<1x8x32xf32, #tpu.memory_space<vmem>>, %arg3: memref<1x8x32xf32, #tpu.memory_space<vmem>>, %arg4: memref<1x1x8xf32, #tpu.memory_space<vmem>>, %arg5: memref<32x32xbf16, #tpu.memory_space<vmem>>, %arg6: memref<1x32xf32, #tpu.memory_space<vmem>>, %arg7: memref<32x64xbf16, #tpu.memory_space<vmem>>, %arg8: memref<1x64xf32, #tpu.memory_space<vmem>>, %arg9: memref<1x32xf32, #tpu.memory_space<vmem>>, %arg10: memref<1x32xf32, #tpu.memory_space<vmem>>, %arg11: memref<1x8x32xf32, #tpu.memory_space<vmem>>) attributes {dimension_semantics = [#tpu.dimension_semantics<parallel>, #tpu.dimension_semantics<parallel>], iteration_bounds = array<i64: 2, 1>, scalar_prefetch = 0 : i64, scratch_operands = 0 : i64, tpu.core_type = #tpu.core_type<tc>, window_params = [{transform_indices = @transform_0, window_bounds = array<i64: 1, 8, 32>}, {transform_indices = @transform_1, window_bounds = array<i64: 1, 8, 32>}, {transform_indices = @transform_2, window_bounds = array<i64: 1, 1, 8>}, {pipeline_mode = #tpu.pipeline_mode<synchronous>, transform_indices = @transform_3, window_bounds = array<i64: 32, 32>}, {pipeline_mode = #tpu.pipeline_mode<synchronous>, transform_indices = @transform_4, window_bounds = array<i64: 1, 32>}, {pipeline_mode = #tpu.pipeline_mode<synchronous>, transform_indices = @transform_5, window_bounds = array<i64: 32, 64>}, {pipeline_mode = #tpu.pipeline_mode<synchronous>, transform_indices = @transform_6, window_bounds = array<i64: 1, 64>}, {pipeline_mode = #tpu.pipeline_mode<synchronous>, transform_indices = @transform_7, window_bounds = array<i64: 1, 32>}, {pipeline_mode = #tpu.pipeline_mode<synchronous>, transform_indices = @transform_8, window_bounds = array<i64: 1, 32>}, {transform_indices = @transform_9, window_bounds = array<i64: 1, 8, 32>}]} {
    %c0 = arith.constant 0 : index
    %c0_0 = arith.constant 0 : index
    %c0_1 = arith.constant 0 : index
    %0 = vector.load %arg2[%c0, %c0_0, %c0_1] : memref<1x8x32xf32, #tpu.memory_space<vmem>>, vector<1x8x32xf32>
    %1 = vector.shape_cast %0 : vector<1x8x32xf32> to vector<8x32xf32>
    %c0_2 = arith.constant 0 : index
    %c0_3 = arith.constant 0 : index
    %c0_4 = arith.constant 0 : index
    %2 = vector.load %arg3[%c0_2, %c0_3, %c0_4] : memref<1x8x32xf32, #tpu.memory_space<vmem>>, vector<1x8x32xf32>
    %3 = vector.shape_cast %2 : vector<1x8x32xf32> to vector<8x32xf32>
    %c0_5 = arith.constant 0 : index
    %c0_6 = arith.constant 0 : index
    %c0_7 = arith.constant 0 : index
    %4 = vector.load %arg4[%c0_5, %c0_6, %c0_7] : memref<1x1x8xf32, #tpu.memory_space<vmem>>, vector<1x1x8xf32>
    %5 = vector.shape_cast %4 : vector<1x1x8xf32> to vector<8xf32>
    %6 = arith.truncf %1 : vector<8x32xf32> to vector<8x32xbf16>
    %c0_8 = arith.constant 0 : index
    %c0_9 = arith.constant 0 : index
    %7 = vector.load %arg5[%c0_8, %c0_9] : memref<32x32xbf16, #tpu.memory_space<vmem>>, vector<32x32xbf16>
    %cst = arith.constant dense<0.000000e+00> : vector<8x32xf32>
    %8 = tpu.matmul %6, %7, %cst {dimension_numbers = #tpu.dot_dimension_numbers<[1], [0], [0], [1], [0, 0, 1, 1], [], []>} : vector<8x32xbf16>, vector<32x32xbf16>, vector<8x32xf32> -> vector<8x32xf32>
    %c0_10 = arith.constant 0 : index
    %c0_11 = arith.constant 0 : index
    %9 = vector.load %arg6[%c0_10, %c0_11] : memref<1x32xf32, #tpu.memory_space<vmem>>, vector<1x32xf32>
    %10 = vector.shape_cast %9 : vector<1x32xf32> to vector<32xf32>
    %11 = vector.shape_cast %10 : vector<32xf32> to vector<1x32xf32>
    %12 = vector.broadcast %11 : vector<1x32xf32> to vector<8x32xf32>
    %13 = arith.addf %8, %12 : vector<8x32xf32>
    %c0_12 = arith.constant 0 : index
    %c0_13 = arith.constant 0 : index
    %14 = vector.load %arg7[%c0_12, %c0_13] : memref<32x64xbf16, #tpu.memory_space<vmem>>, vector<32x64xbf16>
    %c0_14 = arith.constant 0 : index
    %c0_15 = arith.constant 0 : index
    %15 = vector.load %arg8[%c0_14, %c0_15] : memref<1x64xf32, #tpu.memory_space<vmem>>, vector<1x64xf32>
    %16 = vector.shape_cast %15 : vector<1x64xf32> to vector<64xf32>
    %17 = arith.truncf %3 : vector<8x32xf32> to vector<8x32xbf16>
    %cst_16 = arith.constant dense<0.000000e+00> : vector<8x64xf32>
    %18 = tpu.matmul %17, %14, %cst_16 {dimension_numbers = #tpu.dot_dimension_numbers<[1], [0], [0], [1], [0, 0, 1, 1], [], []>} : vector<8x32xbf16>, vector<32x64xbf16>, vector<8x64xf32> -> vector<8x64xf32>
    %19 = vector.shape_cast %16 : vector<64xf32> to vector<1x64xf32>
    %20 = vector.broadcast %19 : vector<1x64xf32> to vector<8x64xf32>
    %21 = arith.addf %18, %20 : vector<8x64xf32>
    %22 = vector.extract_strided_slice %21 {offsets = [0, 0], sizes = [8, 32], strides = [1, 1]} : vector<8x64xf32> to vector<8x32xf32>
    %23 = vector.extract_strided_slice %21 {offsets = [0, 32], sizes = [8, 32], strides = [1, 1]} : vector<8x64xf32> to vector<8x32xf32>
    %cst_17 = arith.constant 0.000000e+00 : f32
    %24 = vector.broadcast %cst_17 : f32 to vector<8xf32>
    %25 = arith.cmpf ogt, %5, %24 : vector<8xf32>
    %cst_18 = arith.constant 0xFF800000 : f32
    %cst_19 = arith.constant 0.000000e+00 : f32
    %26 = vector.broadcast %cst_18 : f32 to vector<8xf32>
    %27 = vector.broadcast %cst_19 : f32 to vector<8xf32>
    %28 = arith.select %25, %26, %27 : vector<8xi1>, vector<8xf32>
    %29 = vector.shape_cast %13 : vector<8x32xf32> to vector<8x4x8xf32>
    %30 = tpu.transpose %29, [1, 0, 2] : vector<8x4x8xf32> -> vector<4x8x8xf32>
    %31 = vector.shape_cast %22 : vector<8x32xf32> to vector<8x4x8xf32>
    %32 = tpu.transpose %31, [1, 0, 2] : vector<8x4x8xf32> -> vector<4x8x8xf32>
    %33 = vector.shape_cast %23 : vector<8x32xf32> to vector<8x4x8xf32>
    %34 = tpu.transpose %33, [1, 0, 2] : vector<8x4x8xf32> -> vector<4x8x8xf32>
    %35 = arith.truncf %30 : vector<4x8x8xf32> to vector<4x8x8xbf16>
    %36 = arith.truncf %32 : vector<4x8x8xf32> to vector<4x8x8xbf16>
    %cst_20 = arith.constant dense<0.000000e+00> : vector<4x8x8xf32>
    %37 = tpu.matmul %35, %36, %cst_20 {dimension_numbers = #tpu.dot_dimension_numbers<[2], [2], [1], [1], [0, 0, 0, 1, 1, 1], [0], [0]>} : vector<4x8x8xbf16>, vector<4x8x8xbf16>, vector<4x8x8xf32> -> vector<4x8x8xf32>
    %38 = vector.shape_cast %28 : vector<8xf32> to vector<1x1x8xf32>
    %39 = vector.broadcast %38 : vector<1x1x8xf32> to vector<4x8x8xf32>
    %40 = arith.addf %37, %39 : vector<4x8x8xf32>
    %cst_21 = arith.constant dense<0xFF800000> : vector<4x8xf32>
    %41 = vector.multi_reduction <maximumf>, %40, %cst_21 [2] : vector<4x8x8xf32> to vector<4x8xf32>
    %42 = vector.shape_cast %41 : vector<4x8xf32> to vector<4x8x1xf32>
    %43 = vector.broadcast %42 : vector<4x8x1xf32> to vector<4x8x8xf32>
    %44 = arith.subf %40, %43 : vector<4x8x8xf32>
    %45 = math.exp %44 : vector<4x8x8xf32>
    %cst_22 = arith.constant dense<0.000000e+00> : vector<4x8xf32>
    %46 = vector.multi_reduction <add>, %45, %cst_22 [2] : vector<4x8x8xf32> to vector<4x8xf32>
    %47 = vector.shape_cast %46 : vector<4x8xf32> to vector<4x8x1xf32>
    %48 = arith.truncf %45 : vector<4x8x8xf32> to vector<4x8x8xbf16>
    %49 = arith.truncf %34 : vector<4x8x8xf32> to vector<4x8x8xbf16>
    %cst_23 = arith.constant dense<0.000000e+00> : vector<4x8x8xf32>
    %50 = tpu.matmul %48, %49, %cst_23 {dimension_numbers = #tpu.dot_dimension_numbers<[2], [1], [1], [2], [0, 0, 0, 1, 1, 2], [0], [0]>} : vector<4x8x8xbf16>, vector<4x8x8xbf16>, vector<4x8x8xf32> -> vector<4x8x8xf32>
    %51 = tpu.reciprocal %47 {approx = true} : vector<4x8x1xf32> -> vector<4x8x1xf32>
    %52 = vector.broadcast %51 : vector<4x8x1xf32> to vector<4x8x8xf32>
    %53 = arith.mulf %50, %52 : vector<4x8x8xf32>
    %54 = tpu.transpose %53, [1, 0, 2] : vector<4x8x8xf32> -> vector<8x4x8xf32>
    %55 = vector.shape_cast %54 : vector<8x4x8xf32> to vector<8x32xf32>
    %56 = arith.addf %55, %1 : vector<8x32xf32>
    %cst_24 = arith.constant dense<0.000000e+00> : vector<8xf32>
    %57 = vector.multi_reduction <add>, %56, %cst_24 [1] : vector<8x32xf32> to vector<8xf32>
    %58 = vector.shape_cast %57 : vector<8xf32> to vector<8x1xf32>
    %cst_25 = arith.constant 3.200000e+01 : f32
    %59 = vector.broadcast %cst_25 : f32 to vector<8x1xf32>
    %60 = arith.divf %58, %59 : vector<8x1xf32>
    %61 = vector.broadcast %60 : vector<8x1xf32> to vector<8x32xf32>
    %62 = arith.subf %56, %61 : vector<8x32xf32>
    %63 = arith.mulf %62, %62 : vector<8x32xf32>
    %cst_26 = arith.constant dense<0.000000e+00> : vector<8xf32>
    %64 = vector.multi_reduction <add>, %63, %cst_26 [1] : vector<8x32xf32> to vector<8xf32>
    %65 = vector.shape_cast %64 : vector<8xf32> to vector<8x1xf32>
    %cst_27 = arith.constant 3.200000e+01 : f32
    %66 = vector.broadcast %cst_27 : f32 to vector<8x1xf32>
    %67 = arith.divf %65, %66 : vector<8x1xf32>
    %68 = vector.broadcast %60 : vector<8x1xf32> to vector<8x32xf32>
    %69 = arith.subf %56, %68 : vector<8x32xf32>
    %cst_28 = arith.constant 9.99999974E-6 : f32
    %70 = vector.broadcast %cst_28 : f32 to vector<8x1xf32>
    %71 = arith.addf %67, %70 : vector<8x1xf32>
    %72 = math.rsqrt %71 : vector<8x1xf32>
    %73 = vector.broadcast %72 : vector<8x1xf32> to vector<8x32xf32>
    %74 = arith.mulf %69, %73 : vector<8x32xf32>
    %c0_29 = arith.constant 0 : index
    %c0_30 = arith.constant 0 : index
    %75 = vector.load %arg9[%c0_29, %c0_30] : memref<1x32xf32, #tpu.memory_space<vmem>>, vector<1x32xf32>
    %76 = vector.shape_cast %75 : vector<1x32xf32> to vector<32xf32>
    %77 = vector.shape_cast %76 : vector<32xf32> to vector<1x32xf32>
    %78 = vector.broadcast %77 : vector<1x32xf32> to vector<8x32xf32>
    %79 = arith.mulf %74, %78 : vector<8x32xf32>
    %c0_31 = arith.constant 0 : index
    %c0_32 = arith.constant 0 : index
    %80 = vector.load %arg10[%c0_31, %c0_32] : memref<1x32xf32, #tpu.memory_space<vmem>>, vector<1x32xf32>
    %81 = vector.shape_cast %80 : vector<1x32xf32> to vector<32xf32>
    %82 = vector.shape_cast %81 : vector<32xf32> to vector<1x32xf32>
    %83 = vector.broadcast %82 : vector<1x32xf32> to vector<8x32xf32>
    %84 = arith.addf %79, %83 : vector<8x32xf32>
    %c0_33 = arith.constant 0 : index
    %c0_34 = arith.constant 0 : index
    %c0_35 = arith.constant 0 : index
    %85 = vector.load %arg11[%c0_33, %c0_34, %c0_35] : memref<1x8x32xf32, #tpu.memory_space<vmem>>, vector<1x8x32xf32>
    %86 = vector.shape_cast %85 : vector<1x8x32xf32> to vector<8x32xf32>
    %87 = vector.shape_cast %84 : vector<8x32xf32> to vector<1x8x32xf32>
    tpu.vector_store %arg11[%c0_33, %c0_34, %c0_35], %87 {strides = array<i32>} : memref<1x8x32xf32, #tpu.memory_space<vmem>>, vector<1x8x32xf32>,
    return
  }
  func.func @transform_0(%arg0: i32, %arg1: i32) -> (i32, i32, i32) {
    %c0_i32 = arith.constant 0 : i32
    %c0_i32_0 = arith.constant 0 : i32
    return %arg0, %arg1, %c0_i32 : i32, i32, i32
  }
  func.func @transform_1(%arg0: i32, %arg1: i32) -> (i32, i32, i32) {
    %c0_i32 = arith.constant 0 : i32
    %c0_i32_0 = arith.constant 0 : i32
    %c0_i32_1 = arith.constant 0 : i32
    return %arg0, %c0_i32, %c0_i32_0 : i32, i32, i32
  }
  func.func @transform_2(%arg0: i32, %arg1: i32) -> (i32, i32, i32) {
    %c0_i32 = arith.constant 0 : i32
    %c0_i32_0 = arith.constant 0 : i32
    %c0_i32_1 = arith.constant 0 : i32
    return %arg0, %c0_i32, %c0_i32_0 : i32, i32, i32
  }
  func.func @transform_3(%arg0: i32, %arg1: i32) -> (i32, i32) {
    %c0_i32 = arith.constant 0 : i32
    %c0_i32_0 = arith.constant 0 : i32
    %c0_i32_1 = arith.constant 0 : i32
    return %c0_i32, %c0_i32_0 : i32, i32
  }
  func.func @transform_4(%arg0: i32, %arg1: i32) -> (i32, i32) {
    %c0_i32 = arith.constant 0 : i32
    %c0_i32_0 = arith.constant 0 : i32
    %c0_i32_1 = arith.constant 0 : i32
    return %c0_i32, %c0_i32_0 : i32, i32
  }
  func.func @transform_5(%arg0: i32, %arg1: i32) -> (i32, i32) {
    %c0_i32 = arith.constant 0 : i32
    %c0_i32_0 = arith.constant 0 : i32
    %c0_i32_1 = arith.constant 0 : i32
    return %c0_i32, %c0_i32_0 : i32, i32
  }
  func.func @transform_6(%arg0: i32, %arg1: i32) -> (i32, i32) {
    %c0_i32 = arith.constant 0 : i32
    %c0_i32_0 = arith.constant 0 : i32
    %c0_i32_1 = arith.constant 0 : i32
    return %c0_i32, %c0_i32_0 : i32, i32
  }
  func.func @transform_7(%arg0: i32, %arg1: i32) -> (i32, i32) {
    %c0_i32 = arith.constant 0 : i32
    %c0_i32_0 = arith.constant 0 : i32
    %c0_i32_1 = arith.constant 0 : i32
    return %c0_i32, %c0_i32_0 : i32, i32
  }
  func.func @transform_8(%arg0: i32, %arg1: i32) -> (i32, i32) {
    %c0_i32 = arith.constant 0 : i32
    %c0_i32_0 = arith.constant 0 : i32
    %c0_i32_1 = arith.constant 0 : i32
    return %c0_i32, %c0_i32_0 : i32, i32
  }
  func.func @transform_9(%arg0: i32, %arg1: i32) -> (i32, i32, i32) {
    %c0_i32 = arith.constant 0 : i32
    %c0_i32_0 = arith.constant 0 : i32
    return %arg0, %arg1, %c0_i32 : i32, i32, i32
  }
}

module attributes {stable_mosaic.version = 11 : i64} {
  func.func @_mha_kernel(%arg0: i32, %arg1: i32, %arg2: memref<1x8x32xf32, #tpu.memory_space<vmem>>, %arg3: memref<1x8x32xf32, #tpu.memory_space<vmem>>, %arg4: memref<1x1x8xf32, #tpu.memory_space<vmem>>, %arg5: memref<32x32xbf16, #tpu.memory_space<vmem>>, %arg6: memref<1x32xf32, #tpu.memory_space<vmem>>, %arg7: memref<32x64xbf16, #tpu.memory_space<vmem>>, %arg8: memref<1x64xf32, #tpu.memory_space<vmem>>, %arg9: memref<1x32xf32, #tpu.memory_space<vmem>>, %arg10: memref<1x32xf32, #tpu.memory_space<vmem>>, %arg11: memref<1x8x32xf32, #tpu.memory_space<vmem>>) attributes {dimension_semantics = [#tpu.dimension_semantics<parallel>, #tpu.dimension_semantics<parallel>], iteration_bounds = array<i64: 2, 1>, scalar_prefetch = 0 : i64, scratch_operands = 0 : i64, tpu.core_type = #tpu.core_type<tc>, window_params = [{transform_indices = @transform_0, window_bounds = array<i64: 1, 8, 32>}, {transform_indices = @transform_1, window_bounds = array<i64: 1, 8, 32>}, {transform_indices = @transform_2, window_bounds = array<i64: 1, 1, 8>}, {pipeline_mode = #tpu.pipeline_mode<synchronous>, transform_indices = @transform_3, window_bounds = array<i64: 32, 32>}, {pipeline_mode = #tpu.pipeline_mode<synchronous>, transform_indices = @transform_4, window_bounds = array<i64: 1, 32>}, {pipeline_mode = #tpu.pipeline_mode<synchronous>, transform_indices = @transform_5, window_bounds = array<i64: 32, 64>}, {pipeline_mode = #tpu.pipeline_mode<synchronous>, transform_indices = @transform_6, window_bounds = array<i64: 1, 64>}, {pipeline_mode = #tpu.pipeline_mode<synchronous>, transform_indices = @transform_7, window_bounds = array<i64: 1, 32>}, {pipeline_mode = #tpu.pipeline_mode<synchronous>, transform_indices = @transform_8, window_bounds = array<i64: 1, 32>}, {transform_indices = @transform_9, window_bounds = array<i64: 1, 8, 32>}]} {
    %c0 = arith.constant 0 : index
    %c0_0 = arith.constant 0 : index
    %c0_1 = arith.constant 0 : index
    %0 = vector.load %arg2[%c0, %c0_0, %c0_1] : memref<1x8x32xf32, #tpu.memory_space<vmem>>, vector<1x8x32xf32>
    %1 = vector.shape_cast %0 : vector<1x8x32xf32> to vector<8x32xf32>
    %c0_2 = arith.constant 0 : index
    %c0_3 = arith.constant 0 : index
    %c0_4 = arith.constant 0 : index
    %2 = vector.load %arg3[%c0_2, %c0_3, %c0_4] : memref<1x8x32xf32, #tpu.memory_space<vmem>>, vector<1x8x32xf32>
    %3 = vector.shape_cast %2 : vector<1x8x32xf32> to vector<8x32xf32>
    %c0_5 = arith.constant 0 : index
    %c0_6 = arith.constant 0 : index
    %c0_7 = arith.constant 0 : index
    %4 = vector.load %arg4[%c0_5, %c0_6, %c0_7] : memref<1x1x8xf32, #tpu.memory_space<vmem>>, vector<1x1x8xf32>
    %5 = vector.shape_cast %4 : vector<1x1x8xf32> to vector<8xf32>
    %6 = arith.truncf %1 : vector<8x32xf32> to vector<8x32xbf16>
    %c0_8 = arith.constant 0 : index
    %c0_9 = arith.constant 0 : index
    %7 = vector.load %arg5[%c0_8, %c0_9] : memref<32x32xbf16, #tpu.memory_space<vmem>>, vector<32x32xbf16>
    %cst = arith.constant dense<0.000000e+00> : vector<8x32xf32>
    %8 = tpu.matmul %6, %7, %cst {dimension_numbers = #tpu.dot_dimension_numbers<[1], [0], [0], [1], [0, 0, 1, 1], [], []>} : vector<8x32xbf16>, vector<32x32xbf16>, vector<8x32xf32> -> vector<8x32xf32>
    %c0_10 = arith.constant 0 : index
    %c0_11 = arith.constant 0 : index
    %9 = vector.load %arg6[%c0_10, %c0_11] : memref<1x32xf32, #tpu.memory_space<vmem>>, vector<1x32xf32>
    %10 = vector.shape_cast %9 : vector<1x32xf32> to vector<32xf32>
    %11 = vector.shape_cast %10 : vector<32xf32> to vector<1x32xf32>
    %12 = vector.broadcast %11 : vector<1x32xf32> to vector<8x32xf32>
    %13 = arith.addf %8, %12 : vector<8x32xf32>
    %c0_12 = arith.constant 0 : index
    %c0_13 = arith.constant 0 : index
    %14 = vector.load %arg7[%c0_12, %c0_13] : memref<32x64xbf16, #tpu.memory_space<vmem>>, vector<32x64xbf16>
    %c0_14 = arith.constant 0 : index
    %c0_15 = arith.constant 0 : index
    %15 = vector.load %arg8[%c0_14, %c0_15] : memref<1x64xf32, #tpu.memory_space<vmem>>, vector<1x64xf32>
    %16 = vector.shape_cast %15 : vector<1x64xf32> to vector<64xf32>
    %17 = arith.truncf %3 : vector<8x32xf32> to vector<8x32xbf16>
    %cst_16 = arith.constant dense<0.000000e+00> : vector<8x64xf32>
    %18 = tpu.matmul %17, %14, %cst_16 {dimension_numbers = #tpu.dot_dimension_numbers<[1], [0], [0], [1], [0, 0, 1, 1], [], []>} : vector<8x32xbf16>, vector<32x64xbf16>, vector<8x64xf32> -> vector<8x64xf32>
    %19 = vector.shape_cast %16 : vector<64xf32> to vector<1x64xf32>
    %20 = vector.broadcast %19 : vector<1x64xf32> to vector<8x64xf32>
    %21 = arith.addf %18, %20 : vector<8x64xf32>
    %22 = vector.extract_strided_slice %21 {offsets = [0, 0], sizes = [8, 32], strides = [1, 1]} : vector<8x64xf32> to vector<8x32xf32>
    %23 = vector.extract_strided_slice %21 {offsets = [0, 32], sizes = [8, 32], strides = [1, 1]} : vector<8x64xf32> to vector<8x32xf32>
    %cst_17 = arith.constant 0.000000e+00 : f32
    %24 = vector.broadcast %cst_17 : f32 to vector<8xf32>
    %25 = arith.cmpf ogt, %5, %24 : vector<8xf32>
    %cst_18 = arith.constant 0xFF800000 : f32
    %cst_19 = arith.constant 0.000000e+00 : f32
    %26 = vector.broadcast %cst_18 : f32 to vector<8xf32>
    %27 = vector.broadcast %cst_19 : f32 to vector<8xf32>
    %28 = arith.select %25, %26, %27 : vector<8xi1>, vector<8xf32>
    %29 = tpu.transpose %22, [1, 0] : vector<8x32xf32> -> vector<32x8xf32>
    %30 = vector.extract_strided_slice %13 {offsets = [0, 0], sizes = [8, 8], strides = [1, 1]} : vector<8x32xf32> to vector<8x8xf32>
    %31 = arith.truncf %30 : vector<8x8xf32> to vector<8x8xbf16>
    %32 = vector.extract_strided_slice %29 {offsets = [0, 0], sizes = [8, 8], strides = [1, 1]} : vector<32x8xf32> to vector<8x8xf32>
    %33 = arith.truncf %32 : vector<8x8xf32> to vector<8x8xbf16>
    %34 = vector.extract_strided_slice %23 {offsets = [0, 0], sizes = [8, 8], strides = [1, 1]} : vector<8x32xf32> to vector<8x8xf32>
    %35 = arith.truncf %34 : vector<8x8xf32> to vector<8x8xbf16>
    %cst_20 = arith.constant dense<0.000000e+00> : vector<8x8xf32>
    %36 = tpu.matmul %31, %33, %cst_20 {dimension_numbers = #tpu.dot_dimension_numbers<[1], [0], [0], [1], [0, 0, 1, 1], [], []>} : vector<8x8xbf16>, vector<8x8xbf16>, vector<8x8xf32> -> vector<8x8xf32>
    %37 = vector.shape_cast %28 : vector<8xf32> to vector<1x8xf32>
    %38 = vector.broadcast %37 : vector<1x8xf32> to vector<8x8xf32>
    %39 = arith.addf %36, %38 : vector<8x8xf32>
    %cst_21 = arith.constant dense<0xFF800000> : vector<8xf32>
    %40 = vector.multi_reduction <maximumf>, %39, %cst_21 [1] : vector<8x8xf32> to vector<8xf32>
    %41 = vector.shape_cast %40 : vector<8xf32> to vector<8x1xf32>
    %42 = vector.broadcast %41 : vector<8x1xf32> to vector<8x8xf32>
    %43 = arith.subf %39, %42 : vector<8x8xf32>
    %44 = math.exp %43 : vector<8x8xf32>
    %cst_22 = arith.constant dense<0.000000e+00> : vector<8xf32>
    %45 = vector.multi_reduction <add>, %44, %cst_22 [1] : vector<8x8xf32> to vector<8xf32>
    %46 = vector.shape_cast %45 : vector<8xf32> to vector<8x1xf32>
    %47 = arith.truncf %44 : vector<8x8xf32> to vector<8x8xbf16>
    %cst_23 = arith.constant dense<0.000000e+00> : vector<8x8xf32>
    %48 = tpu.matmul %47, %35, %cst_23 {dimension_numbers = #tpu.dot_dimension_numbers<[1], [0], [0], [1], [0, 0, 1, 1], [], []>} : vector<8x8xbf16>, vector<8x8xbf16>, vector<8x8xf32> -> vector<8x8xf32>
    %49 = tpu.reciprocal %46 {approx = true} : vector<8x1xf32> -> vector<8x1xf32>
    %50 = vector.broadcast %49 : vector<8x1xf32> to vector<8x8xf32>
    %51 = arith.mulf %48, %50 : vector<8x8xf32>
    %52 = vector.extract_strided_slice %13 {offsets = [0, 8], sizes = [8, 8], strides = [1, 1]} : vector<8x32xf32> to vector<8x8xf32>
    %53 = arith.truncf %52 : vector<8x8xf32> to vector<8x8xbf16>
    %54 = vector.extract_strided_slice %29 {offsets = [8, 0], sizes = [8, 8], strides = [1, 1]} : vector<32x8xf32> to vector<8x8xf32>
    %55 = arith.truncf %54 : vector<8x8xf32> to vector<8x8xbf16>
    %56 = vector.extract_strided_slice %23 {offsets = [0, 8], sizes = [8, 8], strides = [1, 1]} : vector<8x32xf32> to vector<8x8xf32>
    %57 = arith.truncf %56 : vector<8x8xf32> to vector<8x8xbf16>
    %cst_24 = arith.constant dense<0.000000e+00> : vector<8x8xf32>
    %58 = tpu.matmul %53, %55, %cst_24 {dimension_numbers = #tpu.dot_dimension_numbers<[1], [0], [0], [1], [0, 0, 1, 1], [], []>} : vector<8x8xbf16>, vector<8x8xbf16>, vector<8x8xf32> -> vector<8x8xf32>
    %59 = vector.shape_cast %28 : vector<8xf32> to vector<1x8xf32>
    %60 = vector.broadcast %59 : vector<1x8xf32> to vector<8x8xf32>
    %61 = arith.addf %58, %60 : vector<8x8xf32>
    %cst_25 = arith.constant dense<0xFF800000> : vector<8xf32>
    %62 = vector.multi_reduction <maximumf>, %61, %cst_25 [1] : vector<8x8xf32> to vector<8xf32>
    %63 = vector.shape_cast %62 : vector<8xf32> to vector<8x1xf32>
    %64 = vector.broadcast %63 : vector<8x1xf32> to vector<8x8xf32>
    %65 = arith.subf %61, %64 : vector<8x8xf32>
    %66 = math.exp %65 : vector<8x8xf32>
    %cst_26 = arith.constant dense<0.000000e+00> : vector<8xf32>
    %67 = vector.multi_reduction <add>, %66, %cst_26 [1] : vector<8x8xf32> to vector<8xf32>
    %68 = vector.shape_cast %67 : vector<8xf32> to vector<8x1xf32>
    %69 = arith.truncf %66 : vector<8x8xf32> to vector<8x8xbf16>
    %cst_27 = arith.constant dense<0.000000e+00> : vector<8x8xf32>
    %70 = tpu.matmul %69, %57, %cst_27 {dimension_numbers = #tpu.dot_dimension_numbers<[1], [0], [0], [1], [0, 0, 1, 1], [], []>} : vector<8x8xbf16>, vector<8x8xbf16>, vector<8x8xf32> -> vector<8x8xf32>
    %71 = tpu.reciprocal %68 {approx = true} : vector<8x1xf32> -> vector<8x1xf32>
    %72 = vector.broadcast %71 : vector<8x1xf32> to vector<8x8xf32>
    %73 = arith.mulf %70, %72 : vector<8x8xf32>
    %74 = vector.extract_strided_slice %13 {offsets = [0, 16], sizes = [8, 8], strides = [1, 1]} : vector<8x32xf32> to vector<8x8xf32>
    %75 = arith.truncf %74 : vector<8x8xf32> to vector<8x8xbf16>
    %76 = vector.extract_strided_slice %29 {offsets = [16, 0], sizes = [8, 8], strides = [1, 1]} : vector<32x8xf32> to vector<8x8xf32>
    %77 = arith.truncf %76 : vector<8x8xf32> to vector<8x8xbf16>
    %78 = vector.extract_strided_slice %23 {offsets = [0, 16], sizes = [8, 8], strides = [1, 1]} : vector<8x32xf32> to vector<8x8xf32>
    %79 = arith.truncf %78 : vector<8x8xf32> to vector<8x8xbf16>
    %cst_28 = arith.constant dense<0.000000e+00> : vector<8x8xf32>
    %80 = tpu.matmul %75, %77, %cst_28 {dimension_numbers = #tpu.dot_dimension_numbers<[1], [0], [0], [1], [0, 0, 1, 1], [], []>} : vector<8x8xbf16>, vector<8x8xbf16>, vector<8x8xf32> -> vector<8x8xf32>
    %81 = vector.shape_cast %28 : vector<8xf32> to vector<1x8xf32>
    %82 = vector.broadcast %81 : vector<1x8xf32> to vector<8x8xf32>
    %83 = arith.addf %80, %82 : vector<8x8xf32>
    %cst_29 = arith.constant dense<0xFF800000> : vector<8xf32>
    %84 = vector.multi_reduction <maximumf>, %83, %cst_29 [1] : vector<8x8xf32> to vector<8xf32>
    %85 = vector.shape_cast %84 : vector<8xf32> to vector<8x1xf32>
    %86 = vector.broadcast %85 : vector<8x1xf32> to vector<8x8xf32>
    %87 = arith.subf %83, %86 : vector<8x8xf32>
    %88 = math.exp %87 : vector<8x8xf32>
    %cst_30 = arith.constant dense<0.000000e+00> : vector<8xf32>
    %89 = vector.multi_reduction <add>, %88, %cst_30 [1] : vector<8x8xf32> to vector<8xf32>
    %90 = vector.shape_cast %89 : vector<8xf32> to vector<8x1xf32>
    %91 = arith.truncf %88 : vector<8x8xf32> to vector<8x8xbf16>
    %cst_31 = arith.constant dense<0.000000e+00> : vector<8x8xf32>
    %92 = tpu.matmul %91, %79, %cst_31 {dimension_numbers = #tpu.dot_dimension_numbers<[1], [0], [0], [1], [0, 0, 1, 1], [], []>} : vector<8x8xbf16>, vector<8x8xbf16>, vector<8x8xf32> -> vector<8x8xf32>
    %93 = tpu.reciprocal %90 {approx = true} : vector<8x1xf32> -> vector<8x1xf32>
    %94 = vector.broadcast %93 : vector<8x1xf32> to vector<8x8xf32>
    %95 = arith.mulf %92, %94 : vector<8x8xf32>
    %96 = vector.extract_strided_slice %13 {offsets = [0, 24], sizes = [8, 8], strides = [1, 1]} : vector<8x32xf32> to vector<8x8xf32>
    %97 = arith.truncf %96 : vector<8x8xf32> to vector<8x8xbf16>
    %98 = vector.extract_strided_slice %29 {offsets = [24, 0], sizes = [8, 8], strides = [1, 1]} : vector<32x8xf32> to vector<8x8xf32>
    %99 = arith.truncf %98 : vector<8x8xf32> to vector<8x8xbf16>
    %100 = vector.extract_strided_slice %23 {offsets = [0, 24], sizes = [8, 8], strides = [1, 1]} : vector<8x32xf32> to vector<8x8xf32>
    %101 = arith.truncf %100 : vector<8x8xf32> to vector<8x8xbf16>
    %cst_32 = arith.constant dense<0.000000e+00> : vector<8x8xf32>
    %102 = tpu.matmul %97, %99, %cst_32 {dimension_numbers = #tpu.dot_dimension_numbers<[1], [0], [0], [1], [0, 0, 1, 1], [], []>} : vector<8x8xbf16>, vector<8x8xbf16>, vector<8x8xf32> -> vector<8x8xf32>
    %103 = vector.shape_cast %28 : vector<8xf32> to vector<1x8xf32>
    %104 = vector.broadcast %103 : vector<1x8xf32> to vector<8x8xf32>
    %105 = arith.addf %102, %104 : vector<8x8xf32>
    %cst_33 = arith.constant dense<0xFF800000> : vector<8xf32>
    %106 = vector.multi_reduction <maximumf>, %105, %cst_33 [1] : vector<8x8xf32> to vector<8xf32>
    %107 = vector.shape_cast %106 : vector<8xf32> to vector<8x1xf32>
    %108 = vector.broadcast %107 : vector<8x1xf32> to vector<8x8xf32>
    %109 = arith.subf %105, %108 : vector<8x8xf32>
    %110 = math.exp %109 : vector<8x8xf32>
    %cst_34 = arith.constant dense<0.000000e+00> : vector<8xf32>
    %111 = vector.multi_reduction <add>, %110, %cst_34 [1] : vector<8x8xf32> to vector<8xf32>
    %112 = vector.shape_cast %111 : vector<8xf32> to vector<8x1xf32>
    %113 = arith.truncf %110 : vector<8x8xf32> to vector<8x8xbf16>
    %cst_35 = arith.constant dense<0.000000e+00> : vector<8x8xf32>
    %114 = tpu.matmul %113, %101, %cst_35 {dimension_numbers = #tpu.dot_dimension_numbers<[1], [0], [0], [1], [0, 0, 1, 1], [], []>} : vector<8x8xbf16>, vector<8x8xbf16>, vector<8x8xf32> -> vector<8x8xf32>
    %115 = tpu.reciprocal %112 {approx = true} : vector<8x1xf32> -> vector<8x1xf32>
    %116 = vector.broadcast %115 : vector<8x1xf32> to vector<8x8xf32>
    %117 = arith.mulf %114, %116 : vector<8x8xf32>
    %118 = tpu.concatenate %51, %73, %95, %117 in 1 : vector<8x8xf32>, vector<8x8xf32>, vector<8x8xf32>, vector<8x8xf32> -> vector<8x32xf32>
    %119 = arith.addf %118, %1 : vector<8x32xf32>
    %cst_36 = arith.constant dense<0.000000e+00> : vector<8xf32>
    %120 = vector.multi_reduction <add>, %119, %cst_36 [1] : vector<8x32xf32> to vector<8xf32>
    %121 = vector.shape_cast %120 : vector<8xf32> to vector<8x1xf32>
    %cst_37 = arith.constant 3.200000e+01 : f32
    %122 = vector.broadcast %cst_37 : f32 to vector<8x1xf32>
    %123 = arith.divf %121, %122 : vector<8x1xf32>
    %124 = vector.broadcast %123 : vector<8x1xf32> to vector<8x32xf32>
    %125 = arith.subf %119, %124 : vector<8x32xf32>
    %126 = arith.mulf %125, %125 : vector<8x32xf32>
    %cst_38 = arith.constant dense<0.000000e+00> : vector<8xf32>
    %127 = vector.multi_reduction <add>, %126, %cst_38 [1] : vector<8x32xf32> to vector<8xf32>
    %128 = vector.shape_cast %127 : vector<8xf32> to vector<8x1xf32>
    %cst_39 = arith.constant 3.200000e+01 : f32
    %129 = vector.broadcast %cst_39 : f32 to vector<8x1xf32>
    %130 = arith.divf %128, %129 : vector<8x1xf32>
    %131 = vector.broadcast %123 : vector<8x1xf32> to vector<8x32xf32>
    %132 = arith.subf %119, %131 : vector<8x32xf32>
    %cst_40 = arith.constant 9.99999974E-6 : f32
    %133 = vector.broadcast %cst_40 : f32 to vector<8x1xf32>
    %134 = arith.addf %130, %133 : vector<8x1xf32>
    %135 = math.rsqrt %134 : vector<8x1xf32>
    %136 = vector.broadcast %135 : vector<8x1xf32> to vector<8x32xf32>
    %137 = arith.mulf %132, %136 : vector<8x32xf32>
    %c0_41 = arith.constant 0 : index
    %c0_42 = arith.constant 0 : index
    %138 = vector.load %arg9[%c0_41, %c0_42] : memref<1x32xf32, #tpu.memory_space<vmem>>, vector<1x32xf32>
    %139 = vector.shape_cast %138 : vector<1x32xf32> to vector<32xf32>
    %140 = vector.shape_cast %139 : vector<32xf32> to vector<1x32xf32>
    %141 = vector.broadcast %140 : vector<1x32xf32> to vector<8x32xf32>
    %142 = arith.mulf %137, %141 : vector<8x32xf32>
    %c0_43 = arith.constant 0 : index
    %c0_44 = arith.constant 0 : index
    %143 = vector.load %arg10[%c0_43, %c0_44] : memref<1x32xf32, #tpu.memory_space<vmem>>, vector<1x32xf32>
    %144 = vector.shape_cast %143 : vector<1x32xf32> to vector<32xf32>
    %145 = vector.shape_cast %144 : vector<32xf32> to vector<1x32xf32>
    %146 = vector.broadcast %145 : vector<1x32xf32> to vector<8x32xf32>
    %147 = arith.addf %142, %146 : vector<8x32xf32>
    %c0_45 = arith.constant 0 : index
    %c0_46 = arith.constant 0 : index
    %c0_47 = arith.constant 0 : index
    %148 = vector.load %arg11[%c0_45, %c0_46, %c0_47] : memref<1x8x32xf32, #tpu.memory_space<vmem>>, vector<1x8x32xf32>
    %149 = vector.shape_cast %148 : vector<1x8x32xf32> to vector<8x32xf32>
    %150 = vector.shape_cast %147 : vector<8x32xf32> to vector<1x8x32xf32>
    tpu.vector_store %arg11[%c0_45, %c0_46, %c0_47], %150 {strides = array<i32>} : memref<1x8x32xf32, #tpu.memory_space<vmem>>, vector<1x8x32xf32>,
    return
  }
  func.func @transform_0(%arg0: i32, %arg1: i32) -> (i32, i32, i32) {
    %c0_i32 = arith.constant 0 : i32
    %c0_i32_0 = arith.constant 0 : i32
    return %arg0, %arg1, %c0_i32 : i32, i32, i32
  }
  func.func @transform_1(%arg0: i32, %arg1: i32) -> (i32, i32, i32) {
    %c0_i32 = arith.constant 0 : i32
    %c0_i32_0 = arith.constant 0 : i32
    %c0_i32_1 = arith.constant 0 : i32
    return %arg0, %c0_i32, %c0_i32_0 : i32, i32, i32
  }
  func.func @transform_2(%arg0: i32, %arg1: i32) -> (i32, i32, i32) {
    %c0_i32 = arith.constant 0 : i32
    %c0_i32_0 = arith.constant 0 : i32
    %c0_i32_1 = arith.constant 0 : i32
    return %arg0, %c0_i32, %c0_i32_0 : i32, i32, i32
  }
  func.func @transform_3(%arg0: i32, %arg1: i32) -> (i32, i32) {
    %c0_i32 = arith.constant 0 : i32
    %c0_i32_0 = arith.constant 0 : i32
    %c0_i32_1 = arith.constant 0 : i32
    return %c0_i32, %c0_i32_0 : i32, i32
  }
  func.func @transform_4(%arg0: i32, %arg1: i32) -> (i32, i32) {
    %c0_i32 = arith.constant 0 : i32
    %c0_i32_0 = arith.constant 0 : i32
    %c0_i32_1 = arith.constant 0 : i32
    return %c0_i32, %c0_i32_0 : i32, i32
  }
  func.func @transform_5(%arg0: i32, %arg1: i32) -> (i32, i32) {
    %c0_i32 = arith.constant 0 : i32
    %c0_i32_0 = arith.constant 0 : i32
    %c0_i32_1 = arith.constant 0 : i32
    return %c0_i32, %c0_i32_0 : i32, i32
  }
  func.func @transform_6(%arg0: i32, %arg1: i32) -> (i32, i32) {
    %c0_i32 = arith.constant 0 : i32
    %c0_i32_0 = arith.constant 0 : i32
    %c0_i32_1 = arith.constant 0 : i32
    return %c0_i32, %c0_i32_0 : i32, i32
  }
  func.func @transform_7(%arg0: i32, %arg1: i32) -> (i32, i32) {
    %c0_i32 = arith.constant 0 : i32
    %c0_i32_0 = arith.constant 0 : i32
    %c0_i32_1 = arith.constant 0 : i32
    return %c0_i32, %c0_i32_0 : i32, i32
  }
  func.func @transform_8(%arg0: i32, %arg1: i32) -> (i32, i32) {
    %c0_i32 = arith.constant 0 : i32
    %c0_i32_0 = arith.constant 0 : i32
    %c0_i32_1 = arith.constant 0 : i32
    return %c0_i32, %c0_i32_0 : i32, i32
  }
  func.func @transform_9(%arg0: i32, %arg1: i32) -> (i32, i32, i32) {
    %c0_i32 = arith.constant 0 : i32
    %c0_i32_0 = arith.constant 0 : i32
    return %arg0, %arg1, %c0_i32 : i32, i32, i32
  }
}

module attributes {stable_mosaic.version = 11 : i64} {
  func.func @_mha_kernel(%arg0: i32, %arg1: i32, %arg2: memref<1x8x32xf32, #tpu.memory_space<vmem>>, %arg3: memref<1x8x32xf32, #tpu.memory_space<vmem>>, %arg4: memref<1x1x8xf32, #tpu.memory_space<vmem>>, %arg5: memref<32x32xbf16, #tpu.memory_space<vmem>>, %arg6: memref<1x32xf32, #tpu.memory_space<vmem>>, %arg7: memref<32x64xbf16, #tpu.memory_space<vmem>>, %arg8: memref<1x64xf32, #tpu.memory_space<vmem>>, %arg9: memref<1x32xf32, #tpu.memory_space<vmem>>, %arg10: memref<1x32xf32, #tpu.memory_space<vmem>>, %arg11: memref<1x8x32xf32, #tpu.memory_space<vmem>>) attributes {dimension_semantics = [#tpu.dimension_semantics<parallel>, #tpu.dimension_semantics<parallel>], iteration_bounds = array<i64: 2, 1>, scalar_prefetch = 0 : i64, scratch_operands = 0 : i64, tpu.core_type = #tpu.core_type<tc>, window_params = [{transform_indices = @transform_0, window_bounds = array<i64: 1, 8, 32>}, {transform_indices = @transform_1, window_bounds = array<i64: 1, 8, 32>}, {transform_indices = @transform_2, window_bounds = array<i64: 1, 1, 8>}, {pipeline_mode = #tpu.pipeline_mode<synchronous>, transform_indices = @transform_3, window_bounds = array<i64: 32, 32>}, {pipeline_mode = #tpu.pipeline_mode<synchronous>, transform_indices = @transform_4, window_bounds = array<i64: 1, 32>}, {pipeline_mode = #tpu.pipeline_mode<synchronous>, transform_indices = @transform_5, window_bounds = array<i64: 32, 64>}, {pipeline_mode = #tpu.pipeline_mode<synchronous>, transform_indices = @transform_6, window_bounds = array<i64: 1, 64>}, {pipeline_mode = #tpu.pipeline_mode<synchronous>, transform_indices = @transform_7, window_bounds = array<i64: 1, 32>}, {pipeline_mode = #tpu.pipeline_mode<synchronous>, transform_indices = @transform_8, window_bounds = array<i64: 1, 32>}, {transform_indices = @transform_9, window_bounds = array<i64: 1, 8, 32>}]} {
    %c0 = arith.constant 0 : index
    %c0_0 = arith.constant 0 : index
    %c0_1 = arith.constant 0 : index
    %0 = vector.load %arg2[%c0, %c0_0, %c0_1] : memref<1x8x32xf32, #tpu.memory_space<vmem>>, vector<1x8x32xf32>
    %1 = vector.shape_cast %0 : vector<1x8x32xf32> to vector<8x32xf32>
    %c0_2 = arith.constant 0 : index
    %c0_3 = arith.constant 0 : index
    %c0_4 = arith.constant 0 : index
    %2 = vector.load %arg3[%c0_2, %c0_3, %c0_4] : memref<1x8x32xf32, #tpu.memory_space<vmem>>, vector<1x8x32xf32>
    %3 = vector.shape_cast %2 : vector<1x8x32xf32> to vector<8x32xf32>
    %c0_5 = arith.constant 0 : index
    %c0_6 = arith.constant 0 : index
    %c0_7 = arith.constant 0 : index
    %4 = vector.load %arg4[%c0_5, %c0_6, %c0_7] : memref<1x1x8xf32, #tpu.memory_space<vmem>>, vector<1x1x8xf32>
    %5 = vector.shape_cast %4 : vector<1x1x8xf32> to vector<8xf32>
    %6 = arith.truncf %1 : vector<8x32xf32> to vector<8x32xbf16>
    %c0_8 = arith.constant 0 : index
    %c0_9 = arith.constant 0 : index
    %7 = vector.load %arg5[%c0_8, %c0_9] : memref<32x32xbf16, #tpu.memory_space<vmem>>, vector<32x32xbf16>
    %cst = arith.constant dense<0.000000e+00> : vector<8x32xf32>
    %8 = tpu.matmul %6, %7, %cst {dimension_numbers = #tpu.dot_dimension_numbers<[1], [0], [0], [1], [0, 0, 1, 1], [], []>} : vector<8x32xbf16>, vector<32x32xbf16>, vector<8x32xf32> -> vector<8x32xf32>
    %c0_10 = arith.constant 0 : index
    %c0_11 = arith.constant 0 : index
    %9 = vector.load %arg6[%c0_10, %c0_11] : memref<1x32xf32, #tpu.memory_space<vmem>>, vector<1x32xf32>
    %10 = vector.shape_cast %9 : vector<1x32xf32> to vector<32xf32>
    %11 = vector.shape_cast %10 : vector<32xf32> to vector<1x32xf32>
    %12 = vector.broadcast %11 : vector<1x32xf32> to vector<8x32xf32>
    %13 = arith.addf %8, %12 : vector<8x32xf32>
    %c0_12 = arith.constant 0 : index
    %c0_13 = arith.constant 0 : index
    %14 = vector.load %arg7[%c0_12, %c0_13] : memref<32x64xbf16, #tpu.memory_space<vmem>>, vector<32x64xbf16>
    %c0_14 = arith.constant 0 : index
    %c0_15 = arith.constant 0 : index
    %15 = vector.load %arg8[%c0_14, %c0_15] : memref<1x64xf32, #tpu.memory_space<vmem>>, vector<1x64xf32>
    %16 = vector.shape_cast %15 : vector<1x64xf32> to vector<64xf32>
    %17 = arith.truncf %3 : vector<8x32xf32> to vector<8x32xbf16>
    %cst_16 = arith.constant dense<0.000000e+00> : vector<8x64xf32>
    %18 = tpu.matmul %17, %14, %cst_16 {dimension_numbers = #tpu.dot_dimension_numbers<[1], [0], [0], [1], [0, 0, 1, 1], [], []>} : vector<8x32xbf16>, vector<32x64xbf16>, vector<8x64xf32> -> vector<8x64xf32>
    %19 = vector.shape_cast %16 : vector<64xf32> to vector<1x64xf32>
    %20 = vector.broadcast %19 : vector<1x64xf32> to vector<8x64xf32>
    %21 = arith.addf %18, %20 : vector<8x64xf32>
    %22 = vector.extract_strided_slice %21 {offsets = [0, 0], sizes = [8, 32], strides = [1, 1]} : vector<8x64xf32> to vector<8x32xf32>
    %23 = vector.extract_strided_slice %21 {offsets = [0, 32], sizes = [8, 32], strides = [1, 1]} : vector<8x64xf32> to vector<8x32xf32>
    %cst_17 = arith.constant 0.000000e+00 : f32
    %24 = vector.broadcast %cst_17 : f32 to vector<8xf32>
    %25 = arith.cmpf ogt, %5, %24 : vector<8xf32>
    %cst_18 = arith.constant 0xFF800000 : f32
    %cst_19 = arith.constant 0.000000e+00 : f32
    %26 = vector.broadcast %cst_18 : f32 to vector<8xf32>
    %27 = vector.broadcast %cst_19 : f32 to vector<8xf32>
    %28 = arith.select %25, %26, %27 : vector<8xi1>, vector<8xf32>
    %29 = tpu.transpose %22, [1, 0] : vector<8x32xf32> -> vector<32x8xf32>
    %30 = vector.extract_strided_slice %13 {offsets = [0, 0], sizes = [8, 8], strides = [1, 1]} : vector<8x32xf32> to vector<8x8xf32>
    %31 = arith.truncf %30 : vector<8x8xf32> to vector<8x8xbf16>
    %32 = vector.extract_strided_slice %29 {offsets = [0, 0], sizes = [8, 8], strides = [1, 1]} : vector<32x8xf32> to vector<8x8xf32>
    %33 = arith.truncf %32 : vector<8x8xf32> to vector<8x8xbf16>
    %34 = vector.extract_strided_slice %23 {offsets = [0, 0], sizes = [8, 8], strides = [1, 1]} : vector<8x32xf32> to vector<8x8xf32>
    %35 = arith.truncf %34 : vector<8x8xf32> to vector<8x8xbf16>
    %cst_20 = arith.constant dense<0.000000e+00> : vector<8x8xf32>
    %36 = tpu.matmul %31, %33, %cst_20 {dimension_numbers = #tpu.dot_dimension_numbers<[1], [0], [0], [1], [0, 0, 1, 1], [], []>} : vector<8x8xbf16>, vector<8x8xbf16>, vector<8x8xf32> -> vector<8x8xf32>
    %37 = vector.shape_cast %28 : vector<8xf32> to vector<1x8xf32>
    %38 = vector.broadcast %37 : vector<1x8xf32> to vector<8x8xf32>
    %39 = arith.addf %36, %38 : vector<8x8xf32>
    %cst_21 = arith.constant dense<0xFF800000> : vector<8xf32>
    %40 = vector.multi_reduction <maximumf>, %39, %cst_21 [1] : vector<8x8xf32> to vector<8xf32>
    %41 = vector.shape_cast %40 : vector<8xf32> to vector<8x1xf32>
    %42 = vector.broadcast %41 : vector<8x1xf32> to vector<8x8xf32>
    %43 = arith.subf %39, %42 : vector<8x8xf32>
    %44 = math.exp %43 : vector<8x8xf32>
    %cst_22 = arith.constant dense<0.000000e+00> : vector<8xf32>
    %45 = vector.multi_reduction <add>, %44, %cst_22 [1] : vector<8x8xf32> to vector<8xf32>
    %46 = vector.shape_cast %45 : vector<8xf32> to vector<8x1xf32>
    %47 = arith.truncf %44 : vector<8x8xf32> to vector<8x8xbf16>
    %cst_23 = arith.constant dense<0.000000e+00> : vector<8x8xf32>
    %48 = tpu.matmul %47, %35, %cst_23 {dimension_numbers = #tpu.dot_dimension_numbers<[1], [0], [0], [1], [0, 0, 1, 1], [], []>} : vector<8x8xbf16>, vector<8x8xbf16>, vector<8x8xf32> -> vector<8x8xf32>
    %49 = tpu.reciprocal %46 {approx = true} : vector<8x1xf32> -> vector<8x1xf32>
    %50 = vector.broadcast %49 : vector<8x1xf32> to vector<8x8xf32>
    %51 = arith.mulf %48, %50 : vector<8x8xf32>
    %52 = vector.extract_strided_slice %13 {offsets = [0, 8], sizes = [8, 8], strides = [1, 1]} : vector<8x32xf32> to vector<8x8xf32>
    %53 = arith.truncf %52 : vector<8x8xf32> to vector<8x8xbf16>
    %54 = vector.extract_strided_slice %29 {offsets = [8, 0], sizes = [8, 8], strides = [1, 1]} : vector<32x8xf32> to vector<8x8xf32>
    %55 = arith.truncf %54 : vector<8x8xf32> to vector<8x8xbf16>
    %56 = vector.extract_strided_slice %23 {offsets = [0, 8], sizes = [8, 8], strides = [1, 1]} : vector<8x32xf32> to vector<8x8xf32>
    %57 = arith.truncf %56 : vector<8x8xf32> to vector<8x8xbf16>
    %cst_24 = arith.constant dense<0.000000e+00> : vector<8x8xf32>
    %58 = tpu.matmul %53, %55, %cst_24 {dimension_numbers = #tpu.dot_dimension_numbers<[1], [0], [0], [1], [0, 0, 1, 1], [], []>} : vector<8x8xbf16>, vector<8x8xbf16>, vector<8x8xf32> -> vector<8x8xf32>
    %59 = vector.shape_cast %28 : vector<8xf32> to vector<1x8xf32>
    %60 = vector.broadcast %59 : vector<1x8xf32> to vector<8x8xf32>
    %61 = arith.addf %58, %60 : vector<8x8xf32>
    %cst_25 = arith.constant dense<0xFF800000> : vector<8xf32>
    %62 = vector.multi_reduction <maximumf>, %61, %cst_25 [1] : vector<8x8xf32> to vector<8xf32>
    %63 = vector.shape_cast %62 : vector<8xf32> to vector<8x1xf32>
    %64 = vector.broadcast %63 : vector<8x1xf32> to vector<8x8xf32>
    %65 = arith.subf %61, %64 : vector<8x8xf32>
    %66 = math.exp %65 : vector<8x8xf32>
    %cst_26 = arith.constant dense<0.000000e+00> : vector<8xf32>
    %67 = vector.multi_reduction <add>, %66, %cst_26 [1] : vector<8x8xf32> to vector<8xf32>
    %68 = vector.shape_cast %67 : vector<8xf32> to vector<8x1xf32>
    %69 = arith.truncf %66 : vector<8x8xf32> to vector<8x8xbf16>
    %cst_27 = arith.constant dense<0.000000e+00> : vector<8x8xf32>
    %70 = tpu.matmul %69, %57, %cst_27 {dimension_numbers = #tpu.dot_dimension_numbers<[1], [0], [0], [1], [0, 0, 1, 1], [], []>} : vector<8x8xbf16>, vector<8x8xbf16>, vector<8x8xf32> -> vector<8x8xf32>
    %71 = tpu.reciprocal %68 {approx = true} : vector<8x1xf32> -> vector<8x1xf32>
    %72 = vector.broadcast %71 : vector<8x1xf32> to vector<8x8xf32>
    %73 = arith.mulf %70, %72 : vector<8x8xf32>
    %74 = vector.extract_strided_slice %13 {offsets = [0, 16], sizes = [8, 8], strides = [1, 1]} : vector<8x32xf32> to vector<8x8xf32>
    %75 = arith.truncf %74 : vector<8x8xf32> to vector<8x8xbf16>
    %76 = vector.extract_strided_slice %29 {offsets = [16, 0], sizes = [8, 8], strides = [1, 1]} : vector<32x8xf32> to vector<8x8xf32>
    %77 = arith.truncf %76 : vector<8x8xf32> to vector<8x8xbf16>
    %78 = vector.extract_strided_slice %23 {offsets = [0, 16], sizes = [8, 8], strides = [1, 1]} : vector<8x32xf32> to vector<8x8xf32>
    %79 = arith.truncf %78 : vector<8x8xf32> to vector<8x8xbf16>
    %cst_28 = arith.constant dense<0.000000e+00> : vector<8x8xf32>
    %80 = tpu.matmul %75, %77, %cst_28 {dimension_numbers = #tpu.dot_dimension_numbers<[1], [0], [0], [1], [0, 0, 1, 1], [], []>} : vector<8x8xbf16>, vector<8x8xbf16>, vector<8x8xf32> -> vector<8x8xf32>
    %81 = vector.shape_cast %28 : vector<8xf32> to vector<1x8xf32>
    %82 = vector.broadcast %81 : vector<1x8xf32> to vector<8x8xf32>
    %83 = arith.addf %80, %82 : vector<8x8xf32>
    %cst_29 = arith.constant dense<0xFF800000> : vector<8xf32>
    %84 = vector.multi_reduction <maximumf>, %83, %cst_29 [1] : vector<8x8xf32> to vector<8xf32>
    %85 = vector.shape_cast %84 : vector<8xf32> to vector<8x1xf32>
    %86 = vector.broadcast %85 : vector<8x1xf32> to vector<8x8xf32>
    %87 = arith.subf %83, %86 : vector<8x8xf32>
    %88 = math.exp %87 : vector<8x8xf32>
    %cst_30 = arith.constant dense<0.000000e+00> : vector<8xf32>
    %89 = vector.multi_reduction <add>, %88, %cst_30 [1] : vector<8x8xf32> to vector<8xf32>
    %90 = vector.shape_cast %89 : vector<8xf32> to vector<8x1xf32>
    %91 = arith.truncf %88 : vector<8x8xf32> to vector<8x8xbf16>
    %cst_31 = arith.constant dense<0.000000e+00> : vector<8x8xf32>
    %92 = tpu.matmul %91, %79, %cst_31 {dimension_numbers = #tpu.dot_dimension_numbers<[1], [0], [0], [1], [0, 0, 1, 1], [], []>} : vector<8x8xbf16>, vector<8x8xbf16>, vector<8x8xf32> -> vector<8x8xf32>
    %93 = tpu.reciprocal %90 {approx = true} : vector<8x1xf32> -> vector<8x1xf32>
    %94 = vector.broadcast %93 : vector<8x1xf32> to vector<8x8xf32>
    %95 = arith.mulf %92, %94 : vector<8x8xf32>
    %96 = vector.extract_strided_slice %13 {offsets = [0, 24], sizes = [8, 8], strides = [1, 1]} : vector<8x32xf32> to vector<8x8xf32>
    %97 = arith.truncf %96 : vector<8x8xf32> to vector<8x8xbf16>
    %98 = vector.extract_strided_slice %29 {offsets = [24, 0], sizes = [8, 8], strides = [1, 1]} : vector<32x8xf32> to vector<8x8xf32>
    %99 = arith.truncf %98 : vector<8x8xf32> to vector<8x8xbf16>
    %100 = vector.extract_strided_slice %23 {offsets = [0, 24], sizes = [8, 8], strides = [1, 1]} : vector<8x32xf32> to vector<8x8xf32>
    %101 = arith.truncf %100 : vector<8x8xf32> to vector<8x8xbf16>
    %cst_32 = arith.constant dense<0.000000e+00> : vector<8x8xf32>
    %102 = tpu.matmul %97, %99, %cst_32 {dimension_numbers = #tpu.dot_dimension_numbers<[1], [0], [0], [1], [0, 0, 1, 1], [], []>} : vector<8x8xbf16>, vector<8x8xbf16>, vector<8x8xf32> -> vector<8x8xf32>
    %103 = vector.shape_cast %28 : vector<8xf32> to vector<1x8xf32>
    %104 = vector.broadcast %103 : vector<1x8xf32> to vector<8x8xf32>
    %105 = arith.addf %102, %104 : vector<8x8xf32>
    %cst_33 = arith.constant dense<0xFF800000> : vector<8xf32>
    %106 = vector.multi_reduction <maximumf>, %105, %cst_33 [1] : vector<8x8xf32> to vector<8xf32>
    %107 = vector.shape_cast %106 : vector<8xf32> to vector<8x1xf32>
    %108 = vector.broadcast %107 : vector<8x1xf32> to vector<8x8xf32>
    %109 = arith.subf %105, %108 : vector<8x8xf32>
    %110 = math.exp %109 : vector<8x8xf32>
    %cst_34 = arith.constant dense<0.000000e+00> : vector<8xf32>
    %111 = vector.multi_reduction <add>, %110, %cst_34 [1] : vector<8x8xf32> to vector<8xf32>
    %112 = vector.shape_cast %111 : vector<8xf32> to vector<8x1xf32>
    %113 = arith.truncf %110 : vector<8x8xf32> to vector<8x8xbf16>
    %cst_35 = arith.constant dense<0.000000e+00> : vector<8x8xf32>
    %114 = tpu.matmul %113, %101, %cst_35 {dimension_numbers = #tpu.dot_dimension_numbers<[1], [0], [0], [1], [0, 0, 1, 1], [], []>} : vector<8x8xbf16>, vector<8x8xbf16>, vector<8x8xf32> -> vector<8x8xf32>
    %115 = tpu.reciprocal %112 {approx = true} : vector<8x1xf32> -> vector<8x1xf32>
    %116 = vector.broadcast %115 : vector<8x1xf32> to vector<8x8xf32>
    %117 = arith.mulf %114, %116 : vector<8x8xf32>
    %118 = tpu.concatenate %51, %73, %95, %117 in 1 : vector<8x8xf32>, vector<8x8xf32>, vector<8x8xf32>, vector<8x8xf32> -> vector<8x32xf32>
    %119 = arith.addf %118, %1 : vector<8x32xf32>
    %cst_36 = arith.constant dense<0.000000e+00> : vector<8xf32>
    %120 = vector.multi_reduction <add>, %119, %cst_36 [1] : vector<8x32xf32> to vector<8xf32>
    %121 = vector.shape_cast %120 : vector<8xf32> to vector<8x1xf32>
    %cst_37 = arith.constant 3.200000e+01 : f32
    %122 = vector.broadcast %cst_37 : f32 to vector<8x1xf32>
    %123 = arith.divf %121, %122 : vector<8x1xf32>
    %124 = vector.broadcast %123 : vector<8x1xf32> to vector<8x32xf32>
    %125 = arith.subf %119, %124 : vector<8x32xf32>
    %126 = arith.mulf %125, %125 : vector<8x32xf32>
    %cst_38 = arith.constant dense<0.000000e+00> : vector<8xf32>
    %127 = vector.multi_reduction <add>, %126, %cst_38 [1] : vector<8x32xf32> to vector<8xf32>
    %128 = vector.shape_cast %127 : vector<8xf32> to vector<8x1xf32>
    %cst_39 = arith.constant 3.200000e+01 : f32
    %129 = vector.broadcast %cst_39 : f32 to vector<8x1xf32>
    %130 = arith.divf %128, %129 : vector<8x1xf32>
    %131 = vector.broadcast %123 : vector<8x1xf32> to vector<8x32xf32>
    %132 = arith.subf %119, %131 : vector<8x32xf32>
    %cst_40 = arith.constant 9.99999974E-6 : f32
    %133 = vector.broadcast %cst_40 : f32 to vector<8x1xf32>
    %134 = arith.addf %130, %133 : vector<8x1xf32>
    %135 = math.rsqrt %134 : vector<8x1xf32>
    %136 = vector.broadcast %135 : vector<8x1xf32> to vector<8x32xf32>
    %137 = arith.mulf %132, %136 : vector<8x32xf32>
    %c0_41 = arith.constant 0 : index
    %c0_42 = arith.constant 0 : index
    %138 = vector.load %arg9[%c0_41, %c0_42] : memref<1x32xf32, #tpu.memory_space<vmem>>, vector<1x32xf32>
    %139 = vector.shape_cast %138 : vector<1x32xf32> to vector<32xf32>
    %140 = vector.shape_cast %139 : vector<32xf32> to vector<1x32xf32>
    %141 = vector.broadcast %140 : vector<1x32xf32> to vector<8x32xf32>
    %142 = arith.mulf %137, %141 : vector<8x32xf32>
    %c0_43 = arith.constant 0 : index
    %c0_44 = arith.constant 0 : index
    %143 = vector.load %arg10[%c0_43, %c0_44] : memref<1x32xf32, #tpu.memory_space<vmem>>, vector<1x32xf32>
    %144 = vector.shape_cast %143 : vector<1x32xf32> to vector<32xf32>
    %145 = vector.shape_cast %144 : vector<32xf32> to vector<1x32xf32>
    %146 = vector.broadcast %145 : vector<1x32xf32> to vector<8x32xf32>
    %147 = arith.addf %142, %146 : vector<8x32xf32>
    %c0_45 = arith.constant 0 : index
    %c0_46 = arith.constant 0 : index
    %c0_47 = arith.constant 0 : index
    %148 = vector.load %arg11[%c0_45, %c0_46, %c0_47] : memref<1x8x32xf32, #tpu.memory_space<vmem>>, vector<1x8x32xf32>
    %149 = vector.shape_cast %148 : vector<1x8x32xf32> to vector<8x32xf32>
    %150 = vector.shape_cast %147 : vector<8x32xf32> to vector<1x8x32xf32>
    tpu.vector_store %arg11[%c0_45, %c0_46, %c0_47], %150 {strides = array<i32>} : memref<1x8x32xf32, #tpu.memory_space<vmem>>, vector<1x8x32xf32>,
    return
  }
  func.func @transform_0(%arg0: i32, %arg1: i32) -> (i32, i32, i32) {
    %c0_i32 = arith.constant 0 : i32
    %c0_i32_0 = arith.constant 0 : i32
    return %arg0, %arg1, %c0_i32 : i32, i32, i32
  }
  func.func @transform_1(%arg0: i32, %arg1: i32) -> (i32, i32, i32) {
    %c0_i32 = arith.constant 0 : i32
    %c0_i32_0 = arith.constant 0 : i32
    %c0_i32_1 = arith.constant 0 : i32
    return %arg0, %c0_i32, %c0_i32_0 : i32, i32, i32
  }
  func.func @transform_2(%arg0: i32, %arg1: i32) -> (i32, i32, i32) {
    %c0_i32 = arith.constant 0 : i32
    %c0_i32_0 = arith.constant 0 : i32
    %c0_i32_1 = arith.constant 0 : i32
    return %arg0, %c0_i32, %c0_i32_0 : i32, i32, i32
  }
  func.func @transform_3(%arg0: i32, %arg1: i32) -> (i32, i32) {
    %c0_i32 = arith.constant 0 : i32
    %c0_i32_0 = arith.constant 0 : i32
    %c0_i32_1 = arith.constant 0 : i32
    return %c0_i32, %c0_i32_0 : i32, i32
  }
  func.func @transform_4(%arg0: i32, %arg1: i32) -> (i32, i32) {
    %c0_i32 = arith.constant 0 : i32
    %c0_i32_0 = arith.constant 0 : i32
    %c0_i32_1 = arith.constant 0 : i32
    return %c0_i32, %c0_i32_0 : i32, i32
  }
  func.func @transform_5(%arg0: i32, %arg1: i32) -> (i32, i32) {
    %c0_i32 = arith.constant 0 : i32
    %c0_i32_0 = arith.constant 0 : i32
    %c0_i32_1 = arith.constant 0 : i32
    return %c0_i32, %c0_i32_0 : i32, i32
  }
  func.func @transform_6(%arg0: i32, %arg1: i32) -> (i32, i32) {
    %c0_i32 = arith.constant 0 : i32
    %c0_i32_0 = arith.constant 0 : i32
    %c0_i32_1 = arith.constant 0 : i32
    return %c0_i32, %c0_i32_0 : i32, i32
  }
  func.func @transform_7(%arg0: i32, %arg1: i32) -> (i32, i32) {
    %c0_i32 = arith.constant 0 : i32
    %c0_i32_0 = arith.constant 0 : i32
    %c0_i32_1 = arith.constant 0 : i32
    return %c0_i32, %c0_i32_0 : i32, i32
  }
  func.func @transform_8(%arg0: i32, %arg1: i32) -> (i32, i32) {
    %c0_i32 = arith.constant 0 : i32
    %c0_i32_0 = arith.constant 0 : i32
    %c0_i32_1 = arith.constant 0 : i32
    return %c0_i32, %c0_i32_0 : i32, i32
  }
  func.func @transform_9(%arg0: i32, %arg1: i32) -> (i32, i32, i32) {
    %c0_i32 = arith.constant 0 : i32
    %c0_i32_0 = arith.constant 0 : i32
    return %arg0, %arg1, %c0_i32 : i32, i32, i32
  }
}

</mosaic_0001>

<bundles_post_ra>
// kernel: tpu_custom_call.1
= control target key start
LH: loop header
LB: loop body
LE: loop exit
PB: predicated region body
PF: predicated region fallthrough
CT: control target
= control target key end

     0   :  { %s2359_s0 = inlined_call_operand.hbm [shape: f32[2,8,32], index: 0, kind: input, shape index: {}]   ;;  %s2360_s1 = inlined_call_operand.hbm [shape: f32[2,8,32], index: 1, kind: input, shape index: {}]   ;;  %s2361_s2 = inlined_call_operand.hbm [shape: f32[2,1,8], index: 2, kind: input, shape index: {}]   ;;  %s2362_s3 = inlined_call_operand.hbm [shape: bf16[32,32], index: 3, kind: input, shape index: {}]   ;;  %s2363_s4 = inlined_call_operand.vmem [shape: f32[1,32], index: 4, kind: input, shape index: {}]   ;;  %s2364_s5 = inlined_call_operand.hbm [shape: bf16[32,64], index: 5, kind: input, shape index: {}]   ;;  %s2365_s6 = inlined_call_operand.vmem [shape: f32[1,64], index: 6, kind: input, shape index: {}]   ;;  %s2366_s7 = inlined_call_operand.vmem [shape: f32[1,32], index: 7, kind: input, shape index: {}]   ;;  %s2367_s8 = inlined_call_operand.vmem [shape: f32[1,32], index: 8, kind: input, shape index: {}]   ;;  %s2368_s9 = inlined_call_operand.hbm [shape: f32[2,8,32], index: 9, kind: output, shape index: {}]  }
   0x1   :  { %2380 = sst [smem:[#allocation24_spill]] %s2360_s1 }
   0x2   :  { %2381 = sst [smem:[#allocation25_spill]] %s2362_s3 }
   0x3   :  { %2382 = sst [smem:[#allocation26_spill]] %s2364_s5 }
   0x4   :  { %2383 = sst [smem:[#allocation27_spill]] %s2366_s7 }
   0x5   :  { %2384 = sst [smem:[#allocation28_spill]] %s2367_s8 }
   0x6   :  { %2385 = sst [smem:[#allocation29_spill]] %s2368_s9 }
   0x7   :  { %14 = vsyncpa [#allocation3], 0 }
   0x8   :  { %16 = vsyncpa [#allocation3 + $0x1], 0 }
   0x9   :  { %17 = vsyncpa [#allocation6], 0 }
   0xa   :  { %19 = vsyncpa [#allocation6 + $0x1], 0 }
   0xb   :  { %20 = vsyncpa [#allocation9], 0 }
   0xc   :  { %21 = vsyncpa [#allocation4], 0 }
   0xd   :  { %23 = vsyncpa [#allocation4 + $0x1], 0  ;;  %s1952_s30 = smov 0   ;;  %s1954_s10 = smov 0  }
   0xe   :  { %s1956_s11 = smov 0   ;;  %s1958_s12 = smov 0  }
   0xf   :  { %s1960_s13 = smov 0   ;;  %s1962_s14 = smov 0  }
  0x10 LB: > { %2386 = sst [smem:[#allocation16_spill]] %s1865_s30  ;;  %s1983_s15 = sadd.s32 4294967295, %s1885_s14   ;;  %s1885_s14 = sphi %s1962_s14, %s29_s14   ;;  %s1881_s13 = sphi %s1960_s13, %s2421_s13   ;;  %s1877_s12 = sphi %s1958_s12, %s2420_s12   ;;  %s1873_s11 = sphi %s1956_s11, %s2416_s11   ;;  %s1869_s10 = sphi %s1954_s10, %s2419_s10   ;;  %s1865_s30 = sphi %s1952_s30, %s2418_s30  }
  0x11   : > { %2387 = sst [smem:[#allocation17_spill]] %s1873_s11  ;;  %p1457_p0 = scmp.ge.s32.totalorder %s1885_s14, 1 }
  0x12   : > { %2388 = sst [smem:[#allocation18_spill]] %s1877_s12  ;;  %p64_p1 = scmp.eq.s32.totalorder %s1983_s15, 0 }
  0x13   : > { %2389 = sst [smem:[#allocation19_spill]] %s1885_s14  ;;  %p280_p2 = scmp.lt.s32.totalorder %s1885_s14, 3 }
  0x14   : > { %s2390_s3 = sld [smem:[#allocation25_spill]]  ;;  %s1887_s20 = smov [#allocation8]  }
  0x15   : > { %p1991_p3 = pnand %p1457_p0, %p280_p2  ;;  %s293_s21 = sshll.u32 %s1887_s20, 4  ;;  %s294_s21 = int_to_ptr.vmem [resolvable:$true] %s293_s21 }
  0x16   : > { %s2369_s23 = smov 64   ;;  %s2370_s24 = smov 4  }
  0x17   : > { %p1521_p4 = pneg %p1991_p3  ;;  %s1456_s25 = sadd.s32 4294967294, %s1885_s14  }
  0x18   : > { %s41_s26 = sadd.s32 1, %s1881_s13  ;;  %s50_s27 = sadd.s32 1, %s1873_s11 }
  0x19   : > { %p1999_p5 = pnand %p1521_p4, %p64_p1  ;;  %p43_p7 = scmp.ge.s32.totalorder %s41_s26, 2 }
  0x1a   : > { %s291_s18 = sshll.u32 %s2390_s3, 4  ;;  %p57_p8 = scmp.ne.s32.totalorder %s1873_s11, %s1869_s10  ;;  %s292_s18 = int_to_ptr.hbm [resolvable:$true] %s291_s18 }
  0x1b   : > { %1524 = dma.hbm_to_vmem [thread:$0]  (!%p1999_p5), %s292_s18, 256, %s294_s21, [#allocation9], %s2369_s23, %s2369_s23, %s2370_s24  }
  0x1c   : > { %p58_p9 = scmp.eq.s32.totalorder %s1885_s14, 0  ;;  %p63_p10 = scmp.ne.s32.totalorder %s1869_s10, %s1865_s30 }
  0x1d   : > { %s2423_s26 = smov (%p43_p7, %s41_s26), 0  ;;  %p267_p13 = scmp.eq.s32.totalorder %s1983_s15, 1 }
  0x1e   : > { %2393 = sst [smem:[#allocation20_spill]] %s2423_s26  ;;  %p2019_p11 = por %p58_p9, %p57_p8 }
  0x1f   : > { %p2025_p12 = por %p64_p1, %p63_p10  ;;  %s45_s16 = ssub.s32 %s1881_s13, %s2423_s26 }
  0x20   : > { %p48_p0 = scmp.eq.s32.totalorder %s45_s16, 0  ;;  %p273_p2 = scmp.eq.s32.totalorder %s1456_s25, 1 }
  0x21   : > { %p2032_p4 = por %p267_p13, %p57_p8  ;;  %p1544_p7 = scmp.lt.s32.totalorder %s1885_s14, 2 }
  0x22   : > { %s2038_s18 = scalar_select %p48_p0, %s1873_s11, %s50_s27  }
  0x23   : > { %s2396_s17 = scalar_select %p2032_p4, 1, 0 }
  0x24   : > { %2398 = sst [smem:[#allocation22_spill]] %s2038_s18  ;;  %p2040_p9 = por %p273_p2, %p63_p10 }
  0x25   : > { %2397 = sst [smem:[#allocation21_spill]] %s2396_s17  ;;  %s2045_s21 = sand.u32 1, %s1873_s11  }
  0x26   : > { %s2399_s20 = scalar_select %p2040_p9, 1, 0 }
  0x27   : > { %s1461_s23 = sshll.u32 %s2045_s21, 3  ;;  %s1462_s24 = sshll.u32 %s1881_s13, 3 }
  0x28   : > { %2400 = sst [smem:[#allocation23_spill]] %s2399_s20  ;;  %p2051_p6 = pnand %p1544_p7, %p2019_p11 }
  0x29   : > { %s353_s16 = sand.u32 1, %s1885_s14   ;;  %s2402_s1 = sld [smem:[#allocation24_spill]] }
  0x2a   : > { %s357_s30 = scalar_lea.vmem [#allocation5], %s1461_s23  ;;  %s354_s11 = scalar_lea.sflag [#allocation6], %s353_s16 }
  0x2b   : > { %s365_s20 = sshll.u32 %s357_s30, 4  ;;  %s2403_s5 = sld [smem:[#allocation26_spill]]  ;;  %s366_s20 = int_to_ptr.vmem [resolvable:$true] %s365_s20 }
  0x2c   : > { %s1890_s14 = smov [#allocation10]   ;;  %s2405_s30 = smov 64  }
  0x2d   : > { %s310_s3 = sshll.u32 %s1890_s14, 4  ;;  %s334_s8 = scalar_lea.sflag [#allocation3], %s2045_s21  ;;  %s311_s3 = int_to_ptr.vmem [resolvable:$true] %s310_s3 }
  0x2e   : > { %s378_s22 = scalar_lea.hbm %s2361_s2, %s1881_s13  ;;  %s375_s7 = scalar_lea.vmem [#allocation7], %s2045_s21 }
  0x2f   : > { %s361_s26 = scalar_lea.hbm %s2402_s1, %s1462_s24  ;;  %s342_s1 = scalar_lea.hbm %s2359_s0, %s1462_s24 }
  0x30   : > { %s363_s18 = sshll.u32 %s361_s26, 4  ;;  %s2404_s26 = smov 4   ;;  %s364_s18 = int_to_ptr.hbm [resolvable:$true] %s363_s18 }
  0x31   : > { %1534 = dma.hbm_to_vmem [thread:$0]  (!%p2051_p6), %s364_s18, 128, %s366_s20, %s354_s11  }
  0x32   : > { %s308_s17 = sshll.u32 %s2403_s5, 4  ;;  %s344_s18 = sshll.u32 %s342_s1, 4  ;;  %s309_s17 = int_to_ptr.hbm [resolvable:$true] %s308_s17  ;;  %s345_s18 = int_to_ptr.hbm [resolvable:$true] %s344_s18 }
  0x33   : > { %1527 = dma.hbm_to_vmem [thread:$0]  (!%p1999_p5), %s309_s17, 256, %s311_s3, [#allocation9], %s2405_s30, %s2405_s30, %s2404_s26  }
  0x34   : > { %s337_s20 = scalar_lea.vmem [#allocation2], %s1461_s23  ;;  %s380_s5 = sshll.u32 %s378_s22, 4  ;;  %s381_s5 = int_to_ptr.hbm [resolvable:$true] %s380_s5 }
  0x35   : > { %s346_s9 = sshll.u32 %s337_s20, 4  ;;  %s382_s12 = sshll.u32 %s375_s7, 4  ;;  %s347_s9 = int_to_ptr.vmem [resolvable:$true] %s346_s9  ;;  %s383_s12 = int_to_ptr.vmem [resolvable:$true] %s382_s12 }
  0x36   : > { %1531 = dma.hbm_to_vmem [thread:$0]  (!%p2051_p6), %s345_s18, 128, %s347_s9, %s334_s8  }
  0x37   : > { %1537 = dma.hbm_to_vmem [thread:$0]  (!%p2051_p6), %s381_s5, 16, %s383_s12, %s354_s11  }
  0x38   : > { %391 = sbr.rel (%p1991_p3) target bundleno = 1178 (0x49a), region = 56  ;;  %s2085_s1 = sand.u32 (!%p1991_p3), 1, %s1869_s10  }
  0x39   : > { %s2088_s9 = sshll.u32 (!%p1991_p3), %s2085_s1, 3  ;;  %s394_s23 = scalar_lea.sflag (!%p1991_p3), [#allocation3], %s2085_s1 }
  0x3a   : > { %s397_s24 = scalar_lea.vmem (!%p1991_p3), [#allocation2], %s2088_s9 }
  0x3d   : > { %1848 = dma.done.wait (%p2025_p12), %s394_s23, 128  }
  0x3e   : > { %1850 = vsyncadd (%p2025_p12), %s394_s23, 4294967168  ;;  %s403_s5 = sand.u32 1, %s1983_s15   ;;  %s407_s11 = scalar_lea.vmem [#allocation5], %s2088_s9 }
  0x3f   : > { %s404_s7 = scalar_lea.sflag [#allocation6], %s403_s5 }
  0x40   : > { %1852 = dma.done.wait (%p2025_p12), %s404_s7, 144  }
  0x41   : > { %1854 = vsyncadd (%p2025_p12), %s404_s7, 4294967152  ;;  %s416_s12 = scalar_lea.vmem [#allocation7], %s2085_s1 }
  0x42   : > { %1856 = dma.done.wait (%p64_p1), [#allocation9], 512  }
  0x43   : > { %1858 = vsyncadd (%p64_p1), [#allocation9], 4294966784  ;;  %v1502_v0 = vld [vmem:[#allocation8 + $0x8] sm:$0xff]  ;;  %v1504_v1 = vld [vmem:[#allocation10 + $0x8] sm:$0xff]  ;;  %vm496_vm0 = vcmask 261120   ;;  %s1891_s21 = smov 104  }
  0x44   : > { %v1501_v2 = vld [vmem:[#allocation8] sm:$0xff]  ;;  %v1503_v3 = vld [vmem:[#allocation10] sm:$0xff]  ;;  %506 = vmatpush.bf16.msra.mxu0 %v1502_v0  ;;  %543 = vmatpush.bf16.msra.mxu1 %v1504_v1  ;;  %v1621_v8 = vld [vmem:[%s2363_s4] ss:$0 sm:$0xff]  ;;  %s1892_s25 = smov 120   ;;  %s1893_s3 = smov 112  }
  0x45   : > { %v2107_v4 = vld [vmem:[%s397_s24] sm:$0xff]  ;;  %v473_v5 = vld [vmem:[%s407_s11] sm:$0xff]  ;;  %v1894_v17 = vmov 1983009808   ;;  %vm563_vm1 = vcmask 1047556   ;;  %s1895_s26 = smov 96  }
  0x46   : > { %v475_v6 = vpack.c.bf16 %v2107_v4, %v2107_v4  ;;  %v518_v7 = vpack.c.bf16 %v473_v5, %v473_v5  ;;  %v1622_v9 = vld [vmem:[%s2365_s6] ss:$0 sm:$0xff]  ;;  %v568_v18 = vunpack.c.l.s4 %v1894_v17  ;;  %v1896_v32 = vmov 1934713408   ;;  %s1898_s30 = smov 24   ;;  %s1899_s27 = smov 16  }
  0x47   : > { %v592_v33 = vunpack.c.l.s4 %v1896_v32  ;;  %vm926_vm2 = vcmask 64512   ;;  %vm1050_vm3 = vcmask 1043456   ;;  %s1900_s16 = smov 8   ;;  %vm1255_vm5 = vcmask 130048   ;;  %s2406_s18 = sld [smem:[#allocation18_spill]] }
  0x48   : > { %507 = vmatpush.bf16.msra.mxu0 %v1501_v2  ;;  %544 = vmatpush.bf16.msra.mxu1 %v1503_v3  ;;  %v2119_v26 = vunpack.c.0.s8 %v568_v18  ;;  %vm1257_vm6 = vcmask 195584   ;;  %s2407_s28 = sld [smem:[#allocation27_spill]]  ;;  %s470_s19 = scalar_lea.vmem [#allocation11], %s2088_s9 }
  0x49   : > { %v2129_v40 = vunpack.c.0.s8 %v592_v33  ;;  %s2408_s24 = sld [smem:[#allocation29_spill]]  ;;  %s1314_s29 = sshll.u32 %s470_s19, 4  ;;  %s1315_s29 = int_to_ptr.vmem [resolvable:$true] %s1314_s29 }
  0x4a   : > { %s2410_s15 = sld [smem:[#allocation28_spill]] }
  0x4b   : > { %1479 = vmatmul.msk.bf16.vlgmr.msra.gmra.mxu0 %vm496_vm0, %v475_v6  ;;  %1488 = vmatmul.msk.bf16.vlgmr.msra.gmra.mxu1 %vm496_vm0, %v518_v7 }
  0x4d   : > { %s1498_s20 = sshll.u32 %s2406_s18, 3 }
  0x4f   : > { %s1312_s5 = scalar_lea.hbm %s2408_s24, %s1498_s20  ;;  %s1815_s9 = scalar_lea.hbm %s2408_s24, 16 }
  0x50   : > { %s1316_s17 = sshll.u32 %s1312_s5, 4  ;;  %s1317_s17 = int_to_ptr.hbm [resolvable:$true] %s1316_s17 }
  0xc8   : > { %v509_v10 = vpop.f32.mrf.mxu0  ;;  %v546_v11 = vpop.f32.mrf.mxu1 }
  0xc9   : > { %v510_v12 = vadd.f32 %v1621_v8, %v509_v10  ;;  %v547_v13 = vadd.f32 %v1622_v9, %v546_v11 }
  0xcb   : > { %680 = vrot.lane.b32.xlu1 %v547_v13, %s1891_s21  ;;  %674 = vrot.lane.b32.xlu0 %v547_v13, %s1892_s25  ;;  %v565_v25 = vrot.slane %v510_v12, 4  ;;  %v685_v35 = vrot.slane %v547_v13, 4 }
  0xcc   : > { %556 = vrot.lane.b32.xlu2 %v510_v12, %s1893_s3 }
  0xd0   : > { %v548_v14 = vpop.f32.mrf.mxu1  ;;  %v511_v15 = vpop.f32.mrf.mxu0 }
  0xd3   : > { %677 = vrot.lane.b32.xlu0 %v547_v13, %s1893_s3  ;;  %553 = vrot.lane.b32.xlu1 %v510_v12, %s1892_s25  ;;  %s1809_s25 = sshra.s32 %s1317_s17, 4  ;;  %s1810_s25 = int_to_ptr.hbm [resolvable:$true] %s1809_s25 }
  0xd4   : > { %559 = vrot.lane.b32.xlu2 %v510_v12, %s1891_s21  ;;  %s1301_s21 = scalar_lea.sflag [#allocation4], %s2085_s1  ;;  %s1811_s3 = scalar_lea.hbm %s1810_s25, 8 }
  0xd5   : > { %p1812_p1 = scmp.ne.s32.totalorder %s1810_s25, %s1811_s3  ;;  %p1816_p6 = scmp.lt.s32.totalorder %s1810_s25, %s2408_s24 }
  0xd6   : > { %p1817_p8 = scmp.lt.s32.totalorder %s1815_s9, %s1811_s3 }
  0xd7   : > { %p1813_p3 = pnand %p1812_p1, %p2032_p4 }
  0xd8   : > { %p1818_p10 = por %p1817_p8, %p1816_p6 }
  0xd9   : > { %p1814_p5 = pneg %p1813_p3 }
  0xdb   : > { %p1819_p11 = pnand %p1818_p10, %p1814_p5 }
 0x126   : > { %v557_v16 = vpop.permute.xlu2 %556 }
 0x127   : > { %v562_v19 = vrot.slane %v557_v16, 4  ;;  %v566_v29 = vsel %vm563_vm1, %v557_v16, %v565_v25 }
 0x128   : > { %v574_v37 = vperm.slane %v566_v29, %v2119_v26 }
 0x129   : > { %v564_v28 = vsel %vm563_vm1, %v562_v19, %v510_v12 }
 0x12a   : > { %v570_v36 = vperm.slane %v564_v28, %v2119_v26  ;;  %v601_v52 = vrot.slane %v574_v37, 4 }
 0x12c   : > { %v589_v51 = vrot.slane %v570_v36, 4 }
 0x12e   : > { %v560_v30 = vpop.permute.xlu2 %559 }
 0x12f   : > { %v575_v38 = vrot.slane %v560_v30, 4 }
 0x13d   : > { %v681_v20 = vpop.permute.xlu1 %680  ;;  %v675_v21 = vpop.permute.xlu0 %674 }
 0x13e   : > { %v695_v22 = vrot.slane %v681_v20, 4  ;;  %v697_v23 = vrot.slane %v675_v21, 4  ;;  %v1611_v24 = vpack.i.bf16 %v675_v21, %v547_v13 }
 0x140   : > { %v698_v27 = vsel %vm563_vm1, %v681_v20, %v697_v23  ;;  %1612 = vrot.lane.b32.xlu0 %v1611_v24, %s1895_s26  ;;  %v696_v31 = vsel %vm563_vm1, %v695_v22, %v675_v21 }
 0x141   : > { %v706_v34 = vperm.slane %v698_v27, %v2119_v26  ;;  %v702_v39 = vperm.slane %v696_v31, %v2119_v26 }
 0x143   : > { %v719_v47 = vrot.slane %v706_v34, 4  ;;  %v707_v53 = vrot.slane %v702_v39, 4 }
 0x145   : > { %v678_v41 = vpop.permute.xlu0 %677  ;;  %v554_v42 = vpop.permute.xlu1 %553 }
 0x146   : > { %v683_v43 = vrot.slane %v678_v41, 4  ;;  %v1616_v44 = vpack.i.bf16 %v681_v20, %v678_v41  ;;  %v686_v45 = vsel %vm563_vm1, %v678_v41, %v685_v35  ;;  %v576_v46 = vsel %vm563_vm1, %v575_v38, %v554_v42 }
 0x147   : > { %v694_v48 = vperm.slane %v686_v45, %v2119_v26  ;;  %v577_v49 = vrot.slane %v554_v42, 4  ;;  %v582_v50 = vperm.slane %v576_v46, %v2119_v26 }
 0x148   : > { %v684_v54 = vsel %vm563_vm1, %v683_v43, %v547_v13  ;;  %1617 = vrot.lane.b32.xlu1 %v1616_v44, %s1895_s26 }
 0x149   : > { %v690_v55 = vperm.slane %v684_v54, %v2119_v26  ;;  %v720_v56 = vsel %vm563_vm1, %v719_v47, %v694_v48  ;;  %v721_v57 = vrot.slane %v694_v48, 4  ;;  %v578_v58 = vsel %vm563_vm1, %v560_v30, %v577_v49 }
 0x14a   : > { %v726_v59 = vperm.slane %v720_v56, %v2129_v40  ;;  %v586_v60 = vperm.slane %v578_v58, %v2119_v26  ;;  %v587_v61 = vrot.slane %v582_v50, 4  ;;  %v590_v62 = vsel %vm563_vm1, %v582_v50, %v589_v51 }
 0x14b   : > { %v708_v63 = vsel %vm563_vm1, %v707_v53, %v690_v55  ;;  %v709_v0 = vrot.slane %v690_v55, 4  ;;  %v722_v1 = vsel %vm563_vm1, %v706_v34, %v721_v57  ;;  %v598_v2 = vperm.slane %v590_v62, %v2129_v40 }
 0x14c   : > { %v714_v3 = vperm.slane %v708_v63, %v2129_v40  ;;  %v730_v5 = vperm.slane %v722_v1, %v2129_v40  ;;  %v588_v6 = vsel %vm563_vm1, %v587_v61, %v570_v36  ;;  %v599_v9 = vrot.slane %v586_v60, 4 }
 0x14d   : > { %v710_v7 = vsel %vm563_vm1, %v702_v39, %v709_v0  ;;  %v594_v8 = vperm.slane %v588_v6, %v2129_v40  ;;  %v602_v10 = vsel %vm563_vm1, %v586_v60, %v601_v52  ;;  %v735_v13 = vrot.slane %v726_v59, 4 }
 0x14e   : > { %v718_v11 = vperm.slane %v710_v7, %v2129_v40  ;;  %v731_v12 = vrot.slane %v714_v3, 4  ;;  %v737_v14 = vrot.slane %v730_v5, 4  ;;  %v600_v15 = vsel %vm563_vm1, %v599_v9, %v574_v37 }
 0x14f   : > { %v610_v16 = vperm.slane %v602_v10, %v2129_v40  ;;  %v611_v17 = vrot.slane %v594_v8, 4  ;;  %v613_v18 = vrot.slane %v598_v2, 4  ;;  %v606_v22 = vperm.slane %v600_v15, %v2129_v40 }
 0x150   : > { %v733_v19 = vrot.slane %v718_v11, 4  ;;  %v738_v20 = vsel %vm563_vm1, 0.0, %v737_v14  ;;  %v750_v21 = vsel %vm563_vm1, %v737_v14, %v726_v59  ;;  %v736_v32 = vsel %vm563_vm1, 0.0, %v735_v13 }
 0x151   : > { %v754_v23 = vperm.slane %v750_v21, %v2119_v26  ;;  %v755_v24 = vrot.slane %v738_v20, 4  ;;  %v612_v25 = vsel %vm563_vm1, 0.0, %v611_v17  ;;  %v614_v27 = vsel %vm563_vm1, 0.0, %v613_v18 }
 0x152   : > { %v615_v28 = vrot.slane %v606_v22, 4  ;;  %v617_v29 = vrot.slane %v610_v16, 4  ;;  %v619_v30 = vsel %vm563_vm1, %v613_v18, %v594_v8  ;;  %v624_v31 = vrot.slane %v614_v27, 4 }
 0x153   : > { %v623_v33 = vperm.slane %v619_v30, %v2119_v26  ;;  %v734_v34 = vsel %vm563_vm1, 0.0, %v733_v19  ;;  %v739_v35 = vsel %vm563_vm1, %v733_v19, %v714_v3  ;;  %v756_v47 = vsel %vm563_vm1, %v755_v24, %v736_v32 }
 0x154   : > { %v616_v36 = vsel %vm563_vm1, 0.0, %v615_v28  ;;  %v618_v37 = vsel %vm563_vm1, 0.0, %v617_v29  ;;  %v625_v38 = vsel %vm563_vm1, %v624_v31, %v612_v25  ;;  %v630_v39 = vsel %vm563_vm1, %v617_v29, %v606_v22 }
 0x155   : > { %v629_v41 = vperm.slane %v625_v38, %v2119_v26  ;;  %v634_v42 = vperm.slane %v630_v39, %v2119_v26  ;;  %v635_v43 = vrot.slane %v618_v37, 4  ;;  %v643_v44 = vrot.slane %v623_v33, 4 }
 0x156   : > { %v743_v45 = vperm.slane %v739_v35, %v2119_v26  ;;  %v744_v46 = vrot.slane %v734_v34, 4  ;;  %v775_v48 = vrot.slane %v754_v23, 4  ;;  %v732_v50 = vsel %vm563_vm1, 0.0, %v731_v12 }
 0x157   : > { %v636_v49 = vsel %vm563_vm1, %v635_v43, %v616_v36  ;;  %v760_v51 = vperm.slane %v756_v47, %v2119_v26  ;;  %v655_v52 = vrot.slane %v634_v42, 4  ;;  %v641_v59 = vrot.slane %v629_v41, 4 }
 0x158   : > { %v745_v53 = vsel %vm563_vm1, %v744_v46, %v732_v50  ;;  %v763_v54 = vrot.slane %v743_v45, 4  ;;  %v640_v55 = vperm.slane %v636_v49, %v2119_v26  ;;  %v644_v61 = vsel %vm563_vm1, %v629_v41, %v643_v44 }
 0x159   : > { %v749_v56 = vperm.slane %v745_v53, %v2119_v26  ;;  %v776_v57 = vsel %vm563_vm1, %v760_v51, %v775_v48  ;;  %v773_v58 = vrot.slane %v760_v51, 4  ;;  %v652_v9 = vperm.slane %v644_v61, %v2129_v40 }
 0x15a   : > { %v784_v60 = vperm.slane %v776_v57, %v2129_v40  ;;  %v656_v62 = vsel %vm563_vm1, %v640_v55, %v655_v52  ;;  %v653_v63 = vrot.slane %v640_v55, 4  ;;  %v642_v10 = vsel %vm563_vm1, %v641_v59, %v623_v33 }
 0x15b   : > { %v764_v0 = vsel %vm563_vm1, %v749_v56, %v763_v54  ;;  %v761_v1 = vrot.slane %v749_v56, 4  ;;  %v774_v2 = vsel %vm563_vm1, %v773_v58, %v754_v23  ;;  %v664_v3 = vperm.slane %v656_v62, %v2129_v40 }
 0x15c   : > { %v772_v5 = vperm.slane %v764_v0, %v2129_v40  ;;  %v789_v6 = vrot.slane %v784_v60, 4  ;;  %v780_v7 = vperm.slane %v774_v2, %v2129_v40  ;;  %v654_v11 = vsel %vm563_vm1, %v653_v63, %v634_v42 }
 0x15d   : > { %v762_v8 = vsel %vm563_vm1, %v761_v1, %v743_v45  ;;  %v669_v17 = vrot.slane %v664_v3, 4  ;;  %v660_v18 = vperm.slane %v654_v11, %v2129_v40  ;;  %v648_v22 = vperm.slane %v642_v10, %v2129_v40 }
 0x15e   : > { %v790_v12 = vsel %vm563_vm1, %v789_v6, %v772_v5  ;;  %v768_v13 = vperm.slane %v762_v8, %v2129_v40  ;;  %v785_v14 = vrot.slane %v780_v7, 4  ;;  %v791_v15 = vrot.slane %v772_v5, 4 }
 0x15f   : > { %v921_v16 = vpack.c.bf16 %v790_v12, %v790_v12  ;;  %v665_v28 = vrot.slane %v660_v18, 4  ;;  %v671_v29 = vrot.slane %v652_v9, 4  ;;  %v670_v33 = vsel %vm563_vm1, %v669_v17, %v652_v9 }
 0x160   : > { %v786_v19 = vsel %vm563_vm1, %v785_v14, %v768_v13  ;;  %v792_v20 = vsel %vm563_vm1, %v784_v60, %v791_v15  ;;  %v787_v21 = vrot.slane %v768_v13, 4  ;;  %v667_v34 = vrot.slane %v648_v22, 4 }
 0x161   : > { %v969_v23 = vsel %vm926_vm2, %v921_v16, 0  ;;  %v919_v24 = vpack.c.bf16 %v786_v19, %v786_v19  ;;  %v922_v25 = vpack.c.bf16 %v792_v20, %v792_v20  ;;  %v666_v36 = vsel %vm563_vm1, %v665_v28, %v648_v22 }
 0x162   : > { %978 = vmatpush.bf16.xpose.msrb.mxu0 %v969_v23  ;;  %v788_v27 = vsel %vm563_vm1, %v780_v7, %v787_v21  ;;  %v672_v37 = vsel %vm563_vm1, %v664_v3, %v671_v29  ;;  %v917_v38 = vpack.c.bf16 %v670_v33, %v670_v33  ;;  %v668_v39 = vsel %vm563_vm1, %v660_v18, %v667_v34 }
 0x163   : > { %v931_v30 = vsel %vm926_vm2, %v919_v24, 0  ;;  %v988_v31 = vsel %vm926_vm2, %v922_v25, 0  ;;  %v920_v32 = vpack.c.bf16 %v788_v27, %v788_v27  ;;  %v915_v41 = vpack.c.bf16 %v666_v36, %v666_v36 }
 0x164   : > { %940 = vmatpush.bf16.xpose.msra.mxu2 %v931_v30  ;;  %997 = vmatpush.bf16.xpose.msrb.mxu1 %v988_v31  ;;  %v918_v42 = vpack.c.bf16 %v672_v37, %v672_v37  ;;  %v916_v43 = vpack.c.bf16 %v668_v39, %v668_v39 }
 0x165   : > { %v950_v35 = vsel %vm926_vm2, %v920_v32, 0 }
 0x166   : > { %959 = vmatpush.bf16.xpose.msra.mxu3 %v950_v35 }
 0x169   : > { %1491 = vmatmul.msk.bf16.vlgmr.msrb.gmra.mxu0 %vm926_vm2, %v917_v38 }
 0x16b   : > { %1489 = vmatmul.msk.bf16.vlgmr.msra.gmra.mxu2 %vm926_vm2, %v915_v41  ;;  %1492 = vmatmul.msk.bf16.vlgmr.msrb.gmra.mxu1 %vm926_vm2, %v918_v42 }
 0x16d   : > { %1490 = vmatmul.msk.bf16.vlgmr.msra.gmra.mxu3 %vm926_vm2, %v916_v43 }
 0x1b2   : > { %v1613_v44 = vpop.permute.xlu0 %1612 }
 0x1b3   : > { %v1615_v45 = vunpack.i.h.bf16 %v1613_v44  ;;  %v1614_v46 = vunpack.i.l.bf16 %v1613_v44 }
 0x1b5   : > { %v819_v48 = vrot.slane %v1615_v45, 4  ;;  %v807_v49 = vrot.slane %v1614_v46, 4 }
 0x1ba   : > { %v1618_v47 = vpop.permute.xlu1 %1617 }
 0x1bb   : > { %v1620_v50 = vunpack.i.h.bf16 %v1618_v47  ;;  %v1619_v51 = vunpack.i.l.bf16 %v1618_v47 }
 0x1bd   : > { %v817_v52 = vrot.slane %v1620_v50, 4  ;;  %v820_v53 = vsel %vm563_vm1, %v1620_v50, %v819_v48  ;;  %v805_v54 = vrot.slane %v1619_v51, 4  ;;  %v808_v55 = vsel %vm563_vm1, %v1619_v51, %v807_v49 }
 0x1be   : > { %v828_v56 = vperm.slane %v820_v53, %v2119_v26  ;;  %v816_v57 = vperm.slane %v808_v55, %v2119_v26 }
 0x1bf   : > { %v818_v58 = vsel %vm563_vm1, %v817_v52, %v1615_v45  ;;  %v806_v59 = vsel %vm563_vm1, %v805_v54, %v1614_v46 }
 0x1c0   : > { %v824_v60 = vperm.slane %v818_v58, %v2119_v26  ;;  %v841_v61 = vrot.slane %v828_v56, 4  ;;  %v812_v62 = vperm.slane %v806_v59, %v2119_v26  ;;  %v843_v63 = vrot.slane %v816_v57, 4  ;;  %v474_v59 = vld [vmem:[%s416_s12] sm:$0x1] }
 0x1c1   : > { %vm550_vm4 = vcmp.gt.f32.partialorder %v474_v59, 0.0 }
 0x1c2   : > { %v829_v0 = vrot.slane %v824_v60, 4  ;;  %v831_v1 = vrot.slane %v812_v62, 4  ;;  %v842_v2 = vsel %vm563_vm1, %v841_v61, %v816_v57  ;;  %v844_v3 = vsel %vm563_vm1, %v828_v56, %v843_v63 }
 0x1c3   : > { %v848_v5 = vperm.slane %v842_v2, %v2129_v40  ;;  %v852_v6 = vperm.slane %v844_v3, %v2129_v40 }
 0x1c4   : > { %v830_v7 = vsel %vm563_vm1, %v829_v0, %v812_v62  ;;  %v832_v8 = vsel %vm563_vm1, %v824_v60, %v831_v1  ;;  %v1897_v60 = vmov 0.0  }
 0x1c5   : > { %v836_v9 = vperm.slane %v830_v7, %v2129_v40  ;;  %v840_v10 = vperm.slane %v832_v8, %v2129_v40  ;;  %v857_v11 = vrot.slane %v848_v5, 4  ;;  %v859_v12 = vrot.slane %v852_v6, 4 }
 0x1c6   : > { %v551_v61 = vsel %vm550_vm4, -inf, %v1897_v60 }
 0x1c7   : > { %v853_v13 = vrot.slane %v836_v9, 4  ;;  %v855_v14 = vrot.slane %v840_v10, 4  ;;  %v860_v15 = vsel %vm563_vm1, 0.0, %v859_v12  ;;  %v872_v16 = vsel %vm563_vm1, %v859_v12, %v848_v5 }
 0x1c8   : > { %v877_v17 = vrot.slane %v860_v15, 4  ;;  %v858_v19 = vsel %vm563_vm1, 0.0, %v857_v11  ;;  %v876_v20 = vperm.slane %v872_v16, %v2119_v26  ;;  %v924_v62 = vperm.slane %v551_v61, 0 }
 0x1c9   : > { %v856_v18 = vsel %vm563_vm1, 0.0, %v855_v14  ;;  %v861_v21 = vsel %vm563_vm1, %v855_v14, %v836_v9  ;;  %v854_v25 = vsel %vm563_vm1, 0.0, %v853_v13 }
 0x1ca   : > { %v866_v22 = vrot.slane %v856_v18, 4  ;;  %v865_v23 = vperm.slane %v861_v21, %v2119_v26  ;;  %v878_v24 = vsel %vm563_vm1, %v877_v17, %v858_v19  ;;  %v897_v28 = vrot.slane %v876_v20, 4 }
 0x1cb   : > { %v882_v27 = vperm.slane %v878_v24, %v2119_v26 }
 0x1cc   : > { %v867_v29 = vsel %vm563_vm1, %v866_v22, %v854_v25  ;;  %v885_v30 = vrot.slane %v865_v23, 4 }
 0x1cd   : > { %v871_v31 = vperm.slane %v867_v29, %v2119_v26  ;;  %v898_v32 = vsel %vm563_vm1, %v882_v27, %v897_v28  ;;  %v895_v33 = vrot.slane %v882_v27, 4 }
 0x1ce   : > { %v906_v34 = vperm.slane %v898_v32, %v2129_v40 }
 0x1cf   : > { %v886_v35 = vsel %vm563_vm1, %v871_v31, %v885_v30  ;;  %v883_v36 = vrot.slane %v871_v31, 4  ;;  %v896_v37 = vsel %vm563_vm1, %v895_v33, %v876_v20 }
 0x1d0   : > { %v894_v38 = vperm.slane %v886_v35, %v2129_v40  ;;  %v911_v39 = vrot.slane %v906_v34, 4  ;;  %v902_v41 = vperm.slane %v896_v37, %v2129_v40 }
 0x1d1   : > { %v884_v42 = vsel %vm563_vm1, %v883_v36, %v865_v23 }
 0x1d2   : > { %v912_v43 = vsel %vm563_vm1, %v911_v39, %v894_v38  ;;  %v890_v44 = vperm.slane %v884_v42, %v2129_v40  ;;  %v907_v45 = vrot.slane %v902_v41, 4  ;;  %v913_v46 = vrot.slane %v894_v38, 4 }
 0x1d3   : > { %v1045_v47 = vpack.c.bf16 %v912_v43, %v912_v43 }
 0x1d4   : > { %v908_v48 = vsel %vm563_vm1, %v907_v45, %v890_v44  ;;  %v914_v49 = vsel %vm563_vm1, %v906_v34, %v913_v46  ;;  %v909_v50 = vrot.slane %v890_v44, 4 }
 0x1d5   : > { %v1090_v51 = vsel %vm1050_vm3, %v1045_v47, 0  ;;  %v1043_v52 = vpack.c.bf16 %v908_v48, %v908_v48  ;;  %v1046_v53 = vpack.c.bf16 %v914_v49, %v914_v49 }
 0x1d6   : > { %1099 = vmatpush.bf16.msra.mxu0 %v1090_v51  ;;  %v910_v54 = vsel %vm563_vm1, %v902_v41, %v909_v50 }
 0x1d7   : > { %v1052_v55 = vsel %vm1050_vm3, %v1043_v52, 0  ;;  %v1109_v56 = vsel %vm1050_vm3, %v1046_v53, 0  ;;  %v1044_v57 = vpack.c.bf16 %v910_v54, %v910_v54 }
 0x1d8   : > { %1061 = vmatpush.bf16.msrb.mxu2 %v1052_v55  ;;  %1118 = vmatpush.bf16.msra.mxu1 %v1109_v56 }
 0x1d9   : > { %v1071_v58 = vsel %vm1050_vm3, %v1044_v57, 0 }
 0x1da   : > { %1080 = vmatpush.bf16.msrb.mxu3 %v1071_v58 }
 0x1e6   : > { %v980_v63 = vpop.f32.mrf.mxu0 }
 0x1e7   : > { %v981_v0 = vadd.f32 %v980_v63, %v924_v62 }
 0x1e8   : > { %v999_v1 = vpop.f32.mrf.mxu1 }
 0x1e9   : > { %v1009_v2 = vsel %vm926_vm2, %v981_v0, -inf  ;;  %v1000_v12 = vadd.f32 %v999_v1, %v924_v62 }
 0x1ea   : > { %1010 = vmax.xlane.f32.xlu1 %v1009_v2 }
 0x1eb   : > { %v1012_v15 = vsel %vm926_vm2, %v1000_v12, -inf }
 0x1ee   : > { %v942_v3 = vpop.f32.mrf.mxu2  ;;  %v982_v5 = vpop.f32.mrf.mxu0 }
 0x1ef   : > { %v943_v6 = vadd.f32 %v942_v3, %v924_v62 }
 0x1f0   : > { %v961_v7 = vpop.f32.mrf.mxu3  ;;  %v1001_v8 = vpop.f32.mrf.mxu1 }
 0x1f1   : > { %v962_v9 = vadd.f32 %v961_v7, %v924_v62  ;;  %v1003_v10 = vsel %vm926_vm2, %v943_v6, -inf }
 0x1f2   : > { %1004 = vmax.xlane.f32.xlu2 %v1003_v10 }
 0x1f3   : > { %v1006_v11 = vsel %vm926_vm2, %v962_v9, -inf }
 0x1f4   : > { %1007 = vmax.xlane.f32.xlu0 %v1006_v11 }
 0x1f6   : > { %v944_v13 = vpop.f32.mrf.mxu2 }
 0x1f8   : > { %v963_v14 = vpop.f32.mrf.mxu3 }
 0x1fa   : > { %1013 = vmax.xlane.f32.xlu2 %v1012_v15 }
 0x25d   : > { %v1011_v16 = vpop.xlane.xlu1 %1010 }
 0x25e   : > { %v1017_v17 = vsub.f32 %v981_v0, %v1011_v16 }
 0x260   : > { %v1023_v18 = vmul.f32 1.442695, %v1017_v17 }
 0x262   : > { %1625 = vpow2.f32 %v1023_v18 }
 0x265   : > { %v1005_v19 = vpop.xlane.xlu2 %1004 }
 0x266   : > { %v1015_v20 = vsub.f32 %v943_v6, %v1005_v19 }
 0x267   : > { %v1008_v21 = vpop.xlane.xlu0 %1007 }
 0x268   : > { %v1626_v22 = vpop.eup %1625  ;;  %v1019_v23 = vmul.f32 1.442695, %v1015_v20  ;;  %v1016_v24 = vsub.f32 %v962_v9, %v1008_v21 }
 0x269   : > { %v1041_v25 = vpack.c.bf16 %v1626_v22, %v1626_v22  ;;  %v1033_v27 = vsel %vm926_vm2, %v1626_v22, 0.0 }
 0x26a   : > { %1627 = vpow2.f32 %v1019_v23  ;;  %v1021_v28 = vmul.f32 1.442695, %v1016_v24  ;;  %1034 = vadd.xlane.f32.xlu2 %v1033_v27 }
 0x26b   : > { %1495 = vmatmul.msk.bf16.vlgmr.msra.gmra.mxu0 %vm926_vm2, %v1041_v25 }
 0x26c   : > { %1629 = vpow2.f32 %v1021_v28 }
 0x26d   : > { %v1014_v29 = vpop.xlane.xlu2 %1013 }
 0x26e   : > { %v1018_v30 = vsub.f32 %v1000_v12, %v1014_v29 }
 0x270   : > { %v1628_v31 = vpop.eup %1627  ;;  %v1025_v32 = vmul.f32 1.442695, %v1018_v30 }
 0x271   : > { %v1027_v33 = vsel %vm926_vm2, %v1628_v31, 0.0  ;;  %v1039_v34 = vpack.c.bf16 %v1628_v31, %v1628_v31 }
 0x272   : > { %v1630_v35 = vpop.eup %1629  ;;  %1631 = vpow2.f32 %v1025_v32  ;;  %1028 = vadd.xlane.f32.xlu0 %v1027_v33 }
 0x273   : > { %1493 = vmatmul.msk.bf16.vlgmr.msrb.gmra.mxu2 %vm926_vm2, %v1039_v34  ;;  %v1030_v36 = vsel %vm926_vm2, %v1630_v35, 0.0  ;;  %v1040_v37 = vpack.c.bf16 %v1630_v35, %v1630_v35 }
 0x274   : > { %1031 = vadd.xlane.f32.xlu2 %v1030_v36 }
 0x275   : > { %1494 = vmatmul.msk.bf16.vlgmr.msrb.gmra.mxu3 %vm926_vm2, %v1040_v37 }
 0x278   : > { %v1632_v38 = vpop.eup %1631 }
 0x279   : > { %v1042_v39 = vpack.c.bf16 %v1632_v38, %v1632_v38  ;;  %v1036_v41 = vsel %vm926_vm2, %v1632_v38, 0.0 }
 0x27a   : > { %1037 = vadd.xlane.f32.xlu1 %v1036_v41 }
 0x27b   : > { %1496 = vmatmul.msk.bf16.vlgmr.msra.gmra.mxu1 %vm926_vm2, %v1042_v39 }
 0x2dd   : > { %v1035_v42 = vpop.xlane.xlu2 %1034 }
 0x2de   : > { %1633 = vrcp.f32 %v1035_v42 }
 0x2e4   : > { %v1634_v48 = vpop.eup %1633 }
 0x2e5   : > { %v1029_v44 = vpop.xlane.xlu0 %1028 }
 0x2e6   : > { %1635 = vrcp.f32 %v1029_v44 }
 0x2e7   : > { %v1032_v45 = vpop.xlane.xlu2 %1031 }
 0x2e8   : > { %v1101_v43 = vpop.f32.mrf.mxu0  ;;  %1637 = vrcp.f32 %v1032_v45 }
 0x2e9   : > { %v1130_v49 = vmul.f32 %v1634_v48, %v1101_v43 }
 0x2eb   : > { %v1132_v53 = vrot.slane %v1130_v49, 4 }
 0x2ec   : > { %v1636_v50 = vpop.eup %1635 }
 0x2ed   : > { %v1038_v46 = vpop.xlane.xlu1 %1037 }
 0x2ee   : > { %1639 = vrcp.f32 %v1038_v46  ;;  %v1638_v52 = vpop.eup %1637 }
 0x2f0   : > { %v1103_v47 = vpop.f32.mrf.mxu0 }
 0x2f4   : > { %v1640_v55 = vpop.eup %1639 }
 0x2f6   : > { %v1063_v51 = vpop.f32.mrf.mxu2 }
 0x2f7   : > { %v1128_v54 = vmul.f32 %v1636_v50, %v1063_v51 }
 0x2f8   : > { %v1082_v56 = vpop.f32.mrf.mxu3  ;;  %v1120_v57 = vpop.f32.mrf.mxu1 }
 0x2f9   : > { %v1133_v58 = vsel %vm563_vm1, %v1132_v53, %v1128_v54  ;;  %v1134_v59 = vrot.slane %v1128_v54, 4  ;;  %v1129_v60 = vmul.f32 %v1638_v52, %v1082_v56  ;;  %v1131_v61 = vmul.f32 %v1640_v55, %v1120_v57 }
 0x2fa   : > { %v1139_v62 = vperm.slane %v1133_v58, %v2119_v26 }
 0x2fb   : > { %v1135_v63 = vsel %vm563_vm1, %v1130_v49, %v1134_v59  ;;  %v1146_v0 = vrot.slane %v1129_v60, 4  ;;  %v1144_v1 = vrot.slane %v1131_v61, 4 }
 0x2fc   : > { %v1143_v2 = vperm.slane %v1135_v63, %v2119_v26  ;;  %v1158_v6 = vrot.slane %v1139_v62, 4 }
 0x2fd   : > { %v1145_v3 = vsel %vm563_vm1, %v1144_v1, %v1129_v60  ;;  %v1147_v5 = vsel %vm563_vm1, %v1131_v61, %v1146_v0 }
 0x2fe   : > { %v1170_v7 = vrot.slane %v1143_v2, 4  ;;  %v1151_v8 = vperm.slane %v1145_v3, %v2119_v26  ;;  %v1155_v9 = vperm.slane %v1147_v5, %v2119_v26  ;;  %v1065_v10 = vpop.f32.mrf.mxu2 }
 0x300   : > { %v1156_v11 = vrot.slane %v1151_v8, 4  ;;  %v1159_v12 = vsel %vm563_vm1, %v1151_v8, %v1158_v6  ;;  %v1168_v13 = vrot.slane %v1155_v9, 4  ;;  %v1171_v14 = vsel %vm563_vm1, %v1155_v9, %v1170_v7  ;;  %v1084_v15 = vpop.f32.mrf.mxu3  ;;  %v1122_v16 = vpop.f32.mrf.mxu1 }
 0x301   : > { %v1167_v17 = vperm.slane %v1159_v12, %v2129_v40  ;;  %v1179_v18 = vperm.slane %v1171_v14, %v2129_v40  ;;  %v1901_v6 = vmov 32.0  }
 0x302   : > { %v1157_v19 = vsel %vm563_vm1, %v1156_v11, %v1139_v62  ;;  %v1169_v20 = vsel %vm563_vm1, %v1168_v13, %v1143_v2  ;;  %1641 = vrcp.f32 %v1901_v6 }
 0x303   : > { %v1163_v21 = vperm.slane %v1157_v19, %v2129_v40  ;;  %v1175_v22 = vperm.slane %v1169_v20, %v2129_v40  ;;  %v1182_v23 = vrot.slane %v1167_v17, 4  ;;  %v1186_v24 = vrot.slane %v1179_v18, 4 }
 0x305   : > { %v1180_v25 = vrot.slane %v1163_v21, 4  ;;  %v1183_v27 = vsel %vm563_vm1, 0.0, %v1182_v23  ;;  %v1184_v28 = vrot.slane %v1175_v22, 4  ;;  %v1187_v29 = vsel %vm563_vm1, 0.0, %v1186_v24 }
 0x306   : > { %v1193_v30 = vrot.slane %v1183_v27, 4  ;;  %v1204_v31 = vrot.slane %v1187_v29, 4  ;;  %v1188_v32 = vsel %vm563_vm1, %v1182_v23, %v1163_v21  ;;  %v1199_v33 = vsel %vm563_vm1, %v1186_v24, %v1175_v22  ;;  %v1623_v27 = vld [vmem:[%s2407_s28] ss:$0 sm:$0xff] }
 0x307   : > { %v1181_v34 = vsel %vm563_vm1, 0.0, %v1180_v25  ;;  %v1185_v35 = vsel %vm563_vm1, 0.0, %v1184_v28  ;;  %v1192_v36 = vperm.slane %v1188_v32, %v2119_v26  ;;  %v1203_v37 = vperm.slane %v1199_v33, %v2119_v26 }
 0x308   : > { %v1194_v38 = vsel %vm563_vm1, %v1193_v30, %v1181_v34  ;;  %v1205_v39 = vsel %vm563_vm1, %v1204_v31, %v1185_v35  ;;  %v1642_v7 = vpop.eup %1641  ;;  %v1624_v30 = vld [vmem:[%s2410_s15] ss:$0 sm:$0xff] }
 0x309   : > { %v1198_v41 = vperm.slane %v1194_v38, %v2119_v26  ;;  %v1209_v42 = vperm.slane %v1205_v39, %v2119_v26  ;;  %v1212_v43 = vrot.slane %v1192_v36, 4  ;;  %v1224_v44 = vrot.slane %v1203_v37, 4 }
 0x30a   : > { %v1264_v8 = vmul.f32 32.0, %v1642_v7  ;;  %vm1268_vm7 = vweird.f32 %v1642_v7 }
 0x30b   : > { %v1213_v45 = vsel %vm563_vm1, %v1198_v41, %v1212_v43  ;;  %v1225_v46 = vsel %vm563_vm1, %v1209_v42, %v1224_v44  ;;  %v1210_v47 = vrot.slane %v1198_v41, 4  ;;  %v1222_v48 = vrot.slane %v1209_v42, 4 }
 0x30c   : > { %v1221_v49 = vperm.slane %v1213_v45, %v2129_v40  ;;  %v1233_v50 = vperm.slane %v1225_v46, %v2129_v40  ;;  %v1265_v9 = vsub.f32 1.0, %v1264_v8 }
 0x30d   : > { %v1211_v51 = vsel %vm563_vm1, %v1210_v47, %v1192_v36  ;;  %v1223_v52 = vsel %vm563_vm1, %v1222_v48, %v1203_v37 }
 0x30e   : > { %v1240_v53 = vrot.slane %v1221_v49, 4  ;;  %v1238_v54 = vrot.slane %v1233_v50, 4  ;;  %v1217_v26 = vperm.slane %v1211_v51, %v2129_v40  ;;  %v1229_v55 = vperm.slane %v1223_v52, %v2129_v40 }
 0x30f   : > { %v1266_v10 = vmul.f32 %v1642_v7, %v1265_v9 }
 0x310   : > { %v1241_v56 = vsel %vm563_vm1, %v1233_v50, %v1240_v53  ;;  %v1239_v57 = vsel %vm563_vm1, %v1238_v54, %v1221_v49  ;;  %v1234_v58 = vrot.slane %v1229_v55, 4  ;;  %v1236_v59 = vrot.slane %v1217_v26, 4 }
 0x311   : > { %1251 = vrot.lane.b32.xlu2 %v1241_v56, %s1898_s30  ;;  %1247 = vrot.lane.b32.xlu1 %v1239_v57, %s1899_s27  ;;  %v1267_v11 = vadd.f32 %v1642_v7, %v1266_v10 }
 0x312   : > { %v1237_v60 = vsel %vm563_vm1, %v1229_v55, %v1236_v59  ;;  %v1235_v61 = vsel %vm563_vm1, %v1234_v58, %v1217_v26 }
 0x313   : > { %1243 = vrot.lane.b32.xlu0 %v1237_v60, %s1900_s16  ;;  %v1269_v12 = vsel %vm1268_vm7, %v1642_v7, %v1267_v11 }
 0x36b   : > { %v1252_v0 = vpop.permute.xlu2 %1251 }
 0x383   : > { %v1248_v40 = vpop.permute.xlu1 %1247 }
 0x385   : > { %v1244_v62 = vpop.permute.xlu0 %1243 }
 0x386   : > { %v1254_v63 = vsel %vm926_vm2, %v1235_v61, %v1244_v62 }
 0x387   : > { %v1256_v1 = vsel %vm1255_vm5, %v1254_v63, %v1248_v40 }
 0x388   : > { %v1258_v2 = vsel %vm1257_vm6, %v1256_v1, %v1252_v0 }
 0x389   : > { %v1259_v3 = vadd.f32 %v1258_v2, %v2107_v4 }
 0x38b   : > { %v1260_v5 = vsel %vm496_vm0, %v1259_v3, 0.0 }
 0x38c   : > { %1261 = vadd.xlane.f32.xlu0 %v1260_v5 }
 0x3ff   : > { %v1262_v13 = vpop.xlane.xlu0 %1261 }
 0x400   : > { %v1270_v14 = vmul.f32 %v1269_v12, %v1262_v13 }
 0x402   : > { %v1271_v15 = vsub.f32 %v1259_v3, %v1270_v14 }
 0x404   : > { %v1272_v16 = vmul.f32 %v1271_v15, %v1271_v15 }
 0x406   : > { %v1273_v17 = vsel %vm496_vm0, %v1272_v16, 0.0 }
 0x407   : > { %1274 = vadd.xlane.f32.xlu1 %v1273_v17 }
 0x47a   : > { %v1275_v4 = vpop.xlane.xlu1 %1274 }
 0x47b   : > { %v1276_v18 = vmul.f32 %v1275_v4, %v1269_v12 }
 0x47d   : > { %v1277_v19 = vadd.f32 1e-05, %v1276_v18 }
 0x47f   : > { %1643 = vrsqrt.f32 %v1277_v19  ;;  %vm1284_vm9 = vweird.f32 %v1277_v19 }
 0x485   : > { %v1644_v20 = vpop.eup %1643 }
 0x486   : > { %v1279_v21 = vmul.f32 %v1644_v20, %v1277_v19  ;;  %vm1285_vm8 = vweird.f32 %v1644_v20 }
 0x487   : > { %vm1286_vm10 = vmor %vm1284_vm9, %vm1285_vm8 }
 0x488   : > { %v1280_v22 = vmul.f32 %v1644_v20, %v1279_v21 }
 0x48a   : > { %v1281_v23 = vmul.f32 0.5, %v1280_v22 }
 0x48c   : > { %v1282_v24 = vsub.f32 1.5, %v1281_v23 }
 0x48e   : > { %v1283_v25 = vmul.f32 %v1644_v20, %v1282_v24 }
 0x490   : > { %v1287_v28 = vsel %vm1286_vm10, %v1644_v20, %v1283_v25 }
 0x491   : > { %v1288_v29 = vmul.f32 %v1287_v28, %v1271_v15 }
 0x493   : > { %v1293_v31 = vmul.f32 %v1623_v27, %v1288_v29 }
 0x495   : > { %v1298_v32 = vadd.f32 %v1624_v30, %v1293_v31 }
 0x497   : > { %1299 = vst.msk [vmem:[%s470_s19] sm:$0xff] %vm496_vm0, %v1298_v32 }
 0x498   : > { %1822 = shalt.err (!%p1819_p11)
}
 0x499   : > { %1519 = dma.vmem_to_hbm [thread:$0]  (%p2032_p4), %s1315_s29, 128, %s1317_s17, %s1301_s21  }
 0x49a PF: > { %s2411_s1 = sld [smem:[#allocation16_spill]] }
 0x49b   : > { %s2413_s20 = sld [smem:[#allocation19_spill]] }
 0x4a0   : > { %s1328_s8 = sand.u32 1, %s2411_s1  }
 0x4a1   : > { %p2414_p12 = scmp.ge.s32.totalorder %s2413_s20, 2  ;;  %s1329_s14 = scalar_lea.sflag [#allocation4], %s1328_s8 }
 0x4a3   : > { %p1539_p13 = pnand %p2414_p12, %p2040_p9 }
 0x4a5   : > { %p1540_p0 = pneg %p1539_p13 }
 0x4a7   : > { %1860 = dma.done.wait (%p1540_p0), %s1329_s14, 128  }
 0x4a8   : > { %1862 = vsyncadd (%p1540_p0), %s1329_s14, 4294967168  ;;  %s29_s14 = sadd.s32 1, %s2413_s20   ;;  %s2415_s28 = sld [smem:[#allocation17_spill]] }
 0x4a9   : > { %p26_p2 = scmp.ge.s32.totalorder %s29_s14, 4   ;;  %s2416_s11 = sld [smem:[#allocation22_spill]] }
 0x4aa   : > { %s2417_s22 = sld [smem:[#allocation20_spill]]  ;;  %s2418_s30 = smov %s1869_s10 }
 0x4ab   : > { %s2420_s12 = smov %s1881_s13 }
 0x4ac   :  { %28 = sbr.rel (!%p26_p2) target bundleno = 16 (0x10), region = 133 }
 0x4ae   : > { %s2419_s10 = smov %s2415_s28 }
 0x4b0   : > { %s2421_s13 = smov %s2417_s22 }
 0x4b1   :  { %1335 = vsyncpa [#allocation3], 1 }
 0x4b2   :  { %1337 = vsyncpa [#allocation3 + $0x1], 1 }
 0x4b3   :  { %1338 = vsyncpa [#allocation6], 1 }
 0x4b4   :  { %1340 = vsyncpa [#allocation6 + $0x1], 1 }
 0x4b5   :  { %1341 = vsyncpa [#allocation9], 1 }
 0x4b6   :  { %1342 = vsyncpa [#allocation4], 1 }
 0x4b7   :  { %1344 = vsyncpa [#allocation4 + $0x1], 1 }

// kernel: tpu_custom_call.1
= control target key start
LH: loop header
LB: loop body
LE: loop exit
PB: predicated region body
PF: predicated region fallthrough
CT: control target
= control target key end

     0   :  { %s2359_s0 = inlined_call_operand.hbm [shape: f32[2,8,32], index: 0, kind: input, shape index: {}]   ;;  %s2360_s1 = inlined_call_operand.hbm [shape: f32[2,8,32], index: 1, kind: input, shape index: {}]   ;;  %s2361_s2 = inlined_call_operand.hbm [shape: f32[2,1,8], index: 2, kind: input, shape index: {}]   ;;  %s2362_s3 = inlined_call_operand.hbm [shape: bf16[32,32], index: 3, kind: input, shape index: {}]   ;;  %s2363_s4 = inlined_call_operand.vmem [shape: f32[1,32], index: 4, kind: input, shape index: {}]   ;;  %s2364_s5 = inlined_call_operand.hbm [shape: bf16[32,64], index: 5, kind: input, shape index: {}]   ;;  %s2365_s6 = inlined_call_operand.vmem [shape: f32[1,64], index: 6, kind: input, shape index: {}]   ;;  %s2366_s7 = inlined_call_operand.vmem [shape: f32[1,32], index: 7, kind: input, shape index: {}]   ;;  %s2367_s8 = inlined_call_operand.vmem [shape: f32[1,32], index: 8, kind: input, shape index: {}]   ;;  %s2368_s9 = inlined_call_operand.hbm [shape: f32[2,8,32], index: 9, kind: output, shape index: {}]  }
   0x1   :  { %2380 = sst [smem:[#allocation24_spill]] %s2360_s1 }
   0x2   :  { %2381 = sst [smem:[#allocation25_spill]] %s2362_s3 }
   0x3   :  { %2382 = sst [smem:[#allocation26_spill]] %s2364_s5 }
   0x4   :  { %2383 = sst [smem:[#allocation27_spill]] %s2366_s7 }
   0x5   :  { %2384 = sst [smem:[#allocation28_spill]] %s2367_s8 }
   0x6   :  { %2385 = sst [smem:[#allocation29_spill]] %s2368_s9 }
   0x7   :  { %14 = vsyncpa [#allocation3], 0 }
   0x8   :  { %16 = vsyncpa [#allocation3 + $0x1], 0 }
   0x9   :  { %17 = vsyncpa [#allocation6], 0 }
   0xa   :  { %19 = vsyncpa [#allocation6 + $0x1], 0 }
   0xb   :  { %20 = vsyncpa [#allocation9], 0 }
   0xc   :  { %21 = vsyncpa [#allocation4], 0 }
   0xd   :  { %23 = vsyncpa [#allocation4 + $0x1], 0  ;;  %s1952_s30 = smov 0   ;;  %s1954_s10 = smov 0  }
   0xe   :  { %s1956_s11 = smov 0   ;;  %s1958_s12 = smov 0  }
   0xf   :  { %s1960_s13 = smov 0   ;;  %s1962_s14 = smov 0  }
  0x10 LB: > { %2386 = sst [smem:[#allocation16_spill]] %s1865_s30  ;;  %s1983_s15 = sadd.s32 4294967295, %s1885_s14   ;;  %s1885_s14 = sphi %s1962_s14, %s29_s14   ;;  %s1881_s13 = sphi %s1960_s13, %s2421_s13   ;;  %s1877_s12 = sphi %s1958_s12, %s2420_s12   ;;  %s1873_s11 = sphi %s1956_s11, %s2416_s11   ;;  %s1869_s10 = sphi %s1954_s10, %s2419_s10   ;;  %s1865_s30 = sphi %s1952_s30, %s2418_s30  }
  0x11   : > { %2387 = sst [smem:[#allocation17_spill]] %s1873_s11  ;;  %p1457_p0 = scmp.ge.s32.totalorder %s1885_s14, 1 }
  0x12   : > { %2388 = sst [smem:[#allocation18_spill]] %s1877_s12  ;;  %p64_p1 = scmp.eq.s32.totalorder %s1983_s15, 0 }
  0x13   : > { %2389 = sst [smem:[#allocation19_spill]] %s1885_s14  ;;  %p280_p2 = scmp.lt.s32.totalorder %s1885_s14, 3 }
  0x14   : > { %s2390_s3 = sld [smem:[#allocation25_spill]]  ;;  %s1887_s20 = smov [#allocation8]  }
  0x15   : > { %p1991_p3 = pnand %p1457_p0, %p280_p2  ;;  %s293_s21 = sshll.u32 %s1887_s20, 4  ;;  %s294_s21 = int_to_ptr.vmem [resolvable:$true] %s293_s21 }
  0x16   : > { %s2369_s23 = smov 64   ;;  %s2370_s24 = smov 4  }
  0x17   : > { %p1521_p4 = pneg %p1991_p3  ;;  %s1456_s25 = sadd.s32 4294967294, %s1885_s14  }
  0x18   : > { %s41_s26 = sadd.s32 1, %s1881_s13  ;;  %s50_s27 = sadd.s32 1, %s1873_s11 }
  0x19   : > { %p1999_p5 = pnand %p1521_p4, %p64_p1  ;;  %p43_p7 = scmp.ge.s32.totalorder %s41_s26, 2 }
  0x1a   : > { %s291_s18 = sshll.u32 %s2390_s3, 4  ;;  %p57_p8 = scmp.ne.s32.totalorder %s1873_s11, %s1869_s10  ;;  %s292_s18 = int_to_ptr.hbm [resolvable:$true] %s291_s18 }
  0x1b   : > { %1524 = dma.hbm_to_vmem [thread:$0]  (!%p1999_p5), %s292_s18, 256, %s294_s21, [#allocation9], %s2369_s23, %s2369_s23, %s2370_s24  }
  0x1c   : > { %p58_p9 = scmp.eq.s32.totalorder %s1885_s14, 0  ;;  %p63_p10 = scmp.ne.s32.totalorder %s1869_s10, %s1865_s30 }
  0x1d   : > { %s2423_s26 = smov (%p43_p7, %s41_s26), 0  ;;  %p267_p13 = scmp.eq.s32.totalorder %s1983_s15, 1 }
  0x1e   : > { %2393 = sst [smem:[#allocation20_spill]] %s2423_s26  ;;  %p2019_p11 = por %p58_p9, %p57_p8 }
  0x1f   : > { %p2025_p12 = por %p64_p1, %p63_p10  ;;  %s45_s16 = ssub.s32 %s1881_s13, %s2423_s26 }
  0x20   : > { %p48_p0 = scmp.eq.s32.totalorder %s45_s16, 0  ;;  %p273_p2 = scmp.eq.s32.totalorder %s1456_s25, 1 }
  0x21   : > { %p2032_p4 = por %p267_p13, %p57_p8  ;;  %p1544_p7 = scmp.lt.s32.totalorder %s1885_s14, 2 }
  0x22   : > { %s2038_s18 = scalar_select %p48_p0, %s1873_s11, %s50_s27  }
  0x23   : > { %s2396_s17 = scalar_select %p2032_p4, 1, 0 }
  0x24   : > { %2398 = sst [smem:[#allocation22_spill]] %s2038_s18  ;;  %p2040_p9 = por %p273_p2, %p63_p10 }
  0x25   : > { %2397 = sst [smem:[#allocation21_spill]] %s2396_s17  ;;  %s2045_s21 = sand.u32 1, %s1873_s11  }
  0x26   : > { %s2399_s20 = scalar_select %p2040_p9, 1, 0 }
  0x27   : > { %s1461_s23 = sshll.u32 %s2045_s21, 3  ;;  %s1462_s24 = sshll.u32 %s1881_s13, 3 }
  0x28   : > { %2400 = sst [smem:[#allocation23_spill]] %s2399_s20  ;;  %p2051_p6 = pnand %p1544_p7, %p2019_p11 }
  0x29   : > { %s353_s16 = sand.u32 1, %s1885_s14   ;;  %s2402_s1 = sld [smem:[#allocation24_spill]] }
  0x2a   : > { %s357_s30 = scalar_lea.vmem [#allocation5], %s1461_s23  ;;  %s354_s11 = scalar_lea.sflag [#allocation6], %s353_s16 }
  0x2b   : > { %s365_s20 = sshll.u32 %s357_s30, 4  ;;  %s2403_s5 = sld [smem:[#allocation26_spill]]  ;;  %s366_s20 = int_to_ptr.vmem [resolvable:$true] %s365_s20 }
  0x2c   : > { %s1890_s14 = smov [#allocation10]   ;;  %s2405_s30 = smov 64  }
  0x2d   : > { %s310_s3 = sshll.u32 %s1890_s14, 4  ;;  %s334_s8 = scalar_lea.sflag [#allocation3], %s2045_s21  ;;  %s311_s3 = int_to_ptr.vmem [resolvable:$true] %s310_s3 }
  0x2e   : > { %s378_s22 = scalar_lea.hbm %s2361_s2, %s1881_s13  ;;  %s375_s7 = scalar_lea.vmem [#allocation7], %s2045_s21 }
  0x2f   : > { %s361_s26 = scalar_lea.hbm %s2402_s1, %s1462_s24  ;;  %s342_s1 = scalar_lea.hbm %s2359_s0, %s1462_s24 }
  0x30   : > { %s363_s18 = sshll.u32 %s361_s26, 4  ;;  %s2404_s26 = smov 4   ;;  %s364_s18 = int_to_ptr.hbm [resolvable:$true] %s363_s18 }
  0x31   : > { %1534 = dma.hbm_to_vmem [thread:$0]  (!%p2051_p6), %s364_s18, 128, %s366_s20, %s354_s11  }
  0x32   : > { %s308_s17 = sshll.u32 %s2403_s5, 4  ;;  %s344_s18 = sshll.u32 %s342_s1, 4  ;;  %s309_s17 = int_to_ptr.hbm [resolvable:$true] %s308_s17  ;;  %s345_s18 = int_to_ptr.hbm [resolvable:$true] %s344_s18 }
  0x33   : > { %1527 = dma.hbm_to_vmem [thread:$0]  (!%p1999_p5), %s309_s17, 256, %s311_s3, [#allocation9], %s2405_s30, %s2405_s30, %s2404_s26  }
  0x34   : > { %s337_s20 = scalar_lea.vmem [#allocation2], %s1461_s23  ;;  %s380_s5 = sshll.u32 %s378_s22, 4  ;;  %s381_s5 = int_to_ptr.hbm [resolvable:$true] %s380_s5 }
  0x35   : > { %s346_s9 = sshll.u32 %s337_s20, 4  ;;  %s382_s12 = sshll.u32 %s375_s7, 4  ;;  %s347_s9 = int_to_ptr.vmem [resolvable:$true] %s346_s9  ;;  %s383_s12 = int_to_ptr.vmem [resolvable:$true] %s382_s12 }
  0x36   : > { %1531 = dma.hbm_to_vmem [thread:$0]  (!%p2051_p6), %s345_s18, 128, %s347_s9, %s334_s8  }
  0x37   : > { %1537 = dma.hbm_to_vmem [thread:$0]  (!%p2051_p6), %s381_s5, 16, %s383_s12, %s354_s11  }
  0x38   : > { %391 = sbr.rel (%p1991_p3) target bundleno = 1178 (0x49a), region = 56  ;;  %s2085_s1 = sand.u32 (!%p1991_p3), 1, %s1869_s10  }
  0x39   : > { %s2088_s9 = sshll.u32 (!%p1991_p3), %s2085_s1, 3  ;;  %s394_s23 = scalar_lea.sflag (!%p1991_p3), [#allocation3], %s2085_s1 }
  0x3a   : > { %s397_s24 = scalar_lea.vmem (!%p1991_p3), [#allocation2], %s2088_s9 }
  0x3d   : > { %1848 = dma.done.wait (%p2025_p12), %s394_s23, 128  }
  0x3e   : > { %1850 = vsyncadd (%p2025_p12), %s394_s23, 4294967168  ;;  %s403_s5 = sand.u32 1, %s1983_s15   ;;  %s407_s11 = scalar_lea.vmem [#allocation5], %s2088_s9 }
  0x3f   : > { %s404_s7 = scalar_lea.sflag [#allocation6], %s403_s5 }
  0x40   : > { %1852 = dma.done.wait (%p2025_p12), %s404_s7, 144  }
  0x41   : > { %1854 = vsyncadd (%p2025_p12), %s404_s7, 4294967152  ;;  %s416_s12 = scalar_lea.vmem [#allocation7], %s2085_s1 }
  0x42   : > { %1856 = dma.done.wait (%p64_p1), [#allocation9], 512  }
  0x43   : > { %1858 = vsyncadd (%p64_p1), [#allocation9], 4294966784  ;;  %v1502_v0 = vld [vmem:[#allocation8 + $0x8] sm:$0xff]  ;;  %v1504_v1 = vld [vmem:[#allocation10 + $0x8] sm:$0xff]  ;;  %vm496_vm0 = vcmask 261120   ;;  %s1891_s21 = smov 104  }
  0x44   : > { %v1501_v2 = vld [vmem:[#allocation8] sm:$0xff]  ;;  %v1503_v3 = vld [vmem:[#allocation10] sm:$0xff]  ;;  %506 = vmatpush.bf16.msra.mxu0 %v1502_v0  ;;  %543 = vmatpush.bf16.msra.mxu1 %v1504_v1  ;;  %v1621_v8 = vld [vmem:[%s2363_s4] ss:$0 sm:$0xff]  ;;  %s1892_s25 = smov 120   ;;  %s1893_s3 = smov 112  }
  0x45   : > { %v2107_v4 = vld [vmem:[%s397_s24] sm:$0xff]  ;;  %v473_v5 = vld [vmem:[%s407_s11] sm:$0xff]  ;;  %v1894_v17 = vmov 1983009808   ;;  %vm563_vm1 = vcmask 1047556   ;;  %s1895_s26 = smov 96  }
  0x46   : > { %v475_v6 = vpack.c.bf16 %v2107_v4, %v2107_v4  ;;  %v518_v7 = vpack.c.bf16 %v473_v5, %v473_v5  ;;  %v1622_v9 = vld [vmem:[%s2365_s6] ss:$0 sm:$0xff]  ;;  %v568_v18 = vunpack.c.l.s4 %v1894_v17  ;;  %v1896_v32 = vmov 1934713408   ;;  %s1898_s30 = smov 24   ;;  %s1899_s27 = smov 16  }
  0x47   : > { %v592_v33 = vunpack.c.l.s4 %v1896_v32  ;;  %vm926_vm2 = vcmask 64512   ;;  %vm1050_vm3 = vcmask 1043456   ;;  %s1900_s16 = smov 8   ;;  %vm1255_vm5 = vcmask 130048   ;;  %s2406_s18 = sld [smem:[#allocation18_spill]] }
  0x48   : > { %507 = vmatpush.bf16.msra.mxu0 %v1501_v2  ;;  %544 = vmatpush.bf16.msra.mxu1 %v1503_v3  ;;  %v2119_v26 = vunpack.c.0.s8 %v568_v18  ;;  %vm1257_vm6 = vcmask 195584   ;;  %s2407_s28 = sld [smem:[#allocation27_spill]]  ;;  %s470_s19 = scalar_lea.vmem [#allocation11], %s2088_s9 }
  0x49   : > { %v2129_v40 = vunpack.c.0.s8 %v592_v33  ;;  %s2408_s24 = sld [smem:[#allocation29_spill]]  ;;  %s1314_s29 = sshll.u32 %s470_s19, 4  ;;  %s1315_s29 = int_to_ptr.vmem [resolvable:$true] %s1314_s29 }
  0x4a   : > { %s2410_s15 = sld [smem:[#allocation28_spill]] }
  0x4b   : > { %1479 = vmatmul.msk.bf16.vlgmr.msra.gmra.mxu0 %vm496_vm0, %v475_v6  ;;  %1488 = vmatmul.msk.bf16.vlgmr.msra.gmra.mxu1 %vm496_vm0, %v518_v7 }
  0x4d   : > { %s1498_s20 = sshll.u32 %s2406_s18, 3 }
  0x4f   : > { %s1312_s5 = scalar_lea.hbm %s2408_s24, %s1498_s20  ;;  %s1815_s9 = scalar_lea.hbm %s2408_s24, 16 }
  0x50   : > { %s1316_s17 = sshll.u32 %s1312_s5, 4  ;;  %s1317_s17 = int_to_ptr.hbm [resolvable:$true] %s1316_s17 }
  0xc8   : > { %v509_v10 = vpop.f32.mrf.mxu0  ;;  %v546_v11 = vpop.f32.mrf.mxu1 }
  0xc9   : > { %v510_v12 = vadd.f32 %v1621_v8, %v509_v10  ;;  %v547_v13 = vadd.f32 %v1622_v9, %v546_v11 }
  0xcb   : > { %680 = vrot.lane.b32.xlu1 %v547_v13, %s1891_s21  ;;  %674 = vrot.lane.b32.xlu0 %v547_v13, %s1892_s25  ;;  %v565_v25 = vrot.slane %v510_v12, 4  ;;  %v685_v35 = vrot.slane %v547_v13, 4 }
  0xcc   : > { %556 = vrot.lane.b32.xlu2 %v510_v12, %s1893_s3 }
  0xd0   : > { %v548_v14 = vpop.f32.mrf.mxu1  ;;  %v511_v15 = vpop.f32.mrf.mxu0 }
  0xd3   : > { %677 = vrot.lane.b32.xlu0 %v547_v13, %s1893_s3  ;;  %553 = vrot.lane.b32.xlu1 %v510_v12, %s1892_s25  ;;  %s1809_s25 = sshra.s32 %s1317_s17, 4  ;;  %s1810_s25 = int_to_ptr.hbm [resolvable:$true] %s1809_s25 }
  0xd4   : > { %559 = vrot.lane.b32.xlu2 %v510_v12, %s1891_s21  ;;  %s1301_s21 = scalar_lea.sflag [#allocation4], %s2085_s1  ;;  %s1811_s3 = scalar_lea.hbm %s1810_s25, 8 }
  0xd5   : > { %p1812_p1 = scmp.ne.s32.totalorder %s1810_s25, %s1811_s3  ;;  %p1816_p6 = scmp.lt.s32.totalorder %s1810_s25, %s2408_s24 }
  0xd6   : > { %p1817_p8 = scmp.lt.s32.totalorder %s1815_s9, %s1811_s3 }
  0xd7   : > { %p1813_p3 = pnand %p1812_p1, %p2032_p4 }
  0xd8   : > { %p1818_p10 = por %p1817_p8, %p1816_p6 }
  0xd9   : > { %p1814_p5 = pneg %p1813_p3 }
  0xdb   : > { %p1819_p11 = pnand %p1818_p10, %p1814_p5 }
 0x126   : > { %v557_v16 = vpop.permute.xlu2 %556 }
 0x127   : > { %v562_v19 = vrot.slane %v557_v16, 4  ;;  %v566_v29 = vsel %vm563_vm1, %v557_v16, %v565_v25 }
 0x128   : > { %v574_v37 = vperm.slane %v566_v29, %v2119_v26 }
 0x129   : > { %v564_v28 = vsel %vm563_vm1, %v562_v19, %v510_v12 }
 0x12a   : > { %v570_v36 = vperm.slane %v564_v28, %v2119_v26  ;;  %v601_v52 = vrot.slane %v574_v37, 4 }
 0x12c   : > { %v589_v51 = vrot.slane %v570_v36, 4 }
 0x12e   : > { %v560_v30 = vpop.permute.xlu2 %559 }
 0x12f   : > { %v575_v38 = vrot.slane %v560_v30, 4 }
 0x13d   : > { %v681_v20 = vpop.permute.xlu1 %680  ;;  %v675_v21 = vpop.permute.xlu0 %674 }
 0x13e   : > { %v695_v22 = vrot.slane %v681_v20, 4  ;;  %v697_v23 = vrot.slane %v675_v21, 4  ;;  %v1611_v24 = vpack.i.bf16 %v675_v21, %v547_v13 }
 0x140   : > { %v698_v27 = vsel %vm563_vm1, %v681_v20, %v697_v23  ;;  %1612 = vrot.lane.b32.xlu0 %v1611_v24, %s1895_s26  ;;  %v696_v31 = vsel %vm563_vm1, %v695_v22, %v675_v21 }
 0x141   : > { %v706_v34 = vperm.slane %v698_v27, %v2119_v26  ;;  %v702_v39 = vperm.slane %v696_v31, %v2119_v26 }
 0x143   : > { %v719_v47 = vrot.slane %v706_v34, 4  ;;  %v707_v53 = vrot.slane %v702_v39, 4 }
 0x145   : > { %v678_v41 = vpop.permute.xlu0 %677  ;;  %v554_v42 = vpop.permute.xlu1 %553 }
 0x146   : > { %v683_v43 = vrot.slane %v678_v41, 4  ;;  %v1616_v44 = vpack.i.bf16 %v681_v20, %v678_v41  ;;  %v686_v45 = vsel %vm563_vm1, %v678_v41, %v685_v35  ;;  %v576_v46 = vsel %vm563_vm1, %v575_v38, %v554_v42 }
 0x147   : > { %v694_v48 = vperm.slane %v686_v45, %v2119_v26  ;;  %v577_v49 = vrot.slane %v554_v42, 4  ;;  %v582_v50 = vperm.slane %v576_v46, %v2119_v26 }
 0x148   : > { %v684_v54 = vsel %vm563_vm1, %v683_v43, %v547_v13  ;;  %1617 = vrot.lane.b32.xlu1 %v1616_v44, %s1895_s26 }
 0x149   : > { %v690_v55 = vperm.slane %v684_v54, %v2119_v26  ;;  %v720_v56 = vsel %vm563_vm1, %v719_v47, %v694_v48  ;;  %v721_v57 = vrot.slane %v694_v48, 4  ;;  %v578_v58 = vsel %vm563_vm1, %v560_v30, %v577_v49 }
 0x14a   : > { %v726_v59 = vperm.slane %v720_v56, %v2129_v40  ;;  %v586_v60 = vperm.slane %v578_v58, %v2119_v26  ;;  %v587_v61 = vrot.slane %v582_v50, 4  ;;  %v590_v62 = vsel %vm563_vm1, %v582_v50, %v589_v51 }
 0x14b   : > { %v708_v63 = vsel %vm563_vm1, %v707_v53, %v690_v55  ;;  %v709_v0 = vrot.slane %v690_v55, 4  ;;  %v722_v1 = vsel %vm563_vm1, %v706_v34, %v721_v57  ;;  %v598_v2 = vperm.slane %v590_v62, %v2129_v40 }
 0x14c   : > { %v714_v3 = vperm.slane %v708_v63, %v2129_v40  ;;  %v730_v5 = vperm.slane %v722_v1, %v2129_v40  ;;  %v588_v6 = vsel %vm563_vm1, %v587_v61, %v570_v36  ;;  %v599_v9 = vrot.slane %v586_v60, 4 }
 0x14d   : > { %v710_v7 = vsel %vm563_vm1, %v702_v39, %v709_v0  ;;  %v594_v8 = vperm.slane %v588_v6, %v2129_v40  ;;  %v602_v10 = vsel %vm563_vm1, %v586_v60, %v601_v52  ;;  %v735_v13 = vrot.slane %v726_v59, 4 }
 0x14e   : > { %v718_v11 = vperm.slane %v710_v7, %v2129_v40  ;;  %v731_v12 = vrot.slane %v714_v3, 4  ;;  %v737_v14 = vrot.slane %v730_v5, 4  ;;  %v600_v15 = vsel %vm563_vm1, %v599_v9, %v574_v37 }
 0x14f   : > { %v610_v16 = vperm.slane %v602_v10, %v2129_v40  ;;  %v611_v17 = vrot.slane %v594_v8, 4  ;;  %v613_v18 = vrot.slane %v598_v2, 4  ;;  %v606_v22 = vperm.slane %v600_v15, %v2129_v40 }
 0x150   : > { %v733_v19 = vrot.slane %v718_v11, 4  ;;  %v738_v20 = vsel %vm563_vm1, 0.0, %v737_v14  ;;  %v750_v21 = vsel %vm563_vm1, %v737_v14, %v726_v59  ;;  %v736_v32 = vsel %vm563_vm1, 0.0, %v735_v13 }
 0x151   : > { %v754_v23 = vperm.slane %v750_v21, %v2119_v26  ;;  %v755_v24 = vrot.slane %v738_v20, 4  ;;  %v612_v25 = vsel %vm563_vm1, 0.0, %v611_v17  ;;  %v614_v27 = vsel %vm563_vm1, 0.0, %v613_v18 }
 0x152   : > { %v615_v28 = vrot.slane %v606_v22, 4  ;;  %v617_v29 = vrot.slane %v610_v16, 4  ;;  %v619_v30 = vsel %vm563_vm1, %v613_v18, %v594_v8  ;;  %v624_v31 = vrot.slane %v614_v27, 4 }
 0x153   : > { %v623_v33 = vperm.slane %v619_v30, %v2119_v26  ;;  %v734_v34 = vsel %vm563_vm1, 0.0, %v733_v19  ;;  %v739_v35 = vsel %vm563_vm1, %v733_v19, %v714_v3  ;;  %v756_v47 = vsel %vm563_vm1, %v755_v24, %v736_v32 }
 0x154   : > { %v616_v36 = vsel %vm563_vm1, 0.0, %v615_v28  ;;  %v618_v37 = vsel %vm563_vm1, 0.0, %v617_v29  ;;  %v625_v38 = vsel %vm563_vm1, %v624_v31, %v612_v25  ;;  %v630_v39 = vsel %vm563_vm1, %v617_v29, %v606_v22 }
 0x155   : > { %v629_v41 = vperm.slane %v625_v38, %v2119_v26  ;;  %v634_v42 = vperm.slane %v630_v39, %v2119_v26  ;;  %v635_v43 = vrot.slane %v618_v37, 4  ;;  %v643_v44 = vrot.slane %v623_v33, 4 }
 0x156   : > { %v743_v45 = vperm.slane %v739_v35, %v2119_v26  ;;  %v744_v46 = vrot.slane %v734_v34, 4  ;;  %v775_v48 = vrot.slane %v754_v23, 4  ;;  %v732_v50 = vsel %vm563_vm1, 0.0, %v731_v12 }
 0x157   : > { %v636_v49 = vsel %vm563_vm1, %v635_v43, %v616_v36  ;;  %v760_v51 = vperm.slane %v756_v47, %v2119_v26  ;;  %v655_v52 = vrot.slane %v634_v42, 4  ;;  %v641_v59 = vrot.slane %v629_v41, 4 }
 0x158   : > { %v745_v53 = vsel %vm563_vm1, %v744_v46, %v732_v50  ;;  %v763_v54 = vrot.slane %v743_v45, 4  ;;  %v640_v55 = vperm.slane %v636_v49, %v2119_v26  ;;  %v644_v61 = vsel %vm563_vm1, %v629_v41, %v643_v44 }
 0x159   : > { %v749_v56 = vperm.slane %v745_v53, %v2119_v26  ;;  %v776_v57 = vsel %vm563_vm1, %v760_v51, %v775_v48  ;;  %v773_v58 = vrot.slane %v760_v51, 4  ;;  %v652_v9 = vperm.slane %v644_v61, %v2129_v40 }
 0x15a   : > { %v784_v60 = vperm.slane %v776_v57, %v2129_v40  ;;  %v656_v62 = vsel %vm563_vm1, %v640_v55, %v655_v52  ;;  %v653_v63 = vrot.slane %v640_v55, 4  ;;  %v642_v10 = vsel %vm563_vm1, %v641_v59, %v623_v33 }
 0x15b   : > { %v764_v0 = vsel %vm563_vm1, %v749_v56, %v763_v54  ;;  %v761_v1 = vrot.slane %v749_v56, 4  ;;  %v774_v2 = vsel %vm563_vm1, %v773_v58, %v754_v23  ;;  %v664_v3 = vperm.slane %v656_v62, %v2129_v40 }
 0x15c   : > { %v772_v5 = vperm.slane %v764_v0, %v2129_v40  ;;  %v789_v6 = vrot.slane %v784_v60, 4  ;;  %v780_v7 = vperm.slane %v774_v2, %v2129_v40  ;;  %v654_v11 = vsel %vm563_vm1, %v653_v63, %v634_v42 }
 0x15d   : > { %v762_v8 = vsel %vm563_vm1, %v761_v1, %v743_v45  ;;  %v669_v17 = vrot.slane %v664_v3, 4  ;;  %v660_v18 = vperm.slane %v654_v11, %v2129_v40  ;;  %v648_v22 = vperm.slane %v642_v10, %v2129_v40 }
 0x15e   : > { %v790_v12 = vsel %vm563_vm1, %v789_v6, %v772_v5  ;;  %v768_v13 = vperm.slane %v762_v8, %v2129_v40  ;;  %v785_v14 = vrot.slane %v780_v7, 4  ;;  %v791_v15 = vrot.slane %v772_v5, 4 }
 0x15f   : > { %v921_v16 = vpack.c.bf16 %v790_v12, %v790_v12  ;;  %v665_v28 = vrot.slane %v660_v18, 4  ;;  %v671_v29 = vrot.slane %v652_v9, 4  ;;  %v670_v33 = vsel %vm563_vm1, %v669_v17, %v652_v9 }
 0x160   : > { %v786_v19 = vsel %vm563_vm1, %v785_v14, %v768_v13  ;;  %v792_v20 = vsel %vm563_vm1, %v784_v60, %v791_v15  ;;  %v787_v21 = vrot.slane %v768_v13, 4  ;;  %v667_v34 = vrot.slane %v648_v22, 4 }
 0x161   : > { %v969_v23 = vsel %vm926_vm2, %v921_v16, 0  ;;  %v919_v24 = vpack.c.bf16 %v786_v19, %v786_v19  ;;  %v922_v25 = vpack.c.bf16 %v792_v20, %v792_v20  ;;  %v666_v36 = vsel %vm563_vm1, %v665_v28, %v648_v22 }
 0x162   : > { %978 = vmatpush.bf16.xpose.msrb.mxu0 %v969_v23  ;;  %v788_v27 = vsel %vm563_vm1, %v780_v7, %v787_v21  ;;  %v672_v37 = vsel %vm563_vm1, %v664_v3, %v671_v29  ;;  %v917_v38 = vpack.c.bf16 %v670_v33, %v670_v33  ;;  %v668_v39 = vsel %vm563_vm1, %v660_v18, %v667_v34 }
 0x163   : > { %v931_v30 = vsel %vm926_vm2, %v919_v24, 0  ;;  %v988_v31 = vsel %vm926_vm2, %v922_v25, 0  ;;  %v920_v32 = vpack.c.bf16 %v788_v27, %v788_v27  ;;  %v915_v41 = vpack.c.bf16 %v666_v36, %v666_v36 }
 0x164   : > { %940 = vmatpush.bf16.xpose.msra.mxu2 %v931_v30  ;;  %997 = vmatpush.bf16.xpose.msrb.mxu1 %v988_v31  ;;  %v918_v42 = vpack.c.bf16 %v672_v37, %v672_v37  ;;  %v916_v43 = vpack.c.bf16 %v668_v39, %v668_v39 }
 0x165   : > { %v950_v35 = vsel %vm926_vm2, %v920_v32, 0 }
 0x166   : > { %959 = vmatpush.bf16.xpose.msra.mxu3 %v950_v35 }
 0x169   : > { %1491 = vmatmul.msk.bf16.vlgmr.msrb.gmra.mxu0 %vm926_vm2, %v917_v38 }
 0x16b   : > { %1489 = vmatmul.msk.bf16.vlgmr.msra.gmra.mxu2 %vm926_vm2, %v915_v41  ;;  %1492 = vmatmul.msk.bf16.vlgmr.msrb.gmra.mxu1 %vm926_vm2, %v918_v42 }
 0x16d   : > { %1490 = vmatmul.msk.bf16.vlgmr.msra.gmra.mxu3 %vm926_vm2, %v916_v43 }
 0x1b2   : > { %v1613_v44 = vpop.permute.xlu0 %1612 }
 0x1b3   : > { %v1615_v45 = vunpack.i.h.bf16 %v1613_v44  ;;  %v1614_v46 = vunpack.i.l.bf16 %v1613_v44 }
 0x1b5   : > { %v819_v48 = vrot.slane %v1615_v45, 4  ;;  %v807_v49 = vrot.slane %v1614_v46, 4 }
 0x1ba   : > { %v1618_v47 = vpop.permute.xlu1 %1617 }
 0x1bb   : > { %v1620_v50 = vunpack.i.h.bf16 %v1618_v47  ;;  %v1619_v51 = vunpack.i.l.bf16 %v1618_v47 }
 0x1bd   : > { %v817_v52 = vrot.slane %v1620_v50, 4  ;;  %v820_v53 = vsel %vm563_vm1, %v1620_v50, %v819_v48  ;;  %v805_v54 = vrot.slane %v1619_v51, 4  ;;  %v808_v55 = vsel %vm563_vm1, %v1619_v51, %v807_v49 }
 0x1be   : > { %v828_v56 = vperm.slane %v820_v53, %v2119_v26  ;;  %v816_v57 = vperm.slane %v808_v55, %v2119_v26 }
 0x1bf   : > { %v818_v58 = vsel %vm563_vm1, %v817_v52, %v1615_v45  ;;  %v806_v59 = vsel %vm563_vm1, %v805_v54, %v1614_v46 }
 0x1c0   : > { %v824_v60 = vperm.slane %v818_v58, %v2119_v26  ;;  %v841_v61 = vrot.slane %v828_v56, 4  ;;  %v812_v62 = vperm.slane %v806_v59, %v2119_v26  ;;  %v843_v63 = vrot.slane %v816_v57, 4  ;;  %v474_v59 = vld [vmem:[%s416_s12] sm:$0x1] }
 0x1c1   : > { %vm550_vm4 = vcmp.gt.f32.partialorder %v474_v59, 0.0 }
 0x1c2   : > { %v829_v0 = vrot.slane %v824_v60, 4  ;;  %v831_v1 = vrot.slane %v812_v62, 4  ;;  %v842_v2 = vsel %vm563_vm1, %v841_v61, %v816_v57  ;;  %v844_v3 = vsel %vm563_vm1, %v828_v56, %v843_v63 }
 0x1c3   : > { %v848_v5 = vperm.slane %v842_v2, %v2129_v40  ;;  %v852_v6 = vperm.slane %v844_v3, %v2129_v40 }
 0x1c4   : > { %v830_v7 = vsel %vm563_vm1, %v829_v0, %v812_v62  ;;  %v832_v8 = vsel %vm563_vm1, %v824_v60, %v831_v1  ;;  %v1897_v60 = vmov 0.0  }
 0x1c5   : > { %v836_v9 = vperm.slane %v830_v7, %v2129_v40  ;;  %v840_v10 = vperm.slane %v832_v8, %v2129_v40  ;;  %v857_v11 = vrot.slane %v848_v5, 4  ;;  %v859_v12 = vrot.slane %v852_v6, 4 }
 0x1c6   : > { %v551_v61 = vsel %vm550_vm4, -inf, %v1897_v60 }
 0x1c7   : > { %v853_v13 = vrot.slane %v836_v9, 4  ;;  %v855_v14 = vrot.slane %v840_v10, 4  ;;  %v860_v15 = vsel %vm563_vm1, 0.0, %v859_v12  ;;  %v872_v16 = vsel %vm563_vm1, %v859_v12, %v848_v5 }
 0x1c8   : > { %v877_v17 = vrot.slane %v860_v15, 4  ;;  %v858_v19 = vsel %vm563_vm1, 0.0, %v857_v11  ;;  %v876_v20 = vperm.slane %v872_v16, %v2119_v26  ;;  %v924_v62 = vperm.slane %v551_v61, 0 }
 0x1c9   : > { %v856_v18 = vsel %vm563_vm1, 0.0, %v855_v14  ;;  %v861_v21 = vsel %vm563_vm1, %v855_v14, %v836_v9  ;;  %v854_v25 = vsel %vm563_vm1, 0.0, %v853_v13 }
 0x1ca   : > { %v866_v22 = vrot.slane %v856_v18, 4  ;;  %v865_v23 = vperm.slane %v861_v21, %v2119_v26  ;;  %v878_v24 = vsel %vm563_vm1, %v877_v17, %v858_v19  ;;  %v897_v28 = vrot.slane %v876_v20, 4 }
 0x1cb   : > { %v882_v27 = vperm.slane %v878_v24, %v2119_v26 }
 0x1cc   : > { %v867_v29 = vsel %vm563_vm1, %v866_v22, %v854_v25  ;;  %v885_v30 = vrot.slane %v865_v23, 4 }
 0x1cd   : > { %v871_v31 = vperm.slane %v867_v29, %v2119_v26  ;;  %v898_v32 = vsel %vm563_vm1, %v882_v27, %v897_v28  ;;  %v895_v33 = vrot.slane %v882_v27, 4 }
 0x1ce   : > { %v906_v34 = vperm.slane %v898_v32, %v2129_v40 }
 0x1cf   : > { %v886_v35 = vsel %vm563_vm1, %v871_v31, %v885_v30  ;;  %v883_v36 = vrot.slane %v871_v31, 4  ;;  %v896_v37 = vsel %vm563_vm1, %v895_v33, %v876_v20 }
 0x1d0   : > { %v894_v38 = vperm.slane %v886_v35, %v2129_v40  ;;  %v911_v39 = vrot.slane %v906_v34, 4  ;;  %v902_v41 = vperm.slane %v896_v37, %v2129_v40 }
 0x1d1   : > { %v884_v42 = vsel %vm563_vm1, %v883_v36, %v865_v23 }
 0x1d2   : > { %v912_v43 = vsel %vm563_vm1, %v911_v39, %v894_v38  ;;  %v890_v44 = vperm.slane %v884_v42, %v2129_v40  ;;  %v907_v45 = vrot.slane %v902_v41, 4  ;;  %v913_v46 = vrot.slane %v894_v38, 4 }
 0x1d3   : > { %v1045_v47 = vpack.c.bf16 %v912_v43, %v912_v43 }
 0x1d4   : > { %v908_v48 = vsel %vm563_vm1, %v907_v45, %v890_v44  ;;  %v914_v49 = vsel %vm563_vm1, %v906_v34, %v913_v46  ;;  %v909_v50 = vrot.slane %v890_v44, 4 }
 0x1d5   : > { %v1090_v51 = vsel %vm1050_vm3, %v1045_v47, 0  ;;  %v1043_v52 = vpack.c.bf16 %v908_v48, %v908_v48  ;;  %v1046_v53 = vpack.c.bf16 %v914_v49, %v914_v49 }
 0x1d6   : > { %1099 = vmatpush.bf16.msra.mxu0 %v1090_v51  ;;  %v910_v54 = vsel %vm563_vm1, %v902_v41, %v909_v50 }
 0x1d7   : > { %v1052_v55 = vsel %vm1050_vm3, %v1043_v52, 0  ;;  %v1109_v56 = vsel %vm1050_vm3, %v1046_v53, 0  ;;  %v1044_v57 = vpack.c.bf16 %v910_v54, %v910_v54 }
 0x1d8   : > { %1061 = vmatpush.bf16.msrb.mxu2 %v1052_v55  ;;  %1118 = vmatpush.bf16.msra.mxu1 %v1109_v56 }
 0x1d9   : > { %v1071_v58 = vsel %vm1050_vm3, %v1044_v57, 0 }
 0x1da   : > { %1080 = vmatpush.bf16.msrb.mxu3 %v1071_v58 }
 0x1e6   : > { %v980_v63 = vpop.f32.mrf.mxu0 }
 0x1e7   : > { %v981_v0 = vadd.f32 %v980_v63, %v924_v62 }
 0x1e8   : > { %v999_v1 = vpop.f32.mrf.mxu1 }
 0x1e9   : > { %v1009_v2 = vsel %vm926_vm2, %v981_v0, -inf  ;;  %v1000_v12 = vadd.f32 %v999_v1, %v924_v62 }
 0x1ea   : > { %1010 = vmax.xlane.f32.xlu1 %v1009_v2 }
 0x1eb   : > { %v1012_v15 = vsel %vm926_vm2, %v1000_v12, -inf }
 0x1ee   : > { %v942_v3 = vpop.f32.mrf.mxu2  ;;  %v982_v5 = vpop.f32.mrf.mxu0 }
 0x1ef   : > { %v943_v6 = vadd.f32 %v942_v3, %v924_v62 }
 0x1f0   : > { %v961_v7 = vpop.f32.mrf.mxu3  ;;  %v1001_v8 = vpop.f32.mrf.mxu1 }
 0x1f1   : > { %v962_v9 = vadd.f32 %v961_v7, %v924_v62  ;;  %v1003_v10 = vsel %vm926_vm2, %v943_v6, -inf }
 0x1f2   : > { %1004 = vmax.xlane.f32.xlu2 %v1003_v10 }
 0x1f3   : > { %v1006_v11 = vsel %vm926_vm2, %v962_v9, -inf }
 0x1f4   : > { %1007 = vmax.xlane.f32.xlu0 %v1006_v11 }
 0x1f6   : > { %v944_v13 = vpop.f32.mrf.mxu2 }
 0x1f8   : > { %v963_v14 = vpop.f32.mrf.mxu3 }
 0x1fa   : > { %1013 = vmax.xlane.f32.xlu2 %v1012_v15 }
 0x25d   : > { %v1011_v16 = vpop.xlane.xlu1 %1010 }
 0x25e   : > { %v1017_v17 = vsub.f32 %v981_v0, %v1011_v16 }
 0x260   : > { %v1023_v18 = vmul.f32 1.442695, %v1017_v17 }
 0x262   : > { %1625 = vpow2.f32 %v1023_v18 }
 0x265   : > { %v1005_v19 = vpop.xlane.xlu2 %1004 }
 0x266   : > { %v1015_v20 = vsub.f32 %v943_v6, %v1005_v19 }
 0x267   : > { %v1008_v21 = vpop.xlane.xlu0 %1007 }
 0x268   : > { %v1626_v22 = vpop.eup %1625  ;;  %v1019_v23 = vmul.f32 1.442695, %v1015_v20  ;;  %v1016_v24 = vsub.f32 %v962_v9, %v1008_v21 }
 0x269   : > { %v1041_v25 = vpack.c.bf16 %v1626_v22, %v1626_v22  ;;  %v1033_v27 = vsel %vm926_vm2, %v1626_v22, 0.0 }
 0x26a   : > { %1627 = vpow2.f32 %v1019_v23  ;;  %v1021_v28 = vmul.f32 1.442695, %v1016_v24  ;;  %1034 = vadd.xlane.f32.xlu2 %v1033_v27 }
 0x26b   : > { %1495 = vmatmul.msk.bf16.vlgmr.msra.gmra.mxu0 %vm926_vm2, %v1041_v25 }
 0x26c   : > { %1629 = vpow2.f32 %v1021_v28 }
 0x26d   : > { %v1014_v29 = vpop.xlane.xlu2 %1013 }
 0x26e   : > { %v1018_v30 = vsub.f32 %v1000_v12, %v1014_v29 }
 0x270   : > { %v1628_v31 = vpop.eup %1627  ;;  %v1025_v32 = vmul.f32 1.442695, %v1018_v30 }
 0x271   : > { %v1027_v33 = vsel %vm926_vm2, %v1628_v31, 0.0  ;;  %v1039_v34 = vpack.c.bf16 %v1628_v31, %v1628_v31 }
 0x272   : > { %v1630_v35 = vpop.eup %1629  ;;  %1631 = vpow2.f32 %v1025_v32  ;;  %1028 = vadd.xlane.f32.xlu0 %v1027_v33 }
 0x273   : > { %1493 = vmatmul.msk.bf16.vlgmr.msrb.gmra.mxu2 %vm926_vm2, %v1039_v34  ;;  %v1030_v36 = vsel %vm926_vm2, %v1630_v35, 0.0  ;;  %v1040_v37 = vpack.c.bf16 %v1630_v35, %v1630_v35 }
 0x274   : > { %1031 = vadd.xlane.f32.xlu2 %v1030_v36 }
 0x275   : > { %1494 = vmatmul.msk.bf16.vlgmr.msrb.gmra.mxu3 %vm926_vm2, %v1040_v37 }
 0x278   : > { %v1632_v38 = vpop.eup %1631 }
 0x279   : > { %v1042_v39 = vpack.c.bf16 %v1632_v38, %v1632_v38  ;;  %v1036_v41 = vsel %vm926_vm2, %v1632_v38, 0.0 }
 0x27a   : > { %1037 = vadd.xlane.f32.xlu1 %v1036_v41 }
 0x27b   : > { %1496 = vmatmul.msk.bf16.vlgmr.msra.gmra.mxu1 %vm926_vm2, %v1042_v39 }
 0x2dd   : > { %v1035_v42 = vpop.xlane.xlu2 %1034 }
 0x2de   : > { %1633 = vrcp.f32 %v1035_v42 }
 0x2e4   : > { %v1634_v48 = vpop.eup %1633 }
 0x2e5   : > { %v1029_v44 = vpop.xlane.xlu0 %1028 }
 0x2e6   : > { %1635 = vrcp.f32 %v1029_v44 }
 0x2e7   : > { %v1032_v45 = vpop.xlane.xlu2 %1031 }
 0x2e8   : > { %v1101_v43 = vpop.f32.mrf.mxu0  ;;  %1637 = vrcp.f32 %v1032_v45 }
 0x2e9   : > { %v1130_v49 = vmul.f32 %v1634_v48, %v1101_v43 }
 0x2eb   : > { %v1132_v53 = vrot.slane %v1130_v49, 4 }
 0x2ec   : > { %v1636_v50 = vpop.eup %1635 }
 0x2ed   : > { %v1038_v46 = vpop.xlane.xlu1 %1037 }
 0x2ee   : > { %1639 = vrcp.f32 %v1038_v46  ;;  %v1638_v52 = vpop.eup %1637 }
 0x2f0   : > { %v1103_v47 = vpop.f32.mrf.mxu0 }
 0x2f4   : > { %v1640_v55 = vpop.eup %1639 }
 0x2f6   : > { %v1063_v51 = vpop.f32.mrf.mxu2 }
 0x2f7   : > { %v1128_v54 = vmul.f32 %v1636_v50, %v1063_v51 }
 0x2f8   : > { %v1082_v56 = vpop.f32.mrf.mxu3  ;;  %v1120_v57 = vpop.f32.mrf.mxu1 }
 0x2f9   : > { %v1133_v58 = vsel %vm563_vm1, %v1132_v53, %v1128_v54  ;;  %v1134_v59 = vrot.slane %v1128_v54, 4  ;;  %v1129_v60 = vmul.f32 %v1638_v52, %v1082_v56  ;;  %v1131_v61 = vmul.f32 %v1640_v55, %v1120_v57 }
 0x2fa   : > { %v1139_v62 = vperm.slane %v1133_v58, %v2119_v26 }
 0x2fb   : > { %v1135_v63 = vsel %vm563_vm1, %v1130_v49, %v1134_v59  ;;  %v1146_v0 = vrot.slane %v1129_v60, 4  ;;  %v1144_v1 = vrot.slane %v1131_v61, 4 }
 0x2fc   : > { %v1143_v2 = vperm.slane %v1135_v63, %v2119_v26  ;;  %v1158_v6 = vrot.slane %v1139_v62, 4 }
 0x2fd   : > { %v1145_v3 = vsel %vm563_vm1, %v1144_v1, %v1129_v60  ;;  %v1147_v5 = vsel %vm563_vm1, %v1131_v61, %v1146_v0 }
 0x2fe   : > { %v1170_v7 = vrot.slane %v1143_v2, 4  ;;  %v1151_v8 = vperm.slane %v1145_v3, %v2119_v26  ;;  %v1155_v9 = vperm.slane %v1147_v5, %v2119_v26  ;;  %v1065_v10 = vpop.f32.mrf.mxu2 }
 0x300   : > { %v1156_v11 = vrot.slane %v1151_v8, 4  ;;  %v1159_v12 = vsel %vm563_vm1, %v1151_v8, %v1158_v6  ;;  %v1168_v13 = vrot.slane %v1155_v9, 4  ;;  %v1171_v14 = vsel %vm563_vm1, %v1155_v9, %v1170_v7  ;;  %v1084_v15 = vpop.f32.mrf.mxu3  ;;  %v1122_v16 = vpop.f32.mrf.mxu1 }
 0x301   : > { %v1167_v17 = vperm.slane %v1159_v12, %v2129_v40  ;;  %v1179_v18 = vperm.slane %v1171_v14, %v2129_v40  ;;  %v1901_v6 = vmov 32.0  }
 0x302   : > { %v1157_v19 = vsel %vm563_vm1, %v1156_v11, %v1139_v62  ;;  %v1169_v20 = vsel %vm563_vm1, %v1168_v13, %v1143_v2  ;;  %1641 = vrcp.f32 %v1901_v6 }
 0x303   : > { %v1163_v21 = vperm.slane %v1157_v19, %v2129_v40  ;;  %v1175_v22 = vperm.slane %v1169_v20, %v2129_v40  ;;  %v1182_v23 = vrot.slane %v1167_v17, 4  ;;  %v1186_v24 = vrot.slane %v1179_v18, 4 }
 0x305   : > { %v1180_v25 = vrot.slane %v1163_v21, 4  ;;  %v1183_v27 = vsel %vm563_vm1, 0.0, %v1182_v23  ;;  %v1184_v28 = vrot.slane %v1175_v22, 4  ;;  %v1187_v29 = vsel %vm563_vm1, 0.0, %v1186_v24 }
 0x306   : > { %v1193_v30 = vrot.slane %v1183_v27, 4  ;;  %v1204_v31 = vrot.slane %v1187_v29, 4  ;;  %v1188_v32 = vsel %vm563_vm1, %v1182_v23, %v1163_v21  ;;  %v1199_v33 = vsel %vm563_vm1, %v1186_v24, %v1175_v22  ;;  %v1623_v27 = vld [vmem:[%s2407_s28] ss:$0 sm:$0xff] }
 0x307   : > { %v1181_v34 = vsel %vm563_vm1, 0.0, %v1180_v25  ;;  %v1185_v35 = vsel %vm563_vm1, 0.0, %v1184_v28  ;;  %v1192_v36 = vperm.slane %v1188_v32, %v2119_v26  ;;  %v1203_v37 = vperm.slane %v1199_v33, %v2119_v26 }
 0x308   : > { %v1194_v38 = vsel %vm563_vm1, %v1193_v30, %v1181_v34  ;;  %v1205_v39 = vsel %vm563_vm1, %v1204_v31, %v1185_v35  ;;  %v1642_v7 = vpop.eup %1641  ;;  %v1624_v30 = vld [vmem:[%s2410_s15] ss:$0 sm:$0xff] }
 0x309   : > { %v1198_v41 = vperm.slane %v1194_v38, %v2119_v26  ;;  %v1209_v42 = vperm.slane %v1205_v39, %v2119_v26  ;;  %v1212_v43 = vrot.slane %v1192_v36, 4  ;;  %v1224_v44 = vrot.slane %v1203_v37, 4 }
 0x30a   : > { %v1264_v8 = vmul.f32 32.0, %v1642_v7  ;;  %vm1268_vm7 = vweird.f32 %v1642_v7 }
 0x30b   : > { %v1213_v45 = vsel %vm563_vm1, %v1198_v41, %v1212_v43  ;;  %v1225_v46 = vsel %vm563_vm1, %v1209_v42, %v1224_v44  ;;  %v1210_v47 = vrot.slane %v1198_v41, 4  ;;  %v1222_v48 = vrot.slane %v1209_v42, 4 }
 0x30c   : > { %v1221_v49 = vperm.slane %v1213_v45, %v2129_v40  ;;  %v1233_v50 = vperm.slane %v1225_v46, %v2129_v40  ;;  %v1265_v9 = vsub.f32 1.0, %v1264_v8 }
 0x30d   : > { %v1211_v51 = vsel %vm563_vm1, %v1210_v47, %v1192_v36  ;;  %v1223_v52 = vsel %vm563_vm1, %v1222_v48, %v1203_v37 }
 0x30e   : > { %v1240_v53 = vrot.slane %v1221_v49, 4  ;;  %v1238_v54 = vrot.slane %v1233_v50, 4  ;;  %v1217_v26 = vperm.slane %v1211_v51, %v2129_v40  ;;  %v1229_v55 = vperm.slane %v1223_v52, %v2129_v40 }
 0x30f   : > { %v1266_v10 = vmul.f32 %v1642_v7, %v1265_v9 }
 0x310   : > { %v1241_v56 = vsel %vm563_vm1, %v1233_v50, %v1240_v53  ;;  %v1239_v57 = vsel %vm563_vm1, %v1238_v54, %v1221_v49  ;;  %v1234_v58 = vrot.slane %v1229_v55, 4  ;;  %v1236_v59 = vrot.slane %v1217_v26, 4 }
 0x311   : > { %1251 = vrot.lane.b32.xlu2 %v1241_v56, %s1898_s30  ;;  %1247 = vrot.lane.b32.xlu1 %v1239_v57, %s1899_s27  ;;  %v1267_v11 = vadd.f32 %v1642_v7, %v1266_v10 }
 0x312   : > { %v1237_v60 = vsel %vm563_vm1, %v1229_v55, %v1236_v59  ;;  %v1235_v61 = vsel %vm563_vm1, %v1234_v58, %v1217_v26 }
 0x313   : > { %1243 = vrot.lane.b32.xlu0 %v1237_v60, %s1900_s16  ;;  %v1269_v12 = vsel %vm1268_vm7, %v1642_v7, %v1267_v11 }
 0x36b   : > { %v1252_v0 = vpop.permute.xlu2 %1251 }
 0x383   : > { %v1248_v40 = vpop.permute.xlu1 %1247 }
 0x385   : > { %v1244_v62 = vpop.permute.xlu0 %1243 }
 0x386   : > { %v1254_v63 = vsel %vm926_vm2, %v1235_v61, %v1244_v62 }
 0x387   : > { %v1256_v1 = vsel %vm1255_vm5, %v1254_v63, %v1248_v40 }
 0x388   : > { %v1258_v2 = vsel %vm1257_vm6, %v1256_v1, %v1252_v0 }
 0x389   : > { %v1259_v3 = vadd.f32 %v1258_v2, %v2107_v4 }
 0x38b   : > { %v1260_v5 = vsel %vm496_vm0, %v1259_v3, 0.0 }
 0x38c   : > { %1261 = vadd.xlane.f32.xlu0 %v1260_v5 }
 0x3ff   : > { %v1262_v13 = vpop.xlane.xlu0 %1261 }
 0x400   : > { %v1270_v14 = vmul.f32 %v1269_v12, %v1262_v13 }
 0x402   : > { %v1271_v15 = vsub.f32 %v1259_v3, %v1270_v14 }
 0x404   : > { %v1272_v16 = vmul.f32 %v1271_v15, %v1271_v15 }
 0x406   : > { %v1273_v17 = vsel %vm496_vm0, %v1272_v16, 0.0 }
 0x407   : > { %1274 = vadd.xlane.f32.xlu1 %v1273_v17 }
 0x47a   : > { %v1275_v4 = vpop.xlane.xlu1 %1274 }
 0x47b   : > { %v1276_v18 = vmul.f32 %v1275_v4, %v1269_v12 }
 0x47d   : > { %v1277_v19 = vadd.f32 1e-05, %v1276_v18 }
 0x47f   : > { %1643 = vrsqrt.f32 %v1277_v19  ;;  %vm1284_vm9 = vweird.f32 %v1277_v19 }
 0x485   : > { %v1644_v20 = vpop.eup %1643 }
 0x486   : > { %v1279_v21 = vmul.f32 %v1644_v20, %v1277_v19  ;;  %vm1285_vm8 = vweird.f32 %v1644_v20 }
 0x487   : > { %vm1286_vm10 = vmor %vm1284_vm9, %vm1285_vm8 }
 0x488   : > { %v1280_v22 = vmul.f32 %v1644_v20, %v1279_v21 }
 0x48a   : > { %v1281_v23 = vmul.f32 0.5, %v1280_v22 }
 0x48c   : > { %v1282_v24 = vsub.f32 1.5, %v1281_v23 }
 0x48e   : > { %v1283_v25 = vmul.f32 %v1644_v20, %v1282_v24 }
 0x490   : > { %v1287_v28 = vsel %vm1286_vm10, %v1644_v20, %v1283_v25 }
 0x491   : > { %v1288_v29 = vmul.f32 %v1287_v28, %v1271_v15 }
 0x493   : > { %v1293_v31 = vmul.f32 %v1623_v27, %v1288_v29 }
 0x495   : > { %v1298_v32 = vadd.f32 %v1624_v30, %v1293_v31 }
 0x497   : > { %1299 = vst.msk [vmem:[%s470_s19] sm:$0xff] %vm496_vm0, %v1298_v32 }
 0x498   : > { %1822 = shalt.err (!%p1819_p11)
}
 0x499   : > { %1519 = dma.vmem_to_hbm [thread:$0]  (%p2032_p4), %s1315_s29, 128, %s1317_s17, %s1301_s21  }
 0x49a PF: > { %s2411_s1 = sld [smem:[#allocation16_spill]] }
 0x49b   : > { %s2413_s20 = sld [smem:[#allocation19_spill]] }
 0x4a0   : > { %s1328_s8 = sand.u32 1, %s2411_s1  }
 0x4a1   : > { %p2414_p12 = scmp.ge.s32.totalorder %s2413_s20, 2  ;;  %s1329_s14 = scalar_lea.sflag [#allocation4], %s1328_s8 }
 0x4a3   : > { %p1539_p13 = pnand %p2414_p12, %p2040_p9 }
 0x4a5   : > { %p1540_p0 = pneg %p1539_p13 }
 0x4a7   : > { %1860 = dma.done.wait (%p1540_p0), %s1329_s14, 128  }
 0x4a8   : > { %1862 = vsyncadd (%p1540_p0), %s1329_s14, 4294967168  ;;  %s29_s14 = sadd.s32 1, %s2413_s20   ;;  %s2415_s28 = sld [smem:[#allocation17_spill]] }
 0x4a9   : > { %p26_p2 = scmp.ge.s32.totalorder %s29_s14, 4   ;;  %s2416_s11 = sld [smem:[#allocation22_spill]] }
 0x4aa   : > { %s2417_s22 = sld [smem:[#allocation20_spill]]  ;;  %s2418_s30 = smov %s1869_s10 }
 0x4ab   : > { %s2420_s12 = smov %s1881_s13 }
 0x4ac   :  { %28 = sbr.rel (!%p26_p2) target bundleno = 16 (0x10), region = 133 }
 0x4ae   : > { %s2419_s10 = smov %s2415_s28 }
 0x4b0   : > { %s2421_s13 = smov %s2417_s22 }
 0x4b1   :  { %1335 = vsyncpa [#allocation3], 1 }
 0x4b2   :  { %1337 = vsyncpa [#allocation3 + $0x1], 1 }
 0x4b3   :  { %1338 = vsyncpa [#allocation6], 1 }
 0x4b4   :  { %1340 = vsyncpa [#allocation6 + $0x1], 1 }
 0x4b5   :  { %1341 = vsyncpa [#allocation9], 1 }
 0x4b6   :  { %1342 = vsyncpa [#allocation4], 1 }
 0x4b7   :  { %1344 = vsyncpa [#allocation4 + $0x1], 1 }

// kernel: tpu_custom_call.1
= control target key start
LH: loop header
LB: loop body
LE: loop exit
PB: predicated region body
PF: predicated region fallthrough
CT: control target
= control target key end

     0   :  { %s1762_s0 = inlined_call_operand.hbm [shape: f32[2,8,32], index: 0, kind: input, shape index: {}]   ;;  %s1763_s1 = inlined_call_operand.hbm [shape: f32[2,8,32], index: 1, kind: input, shape index: {}]   ;;  %s1764_s2 = inlined_call_operand.hbm [shape: f32[2,1,8], index: 2, kind: input, shape index: {}]   ;;  %s1765_s3 = inlined_call_operand.hbm [shape: bf16[32,32], index: 3, kind: input, shape index: {}]   ;;  %s1766_s4 = inlined_call_operand.vmem [shape: f32[1,32], index: 4, kind: input, shape index: {}]   ;;  %s1767_s5 = inlined_call_operand.hbm [shape: bf16[32,64], index: 5, kind: input, shape index: {}]   ;;  %s1768_s6 = inlined_call_operand.vmem [shape: f32[1,64], index: 6, kind: input, shape index: {}]   ;;  %s1769_s7 = inlined_call_operand.vmem [shape: f32[1,32], index: 7, kind: input, shape index: {}]   ;;  %s1770_s8 = inlined_call_operand.vmem [shape: f32[1,32], index: 8, kind: input, shape index: {}]   ;;  %s1771_s9 = inlined_call_operand.hbm [shape: f32[2,8,32], index: 9, kind: output, shape index: {}]  }
   0x1   :  { %1783 = sst [smem:[#allocation24_spill]] %s1763_s1 }
   0x2   :  { %1784 = sst [smem:[#allocation25_spill]] %s1765_s3 }
   0x3   :  { %1785 = sst [smem:[#allocation26_spill]] %s1767_s5 }
   0x4   :  { %1786 = sst [smem:[#allocation27_spill]] %s1769_s7 }
   0x5   :  { %1787 = sst [smem:[#allocation28_spill]] %s1770_s8 }
   0x6   :  { %1788 = sst [smem:[#allocation29_spill]] %s1771_s9 }
   0x7   :  { %14 = vsyncpa [#allocation3], 0 }
   0x8   :  { %16 = vsyncpa [#allocation3 + $0x1], 0 }
   0x9   :  { %17 = vsyncpa [#allocation6], 0 }
   0xa   :  { %19 = vsyncpa [#allocation6 + $0x1], 0 }
   0xb   :  { %20 = vsyncpa [#allocation9], 0 }
   0xc   :  { %21 = vsyncpa [#allocation4], 0 }
   0xd   :  { %23 = vsyncpa [#allocation4 + $0x1], 0  ;;  %s1513_s30 = smov 0   ;;  %s1515_s10 = smov 0  }
   0xe   :  { %s1517_s11 = smov 0   ;;  %s1519_s12 = smov 0  }
   0xf   :  { %s1521_s13 = smov 0   ;;  %s1523_s14 = smov 0  }
  0x10 LB: > { %1789 = sst [smem:[#allocation16_spill]] %s1425_s30  ;;  %s1544_s15 = sadd.s32 4294967295, %s1445_s14   ;;  %s1445_s14 = sphi %s1523_s14, %s29_s14   ;;  %s1441_s13 = sphi %s1521_s13, %s1825_s13   ;;  %s1437_s12 = sphi %s1519_s12, %s1824_s12   ;;  %s1433_s11 = sphi %s1517_s11, %s1820_s11   ;;  %s1429_s10 = sphi %s1515_s10, %s1823_s10   ;;  %s1425_s30 = sphi %s1513_s30, %s1822_s30  }
  0x11   : > { %1790 = sst [smem:[#allocation17_spill]] %s1433_s11  ;;  %p1026_p0 = scmp.ge.s32.totalorder %s1445_s14, 1 }
  0x12   : > { %1791 = sst [smem:[#allocation18_spill]] %s1437_s12  ;;  %p64_p1 = scmp.eq.s32.totalorder %s1544_s15, 0 }
  0x13   : > { %1792 = sst [smem:[#allocation19_spill]] %s1445_s14  ;;  %p280_p2 = scmp.lt.s32.totalorder %s1445_s14, 3 }
  0x14   : > { %s1793_s3 = sld [smem:[#allocation25_spill]]  ;;  %s1447_s20 = smov [#allocation8]  }
  0x15   : > { %p1552_p3 = pnand %p1026_p0, %p280_p2  ;;  %s293_s21 = sshll.u32 %s1447_s20, 4  ;;  %s294_s21 = int_to_ptr.vmem [resolvable:$true] %s293_s21 }
  0x16   : > { %s1772_s23 = smov 64   ;;  %s1773_s24 = smov 4  }
  0x17   : > { %p1090_p4 = pneg %p1552_p3  ;;  %s1025_s25 = sadd.s32 4294967294, %s1445_s14  }
  0x18   : > { %s41_s26 = sadd.s32 1, %s1441_s13  ;;  %s50_s27 = sadd.s32 1, %s1433_s11 }
  0x19   : > { %p1560_p5 = pnand %p1090_p4, %p64_p1  ;;  %p43_p7 = scmp.ge.s32.totalorder %s41_s26, 2 }
  0x1a   : > { %s291_s18 = sshll.u32 %s1793_s3, 4  ;;  %p57_p8 = scmp.ne.s32.totalorder %s1433_s11, %s1429_s10  ;;  %s292_s18 = int_to_ptr.hbm [resolvable:$true] %s291_s18 }
  0x1b   : > { %1093 = dma.hbm_to_vmem [thread:$0]  (!%p1560_p5), %s292_s18, 256, %s294_s21, [#allocation9], %s1772_s23, %s1772_s23, %s1773_s24  }
  0x1c   : > { %p58_p9 = scmp.eq.s32.totalorder %s1445_s14, 0  ;;  %p63_p10 = scmp.ne.s32.totalorder %s1429_s10, %s1425_s30 }
  0x1d   : > { %s1827_s26 = smov (%p43_p7, %s41_s26), 0  ;;  %p267_p13 = scmp.eq.s32.totalorder %s1544_s15, 1 }
  0x1e   : > { %1796 = sst [smem:[#allocation20_spill]] %s1827_s26  ;;  %p1580_p11 = por %p58_p9, %p57_p8 }
  0x1f   : > { %p1586_p12 = por %p64_p1, %p63_p10  ;;  %s45_s16 = ssub.s32 %s1441_s13, %s1827_s26 }
  0x20   : > { %p48_p0 = scmp.eq.s32.totalorder %s45_s16, 0  ;;  %p273_p2 = scmp.eq.s32.totalorder %s1025_s25, 1 }
  0x21   : > { %p1593_p4 = por %p267_p13, %p57_p8  ;;  %p1113_p7 = scmp.lt.s32.totalorder %s1445_s14, 2 }
  0x22   : > { %s1599_s18 = scalar_select %p48_p0, %s1433_s11, %s50_s27  }
  0x23   : > { %s1799_s17 = scalar_select %p1593_p4, 1, 0 }
  0x24   : > { %1801 = sst [smem:[#allocation22_spill]] %s1599_s18  ;;  %p1601_p9 = por %p273_p2, %p63_p10 }
  0x25   : > { %1800 = sst [smem:[#allocation21_spill]] %s1799_s17  ;;  %s1606_s21 = sand.u32 1, %s1433_s11  }
  0x26   : > { %s1802_s20 = scalar_select %p1601_p9, 1, 0 }
  0x27   : > { %s1030_s23 = sshll.u32 %s1606_s21, 3  ;;  %s1031_s24 = sshll.u32 %s1441_s13, 3 }
  0x28   : > { %1803 = sst [smem:[#allocation23_spill]] %s1802_s20  ;;  %p1612_p6 = pnand %p1113_p7, %p1580_p11 }
  0x29   : > { %s353_s16 = sand.u32 1, %s1445_s14   ;;  %s1805_s1 = sld [smem:[#allocation24_spill]] }
  0x2a   : > { %s357_s30 = scalar_lea.vmem [#allocation5], %s1030_s23  ;;  %s354_s11 = scalar_lea.sflag [#allocation6], %s353_s16 }
  0x2b   : > { %s365_s20 = sshll.u32 %s357_s30, 4  ;;  %s1806_s5 = sld [smem:[#allocation26_spill]]  ;;  %s366_s20 = int_to_ptr.vmem [resolvable:$true] %s365_s20 }
  0x2c   : > { %s1450_s14 = smov [#allocation10]   ;;  %s1808_s30 = smov 64  }
  0x2d   : > { %s310_s3 = sshll.u32 %s1450_s14, 4  ;;  %s334_s8 = scalar_lea.sflag [#allocation3], %s1606_s21  ;;  %s311_s3 = int_to_ptr.vmem [resolvable:$true] %s310_s3 }
  0x2e   : > { %s378_s22 = scalar_lea.hbm %s1764_s2, %s1441_s13  ;;  %s375_s7 = scalar_lea.vmem [#allocation7], %s1606_s21 }
  0x2f   : > { %s361_s26 = scalar_lea.hbm %s1805_s1, %s1031_s24  ;;  %s342_s1 = scalar_lea.hbm %s1762_s0, %s1031_s24 }
  0x30   : > { %s363_s18 = sshll.u32 %s361_s26, 4  ;;  %s1807_s26 = smov 4   ;;  %s364_s18 = int_to_ptr.hbm [resolvable:$true] %s363_s18 }
  0x31   : > { %1103 = dma.hbm_to_vmem [thread:$0]  (!%p1612_p6), %s364_s18, 128, %s366_s20, %s354_s11  }
  0x32   : > { %s308_s17 = sshll.u32 %s1806_s5, 4  ;;  %s344_s18 = sshll.u32 %s342_s1, 4  ;;  %s309_s17 = int_to_ptr.hbm [resolvable:$true] %s308_s17  ;;  %s345_s18 = int_to_ptr.hbm [resolvable:$true] %s344_s18 }
  0x33   : > { %1096 = dma.hbm_to_vmem [thread:$0]  (!%p1560_p5), %s309_s17, 256, %s311_s3, [#allocation9], %s1808_s30, %s1808_s30, %s1807_s26  }
  0x34   : > { %s337_s20 = scalar_lea.vmem [#allocation2], %s1030_s23  ;;  %s380_s5 = sshll.u32 %s378_s22, 4  ;;  %s381_s5 = int_to_ptr.hbm [resolvable:$true] %s380_s5 }
  0x35   : > { %s346_s9 = sshll.u32 %s337_s20, 4  ;;  %s382_s12 = sshll.u32 %s375_s7, 4  ;;  %s347_s9 = int_to_ptr.vmem [resolvable:$true] %s346_s9  ;;  %s383_s12 = int_to_ptr.vmem [resolvable:$true] %s382_s12 }
  0x36   : > { %1100 = dma.hbm_to_vmem [thread:$0]  (!%p1612_p6), %s345_s18, 128, %s347_s9, %s334_s8  }
  0x37   : > { %1106 = dma.hbm_to_vmem [thread:$0]  (!%p1612_p6), %s381_s5, 16, %s383_s12, %s354_s11  }
  0x38   : > { %391 = sbr.rel (%p1552_p3) target bundleno = 1229 (0x4cd), region = 56  ;;  %s1646_s1 = sand.u32 (!%p1552_p3), 1, %s1429_s10  }
  0x39   : > { %s1649_s9 = sshll.u32 (!%p1552_p3), %s1646_s1, 3  ;;  %s394_s23 = scalar_lea.sflag (!%p1552_p3), [#allocation3], %s1646_s1 }
  0x3a   : > { %s397_s24 = scalar_lea.vmem (!%p1552_p3), [#allocation2], %s1649_s9 }
  0x3d   : > { %1408 = dma.done.wait (%p1586_p12), %s394_s23, 128  }
  0x3e   : > { %1410 = vsyncadd (%p1586_p12), %s394_s23, 4294967168  ;;  %s403_s5 = sand.u32 1, %s1544_s15   ;;  %s407_s11 = scalar_lea.vmem [#allocation5], %s1649_s9 }
  0x3f   : > { %s404_s7 = scalar_lea.sflag [#allocation6], %s403_s5 }
  0x40   : > { %1412 = dma.done.wait (%p1586_p12), %s404_s7, 144  }
  0x41   : > { %1414 = vsyncadd (%p1586_p12), %s404_s7, 4294967152  ;;  %s416_s12 = scalar_lea.vmem [#allocation7], %s1646_s1 }
  0x42   : > { %1416 = dma.done.wait (%p64_p1), [#allocation9], 512  }
  0x43   : > { %1418 = vsyncadd (%p64_p1), [#allocation9], 4294966784  ;;  %v1071_v0 = vld [vmem:[#allocation8 + $0x8] sm:$0xff]  ;;  %v1070_v1 = vld [vmem:[#allocation8] sm:$0xff]  ;;  %vm496_vm0 = vcmask 261120   ;;  %s1451_s21 = smov 104  }
  0x44   : > { %v1668_v2 = vld [vmem:[%s397_s24] sm:$0xff]  ;;  %506 = vmatpush.bf16.msra.mxu0 %v1071_v0  ;;  %v1072_v4 = vld [vmem:[#allocation10] sm:$0xff]  ;;  %s1452_s25 = smov 120   ;;  %s1453_s3 = smov 96   ;;  %vm594_vm1 = vcmask 1043456   ;;  %vm590_vm2 = vcmask 64512  }
  0x45   : > { %v1073_v3 = vld [vmem:[#allocation10 + $0x8] sm:$0xff]  ;;  %v475_v6 = vpack.c.bf16 %v1668_v2, %v1668_v2  ;;  %s1454_s26 = smov 112   ;;  %s1455_s30 = smov 88   ;;  %v1456_v38 = vmov 0.0   ;;  %vm824_vm4 = vcmask 130048   ;;  %vm826_vm5 = vcmask 195584  }
  0x46   : > { %543 = vmatpush.bf16.msra.mxu1 %v1073_v3  ;;  %v473_v5 = vld [vmem:[%s407_s11] sm:$0xff]  ;;  %v1181_v8 = vld [vmem:[%s1766_s4] ss:$0 sm:$0xff]  ;;  %s1457_s27 = smov 72   ;;  %s1458_s16 = smov 80  }
  0x47   : > { %v518_v7 = vpack.c.bf16 %v473_v5, %v473_v5  ;;  %v1182_v9 = vld [vmem:[%s1768_s6] ss:$0 sm:$0xff]  ;;  %s1459_s18 = smov 8   ;;  %s1460_s20 = smov 16  }
  0x48   : > { %507 = vmatpush.bf16.msra.mxu0 %v1070_v1  ;;  %v474_v37 = vld [vmem:[%s416_s12] sm:$0x1]  ;;  %s1461_s8 = smov 24   ;;  %s1809_s14 = sld [smem:[#allocation18_spill]] }
  0x49   : > { %vm550_vm3 = vcmp.gt.f32.partialorder %v474_v37, 0.0  ;;  %s1810_s24 = sld [smem:[#allocation27_spill]] }
  0x4a   : > { %544 = vmatpush.bf16.msra.mxu1 %v1072_v4  ;;  %v551_v39 = vsel %vm550_vm3, -inf, %v1456_v38  ;;  %s1811_s11 = sld [smem:[#allocation29_spill]] }
  0x4b   : > { %1048 = vmatmul.msk.bf16.vlgmr.msra.gmra.mxu0 %vm496_vm0, %v475_v6  ;;  %v588_v40 = vperm.slane %v551_v39, 0 }
  0x4d   : > { %1057 = vmatmul.msk.bf16.vlgmr.msra.gmra.mxu1 %vm496_vm0, %v518_v7 }
  0x4e   : > { %s1067_s28 = sshll.u32 %s1809_s14, 3 }
  0x50   : > { %s1812_s15 = smov %s1811_s11  ;;  %s881_s12 = scalar_lea.hbm %s1811_s11, %s1067_s28 }
  0xc8   : > { %v509_v10 = vpop.f32.mrf.mxu0 }
  0xc9   : > { %v510_v11 = vadd.f32 %v1181_v8, %v509_v10 }
  0xca   : > { %v546_v12 = vpop.f32.mrf.mxu1 }
  0xcb   : > { %v547_v13 = vadd.f32 %v1182_v9, %v546_v12  ;;  %v584_v14 = vpack.c.bf16 %v510_v11, %v510_v11 }
  0xcd   : > { %v1680_v15 = vpack.c.bf16 %v547_v13, %v547_v13  ;;  %757 = vrot.lane.b32.xlu1 %v584_v14, %s1451_s21  ;;  %647 = vrot.lane.b32.xlu0 %v584_v14, %s1452_s25  ;;  %s1814_s21 = sld [smem:[#allocation28_spill]]  ;;  %s470_s25 = scalar_lea.vmem [#allocation11], %s1649_s9 }
  0xce   : > { %s1375_s9 = scalar_lea.hbm %s1812_s15, 16 }
  0xcf   : > { %622 = vrot.lane.b32.xlu2 %v1680_v15, %s1453_s3  ;;  %s883_s3 = sshll.u32 %s470_s25, 4  ;;  %s884_s3 = int_to_ptr.vmem [resolvable:$true] %s883_s3 }
  0xd0   : > { %v511_v16 = vpop.f32.mrf.mxu0 }
  0xd2   : > { %v548_v17 = vpop.f32.mrf.mxu1 }
  0xd5   : > { %702 = vrot.lane.b32.xlu1 %v584_v14, %s1454_s26  ;;  %s885_s26 = sshll.u32 %s881_s12, 4  ;;  %s886_s26 = int_to_ptr.hbm [resolvable:$true] %s885_s26 }
  0xd7   : > { %678 = vrot.lane.b32.xlu2 %v1680_v15, %s1455_s30  ;;  %s870_s30 = scalar_lea.sflag [#allocation4], %s1646_s1 }
  0xef   : > { %552 = vxpose.xlu0.b32.start.end [1/1] (short) (narrow) %v547_v13, 32 }
 0x129   : > { %v623_v18 = vpop.permute.xlu2 %622 }
 0x12a   : > { %v628_v19 = vsel %vm594_vm1, %v623_v18, 0 }
 0x12b   : > { %637 = vmatpush.bf16.msra.mxu3 %v628_v19 }
 0x131   : > { %v679_v20 = vpop.permute.xlu2 %678 }
 0x132   : > { %v684_v21 = vsel %vm594_vm1, %v679_v20, 0 }
 0x133   : > { %693 = vmatpush.bf16.msrb.mxu3 %v684_v21 }
 0x13f   : > { %v648_v22 = vpop.permute.xlu0 %647  ;;  %v758_v29 = vpop.permute.xlu1 %757 }
 0x147   : > { %v703_v33 = vpop.permute.xlu1 %702 }
 0x193   : > { %v568_v23 = vpop.trf.xlu0 }
 0x194   : > { %v585_v24 = vpack.c.bf16 %v568_v23, %v568_v23 }
 0x196   : > { %v596_v25 = vsel %vm594_vm1, %v585_v24, 0 }
 0x197   : > { %605 = vmatpush.bf16.msra.mxu2 %v596_v25 }
 0x19a   : > { %1058 = vmatmul.msk.bf16.vlgmr.msra.gmra.mxu2 %vm590_vm2, %v584_v14 }
 0x19b   : > { %v569_v26 = vpop.trf.xlu0 }
 0x19c   : > { %v645_v27 = vpack.c.bf16 %v569_v26, %v569_v26 }
 0x19e   : > { %v653_v28 = vsel %vm594_vm1, %v645_v27, 0 }
 0x19f   : > { %662 = vmatpush.bf16.msrb.mxu2 %v653_v28 }
 0x1a3   : > { %v570_v30 = vpop.trf.xlu0 }
 0x1a4   : > { %v701_v31 = vpack.c.bf16 %v570_v30, %v570_v30 }
 0x1a6   : > { %v708_v32 = vsel %vm594_vm1, %v701_v31, 0 }
 0x1a7   : > { %717 = vmatpush.bf16.msrb.mxu0 %v708_v32 }
 0x1aa   : > { %1060 = vmatmul.msk.bf16.vlgmr.msrb.gmra.mxu2 %vm590_vm2, %v648_v22  ;;  %1062 = vmatmul.msk.bf16.vlgmr.msrb.gmra.mxu0 %vm590_vm2, %v703_v33 }
 0x1ab   : > { %v571_v34 = vpop.trf.xlu0 }
 0x1ac   : > { %v756_v35 = vpack.c.bf16 %v571_v34, %v571_v34 }
 0x1ae   : > { %v763_v36 = vsel %vm594_vm1, %v756_v35, 0 }
 0x1af   : > { %772 = vmatpush.bf16.msra.mxu2 %v763_v36 }
 0x1ba   : > { %1064 = vmatmul.msk.bf16.vlgmr.msra.gmra.mxu2 %vm590_vm2, %v758_v29 }
 0x21d   : > { %v607_v41 = vpop.f32.mrf.mxu2 }
 0x21e   : > { %v608_v42 = vadd.f32 %v607_v41, %v588_v40 }
 0x220   : > { %v611_v43 = vsel %vm590_vm2, %v608_v42, -inf }
 0x221   : > { %612 = vmax.xlane.f32.xlu2 %v611_v43 }
 0x225   : > { %v609_v44 = vpop.f32.mrf.mxu2 }
 0x227   : > { %v719_v45 = vpop.f32.mrf.mxu0 }
 0x228   : > { %v720_v46 = vadd.f32 %v719_v45, %v588_v40 }
 0x22a   : > { %v723_v47 = vsel %vm590_vm2, %v720_v46, -inf }
 0x22b   : > { %724 = vmax.xlane.f32.xlu0 %v723_v47 }
 0x22d   : > { %v664_v48 = vpop.f32.mrf.mxu2 }
 0x22e   : > { %v665_v49 = vadd.f32 %v664_v48, %v588_v40 }
 0x22f   : > { %v721_v50 = vpop.f32.mrf.mxu0 }
 0x230   : > { %v668_v51 = vsel %vm590_vm2, %v665_v49, -inf  ;;  %v1462_v50 = vmov 32.0  }
 0x231   : > { %669 = vmax.xlane.f32.xlu1 %v668_v51 }
 0x235   : > { %v666_v52 = vpop.f32.mrf.mxu2 }
 0x23d   : > { %v774_v53 = vpop.f32.mrf.mxu2 }
 0x23e   : > { %v775_v54 = vadd.f32 %v774_v53, %v588_v40 }
 0x240   : > { %v778_v55 = vsel %vm590_vm2, %v775_v54, -inf }
 0x241   : > { %779 = vmax.xlane.f32.xlu2 %v778_v55 }
 0x245   : > { %v776_v56 = vpop.f32.mrf.mxu2 }
 0x24a   : > { %788 = vrot.lane.b32.xlu1 %v1680_v15, %s1457_s27  ;;  %s1369_s27 = sshra.s32 %s886_s26, 4  ;;  %s1370_s27 = int_to_ptr.hbm [resolvable:$true] %s1369_s27 }
 0x24b   : > { %p1376_p6 = scmp.lt.s32.totalorder %s1370_s27, %s1812_s15 }
 0x259   : > { %733 = vrot.lane.b32.xlu2 %v1680_v15, %s1458_s16  ;;  %s1371_s16 = scalar_lea.hbm %s1370_s27, 8 }
 0x25a   : > { %p1372_p1 = scmp.ne.s32.totalorder %s1370_s27, %s1371_s16  ;;  %p1377_p8 = scmp.lt.s32.totalorder %s1375_s9, %s1371_s16 }
 0x25c   : > { %p1373_p3 = pnand %p1372_p1, %p1593_p4  ;;  %p1378_p10 = por %p1377_p8, %p1376_p6 }
 0x25e   : > { %p1374_p5 = pneg %p1373_p3 }
 0x260   : > { %p1379_p11 = pnand %p1378_p10, %p1374_p5 }
 0x294   : > { %v613_v57 = vpop.xlane.xlu2 %612 }
 0x295   : > { %v614_v58 = vsub.f32 %v608_v42, %v613_v57 }
 0x297   : > { %v615_v59 = vmul.f32 1.442695, %v614_v58 }
 0x299   : > { %1185 = vpow2.f32 %v615_v59 }
 0x29e   : > { %v725_v60 = vpop.xlane.xlu0 %724 }
 0x29f   : > { %v1186_v61 = vpop.eup %1185  ;;  %v726_v62 = vsub.f32 %v720_v46, %v725_v60 }
 0x2a0   : > { %v617_v63 = vsel %vm590_vm2, %v1186_v61, 0.0  ;;  %v620_v0 = vpack.c.bf16 %v1186_v61, %v1186_v61 }
 0x2a1   : > { %v727_v1 = vmul.f32 1.442695, %v726_v62  ;;  %618 = vadd.xlane.f32.xlu1 %v617_v63 }
 0x2a2   : > { %1059 = vmatmul.msk.bf16.vlgmr.msra.gmra.mxu3 %vm590_vm2, %v620_v0 }
 0x2a3   : > { %1187 = vpow2.f32 %v727_v1 }
 0x2a4   : > { %v670_v3 = vpop.xlane.xlu1 %669 }
 0x2a5   : > { %v671_v4 = vsub.f32 %v665_v49, %v670_v3 }
 0x2a7   : > { %v672_v5 = vmul.f32 1.442695, %v671_v4 }
 0x2a9   : > { %v1188_v6 = vpop.eup %1187  ;;  %1189 = vpow2.f32 %v672_v5 }
 0x2aa   : > { %v729_v7 = vsel %vm590_vm2, %v1188_v6, 0.0  ;;  %v732_v19 = vpack.c.bf16 %v1188_v6, %v1188_v6 }
 0x2ab   : > { %730 = vadd.xlane.f32.xlu2 %v729_v7  ;;  %v1183_v7 = vld [vmem:[%s1810_s24] ss:$0 sm:$0xff] }
 0x2af   : > { %v1190_v8 = vpop.eup %1189 }
 0x2b0   : > { %v674_v9 = vsel %vm590_vm2, %v1190_v8, 0.0  ;;  %v677_v10 = vpack.c.bf16 %v1190_v8, %v1190_v8 }
 0x2b1   : > { %675 = vadd.xlane.f32.xlu1 %v674_v9 }
 0x2b2   : > { %1061 = vmatmul.msk.bf16.vlgmr.msrb.gmra.mxu3 %vm590_vm2, %v677_v10  ;;  %v1184_v10 = vld [vmem:[%s1814_s21] ss:$0 sm:$0xff] }
 0x2b4   : > { %v780_v11 = vpop.xlane.xlu2 %779 }
 0x2b5   : > { %v781_v12 = vsub.f32 %v775_v54, %v780_v11 }
 0x2b7   : > { %v782_v13 = vmul.f32 1.442695, %v781_v12 }
 0x2b9   : > { %1191 = vpow2.f32 %v782_v13 }
 0x2bc   : > { %v789_v14 = vpop.permute.xlu1 %788  ;;  %v734_v15 = vpop.permute.xlu2 %733 }
 0x2bd   : > { %v794_v16 = vsel %vm594_vm1, %v789_v14, 0  ;;  %v739_v17 = vsel %vm594_vm1, %v734_v15, 0 }
 0x2be   : > { %748 = vmatpush.bf16.msrb.mxu1 %v739_v17  ;;  %803 = vmatpush.bf16.msra.mxu3 %v794_v16 }
 0x2bf   : > { %v1192_v18 = vpop.eup %1191 }
 0x2c0   : > { %v787_v20 = vpack.c.bf16 %v1192_v18, %v1192_v18  ;;  %v784_v21 = vsel %vm590_vm2, %v1192_v18, 0.0 }
 0x2c1   : > { %785 = vadd.xlane.f32.xlu1 %v784_v21  ;;  %1063 = vmatmul.msk.bf16.vlgmr.msrb.gmra.mxu1 %vm590_vm2, %v732_v19 }
 0x2c2   : > { %1065 = vmatmul.msk.bf16.vlgmr.msra.gmra.mxu3 %vm590_vm2, %v787_v20 }
 0x314   : > { %v619_v22 = vpop.xlane.xlu1 %618 }
 0x315   : > { %1193 = vrcp.f32 %v619_v22 }
 0x31b   : > { %v1194_v23 = vpop.eup %1193 }
 0x31e   : > { %v731_v29 = vpop.xlane.xlu2 %730 }
 0x324   : > { %v676_v26 = vpop.xlane.xlu1 %675 }
 0x325   : > { %v639_v24 = vpop.f32.mrf.mxu3  ;;  %1195 = vrcp.f32 %v676_v26 }
 0x326   : > { %v644_v25 = vmul.f32 %v1194_v23, %v639_v24  ;;  %1197 = vrcp.f32 %v731_v29 }
 0x32b   : > { %v1196_v28 = vpop.eup %1195 }
 0x32c   : > { %v1198_v34 = vpop.eup %1197 }
 0x32d   : > { %v641_v27 = vpop.f32.mrf.mxu3 }
 0x334   : > { %v786_v32 = vpop.xlane.xlu1 %785 }
 0x335   : > { %v695_v30 = vpop.f32.mrf.mxu3  ;;  %1199 = vrcp.f32 %v786_v32 }
 0x336   : > { %v700_v31 = vmul.f32 %v1196_v28, %v695_v30  ;;  %1201 = vrcp.f32 %v1462_v50 }
 0x338   : > { %812 = vrot.lane.b32.xlu1 %v700_v31, %s1459_s18 }
 0x33b   : > { %v1200_v37 = vpop.eup %1199 }
 0x33c   : > { %v1202_v51 = vpop.eup %1201 }
 0x33d   : > { %v697_v33 = vpop.f32.mrf.mxu3  ;;  %v833_v52 = vmul.f32 32.0, %v1202_v51  ;;  %vm837_vm6 = vweird.f32 %v1202_v51 }
 0x33e   : > { %v750_v35 = vpop.f32.mrf.mxu1 }
 0x33f   : > { %v755_v36 = vmul.f32 %v1198_v34, %v750_v35  ;;  %v834_v53 = vsub.f32 1.0, %v833_v52 }
 0x341   : > { %816 = vrot.lane.b32.xlu2 %v755_v36, %s1460_s20  ;;  %v835_v54 = vmul.f32 %v1202_v51, %v834_v53 }
 0x343   : > { %v836_v55 = vadd.f32 %v1202_v51, %v835_v54 }
 0x345   : > { %v805_v38 = vpop.f32.mrf.mxu3  ;;  %v838_v56 = vsel %vm837_vm6, %v1202_v51, %v836_v55 }
 0x346   : > { %v810_v39 = vmul.f32 %v1200_v37, %v805_v38  ;;  %v752_v40 = vpop.f32.mrf.mxu1 }
 0x348   : > { %820 = vrot.lane.b32.xlu1 %v810_v39, %s1461_s8 }
 0x34d   : > { %v807_v41 = vpop.f32.mrf.mxu3 }
 0x39b   : > { %v817_v44 = vpop.permute.xlu2 %816 }
 0x3aa   : > { %v813_v42 = vpop.permute.xlu1 %812 }
 0x3ab   : > { %v823_v43 = vsel %vm590_vm2, %v644_v25, %v813_v42 }
 0x3ac   : > { %v825_v46 = vsel %vm824_vm4, %v823_v43, %v817_v44 }
 0x3ba   : > { %v821_v45 = vpop.permute.xlu1 %820 }
 0x3bb   : > { %v827_v47 = vsel %vm826_vm5, %v825_v46, %v821_v45 }
 0x3bc   : > { %v828_v48 = vadd.f32 %v827_v47, %v1668_v2 }
 0x3be   : > { %v829_v49 = vsel %vm496_vm0, %v828_v48, 0.0 }
 0x3bf   : > { %830 = vadd.xlane.f32.xlu2 %v829_v49 }
 0x432   : > { %v831_v57 = vpop.xlane.xlu2 %830 }
 0x433   : > { %v839_v58 = vmul.f32 %v838_v56, %v831_v57 }
 0x435   : > { %v840_v59 = vsub.f32 %v828_v48, %v839_v58 }
 0x437   : > { %v841_v60 = vmul.f32 %v840_v59, %v840_v59 }
 0x439   : > { %v842_v61 = vsel %vm496_vm0, %v841_v60, 0.0 }
 0x43a   : > { %843 = vadd.xlane.f32.xlu1 %v842_v61 }
 0x4ad   : > { %v844_v2 = vpop.xlane.xlu1 %843 }
 0x4ae   : > { %v845_v62 = vmul.f32 %v844_v2, %v838_v56 }
 0x4b0   : > { %v846_v63 = vadd.f32 1e-05, %v845_v62 }
 0x4b2   : > { %1203 = vrsqrt.f32 %v846_v63  ;;  %vm853_vm8 = vweird.f32 %v846_v63 }
 0x4b8   : > { %v1204_v0 = vpop.eup %1203 }
 0x4b9   : > { %v848_v1 = vmul.f32 %v1204_v0, %v846_v63  ;;  %vm854_vm7 = vweird.f32 %v1204_v0 }
 0x4ba   : > { %vm855_vm9 = vmor %vm853_vm8, %vm854_vm7 }
 0x4bb   : > { %v849_v3 = vmul.f32 %v1204_v0, %v848_v1 }
 0x4bd   : > { %v850_v4 = vmul.f32 0.5, %v849_v3 }
 0x4bf   : > { %v851_v5 = vsub.f32 1.5, %v850_v4 }
 0x4c1   : > { %v852_v6 = vmul.f32 %v1204_v0, %v851_v5 }
 0x4c3   : > { %v856_v8 = vsel %vm855_vm9, %v1204_v0, %v852_v6 }
 0x4c4   : > { %v857_v9 = vmul.f32 %v856_v8, %v840_v59 }
 0x4c6   : > { %v862_v11 = vmul.f32 %v1183_v7, %v857_v9 }
 0x4c8   : > { %v867_v12 = vadd.f32 %v1184_v10, %v862_v11 }
 0x4ca   : > { %868 = vst.msk [vmem:[%s470_s25] sm:$0xff] %vm496_vm0, %v867_v12 }
 0x4cb   : > { %1382 = shalt.err (!%p1379_p11)
}
 0x4cc   : > { %1088 = dma.vmem_to_hbm [thread:$0]  (%p1593_p4), %s884_s3, 128, %s886_s26, %s870_s30  }
 0x4cd PF: > { %s1815_s1 = sld [smem:[#allocation16_spill]] }
 0x4ce   : > { %s1817_s22 = sld [smem:[#allocation19_spill]] }
 0x4d3   : > { %s897_s23 = sand.u32 1, %s1815_s1  }
 0x4d4   : > { %p1818_p12 = scmp.ge.s32.totalorder %s1817_s22, 2  ;;  %s898_s24 = scalar_lea.sflag [#allocation4], %s897_s23 }
 0x4d6   : > { %p1108_p13 = pnand %p1818_p12, %p1601_p9 }
 0x4d8   : > { %p1109_p0 = pneg %p1108_p13 }
 0x4da   : > { %1420 = dma.done.wait (%p1109_p0), %s898_s24, 128  }
 0x4db   : > { %1422 = vsyncadd (%p1109_p0), %s898_s24, 4294967168  ;;  %s29_s14 = sadd.s32 1, %s1817_s22   ;;  %s1819_s5 = sld [smem:[#allocation17_spill]] }
 0x4dc   : > { %p26_p2 = scmp.ge.s32.totalorder %s29_s14, 4   ;;  %s1820_s11 = sld [smem:[#allocation22_spill]] }
 0x4dd   : > { %s1821_s7 = sld [smem:[#allocation20_spill]]  ;;  %s1822_s30 = smov %s1429_s10 }
 0x4de   : > { %s1824_s12 = smov %s1441_s13 }
 0x4df   :  { %28 = sbr.rel (!%p26_p2) target bundleno = 16 (0x10), region = 133 }
 0x4e1   : > { %s1823_s10 = smov %s1819_s5 }
 0x4e3   : > { %s1825_s13 = smov %s1821_s7 }
 0x4e4   :  { %904 = vsyncpa [#allocation3], 1 }
 0x4e5   :  { %906 = vsyncpa [#allocation3 + $0x1], 1 }
 0x4e6   :  { %907 = vsyncpa [#allocation6], 1 }
 0x4e7   :  { %909 = vsyncpa [#allocation6 + $0x1], 1 }
 0x4e8   :  { %910 = vsyncpa [#allocation9], 1 }
 0x4e9   :  { %911 = vsyncpa [#allocation4], 1 }
 0x4ea   :  { %913 = vsyncpa [#allocation4 + $0x1], 1 }

// kernel: tpu_custom_call.1
= control target key start
LH: loop header
LB: loop body
LE: loop exit
PB: predicated region body
PF: predicated region fallthrough
CT: control target
= control target key end

     0   :  { %s1762_s0 = inlined_call_operand.hbm [shape: f32[2,8,32], index: 0, kind: input, shape index: {}]   ;;  %s1763_s1 = inlined_call_operand.hbm [shape: f32[2,8,32], index: 1, kind: input, shape index: {}]   ;;  %s1764_s2 = inlined_call_operand.hbm [shape: f32[2,1,8], index: 2, kind: input, shape index: {}]   ;;  %s1765_s3 = inlined_call_operand.hbm [shape: bf16[32,32], index: 3, kind: input, shape index: {}]   ;;  %s1766_s4 = inlined_call_operand.vmem [shape: f32[1,32], index: 4, kind: input, shape index: {}]   ;;  %s1767_s5 = inlined_call_operand.hbm [shape: bf16[32,64], index: 5, kind: input, shape index: {}]   ;;  %s1768_s6 = inlined_call_operand.vmem [shape: f32[1,64], index: 6, kind: input, shape index: {}]   ;;  %s1769_s7 = inlined_call_operand.vmem [shape: f32[1,32], index: 7, kind: input, shape index: {}]   ;;  %s1770_s8 = inlined_call_operand.vmem [shape: f32[1,32], index: 8, kind: input, shape index: {}]   ;;  %s1771_s9 = inlined_call_operand.hbm [shape: f32[2,8,32], index: 9, kind: output, shape index: {}]  }
   0x1   :  { %1783 = sst [smem:[#allocation24_spill]] %s1763_s1 }
   0x2   :  { %1784 = sst [smem:[#allocation25_spill]] %s1765_s3 }
   0x3   :  { %1785 = sst [smem:[#allocation26_spill]] %s1767_s5 }
   0x4   :  { %1786 = sst [smem:[#allocation27_spill]] %s1769_s7 }
   0x5   :  { %1787 = sst [smem:[#allocation28_spill]] %s1770_s8 }
   0x6   :  { %1788 = sst [smem:[#allocation29_spill]] %s1771_s9 }
   0x7   :  { %14 = vsyncpa [#allocation3], 0 }
   0x8   :  { %16 = vsyncpa [#allocation3 + $0x1], 0 }
   0x9   :  { %17 = vsyncpa [#allocation6], 0 }
   0xa   :  { %19 = vsyncpa [#allocation6 + $0x1], 0 }
   0xb   :  { %20 = vsyncpa [#allocation9], 0 }
   0xc   :  { %21 = vsyncpa [#allocation4], 0 }
   0xd   :  { %23 = vsyncpa [#allocation4 + $0x1], 0  ;;  %s1513_s30 = smov 0   ;;  %s1515_s10 = smov 0  }
   0xe   :  { %s1517_s11 = smov 0   ;;  %s1519_s12 = smov 0  }
   0xf   :  { %s1521_s13 = smov 0   ;;  %s1523_s14 = smov 0  }
  0x10 LB: > { %1789 = sst [smem:[#allocation16_spill]] %s1425_s30  ;;  %s1544_s15 = sadd.s32 4294967295, %s1445_s14   ;;  %s1445_s14 = sphi %s1523_s14, %s29_s14   ;;  %s1441_s13 = sphi %s1521_s13, %s1825_s13   ;;  %s1437_s12 = sphi %s1519_s12, %s1824_s12   ;;  %s1433_s11 = sphi %s1517_s11, %s1820_s11   ;;  %s1429_s10 = sphi %s1515_s10, %s1823_s10   ;;  %s1425_s30 = sphi %s1513_s30, %s1822_s30  }
  0x11   : > { %1790 = sst [smem:[#allocation17_spill]] %s1433_s11  ;;  %p1026_p0 = scmp.ge.s32.totalorder %s1445_s14, 1 }
  0x12   : > { %1791 = sst [smem:[#allocation18_spill]] %s1437_s12  ;;  %p64_p1 = scmp.eq.s32.totalorder %s1544_s15, 0 }
  0x13   : > { %1792 = sst [smem:[#allocation19_spill]] %s1445_s14  ;;  %p280_p2 = scmp.lt.s32.totalorder %s1445_s14, 3 }
  0x14   : > { %s1793_s3 = sld [smem:[#allocation25_spill]]  ;;  %s1447_s20 = smov [#allocation8]  }
  0x15   : > { %p1552_p3 = pnand %p1026_p0, %p280_p2  ;;  %s293_s21 = sshll.u32 %s1447_s20, 4  ;;  %s294_s21 = int_to_ptr.vmem [resolvable:$true] %s293_s21 }
  0x16   : > { %s1772_s23 = smov 64   ;;  %s1773_s24 = smov 4  }
  0x17   : > { %p1090_p4 = pneg %p1552_p3  ;;  %s1025_s25 = sadd.s32 4294967294, %s1445_s14  }
  0x18   : > { %s41_s26 = sadd.s32 1, %s1441_s13  ;;  %s50_s27 = sadd.s32 1, %s1433_s11 }
  0x19   : > { %p1560_p5 = pnand %p1090_p4, %p64_p1  ;;  %p43_p7 = scmp.ge.s32.totalorder %s41_s26, 2 }
  0x1a   : > { %s291_s18 = sshll.u32 %s1793_s3, 4  ;;  %p57_p8 = scmp.ne.s32.totalorder %s1433_s11, %s1429_s10  ;;  %s292_s18 = int_to_ptr.hbm [resolvable:$true] %s291_s18 }
  0x1b   : > { %1093 = dma.hbm_to_vmem [thread:$0]  (!%p1560_p5), %s292_s18, 256, %s294_s21, [#allocation9], %s1772_s23, %s1772_s23, %s1773_s24  }
  0x1c   : > { %p58_p9 = scmp.eq.s32.totalorder %s1445_s14, 0  ;;  %p63_p10 = scmp.ne.s32.totalorder %s1429_s10, %s1425_s30 }
  0x1d   : > { %s1827_s26 = smov (%p43_p7, %s41_s26), 0  ;;  %p267_p13 = scmp.eq.s32.totalorder %s1544_s15, 1 }
  0x1e   : > { %1796 = sst [smem:[#allocation20_spill]] %s1827_s26  ;;  %p1580_p11 = por %p58_p9, %p57_p8 }
  0x1f   : > { %p1586_p12 = por %p64_p1, %p63_p10  ;;  %s45_s16 = ssub.s32 %s1441_s13, %s1827_s26 }
  0x20   : > { %p48_p0 = scmp.eq.s32.totalorder %s45_s16, 0  ;;  %p273_p2 = scmp.eq.s32.totalorder %s1025_s25, 1 }
  0x21   : > { %p1593_p4 = por %p267_p13, %p57_p8  ;;  %p1113_p7 = scmp.lt.s32.totalorder %s1445_s14, 2 }
  0x22   : > { %s1599_s18 = scalar_select %p48_p0, %s1433_s11, %s50_s27  }
  0x23   : > { %s1799_s17 = scalar_select %p1593_p4, 1, 0 }
  0x24   : > { %1801 = sst [smem:[#allocation22_spill]] %s1599_s18  ;;  %p1601_p9 = por %p273_p2, %p63_p10 }
  0x25   : > { %1800 = sst [smem:[#allocation21_spill]] %s1799_s17  ;;  %s1606_s21 = sand.u32 1, %s1433_s11  }
  0x26   : > { %s1802_s20 = scalar_select %p1601_p9, 1, 0 }
  0x27   : > { %s1030_s23 = sshll.u32 %s1606_s21, 3  ;;  %s1031_s24 = sshll.u32 %s1441_s13, 3 }
  0x28   : > { %1803 = sst [smem:[#allocation23_spill]] %s1802_s20  ;;  %p1612_p6 = pnand %p1113_p7, %p1580_p11 }
  0x29   : > { %s353_s16 = sand.u32 1, %s1445_s14   ;;  %s1805_s1 = sld [smem:[#allocation24_spill]] }
  0x2a   : > { %s357_s30 = scalar_lea.vmem [#allocation5], %s1030_s23  ;;  %s354_s11 = scalar_lea.sflag [#allocation6], %s353_s16 }
  0x2b   : > { %s365_s20 = sshll.u32 %s357_s30, 4  ;;  %s1806_s5 = sld [smem:[#allocation26_spill]]  ;;  %s366_s20 = int_to_ptr.vmem [resolvable:$true] %s365_s20 }
  0x2c   : > { %s1450_s14 = smov [#allocation10]   ;;  %s1808_s30 = smov 64  }
  0x2d   : > { %s310_s3 = sshll.u32 %s1450_s14, 4  ;;  %s334_s8 = scalar_lea.sflag [#allocation3], %s1606_s21  ;;  %s311_s3 = int_to_ptr.vmem [resolvable:$true] %s310_s3 }
  0x2e   : > { %s378_s22 = scalar_lea.hbm %s1764_s2, %s1441_s13  ;;  %s375_s7 = scalar_lea.vmem [#allocation7], %s1606_s21 }
  0x2f   : > { %s361_s26 = scalar_lea.hbm %s1805_s1, %s1031_s24  ;;  %s342_s1 = scalar_lea.hbm %s1762_s0, %s1031_s24 }
  0x30   : > { %s363_s18 = sshll.u32 %s361_s26, 4  ;;  %s1807_s26 = smov 4   ;;  %s364_s18 = int_to_ptr.hbm [resolvable:$true] %s363_s18 }
  0x31   : > { %1103 = dma.hbm_to_vmem [thread:$0]  (!%p1612_p6), %s364_s18, 128, %s366_s20, %s354_s11  }
  0x32   : > { %s308_s17 = sshll.u32 %s1806_s5, 4  ;;  %s344_s18 = sshll.u32 %s342_s1, 4  ;;  %s309_s17 = int_to_ptr.hbm [resolvable:$true] %s308_s17  ;;  %s345_s18 = int_to_ptr.hbm [resolvable:$true] %s344_s18 }
  0x33   : > { %1096 = dma.hbm_to_vmem [thread:$0]  (!%p1560_p5), %s309_s17, 256, %s311_s3, [#allocation9], %s1808_s30, %s1808_s30, %s1807_s26  }
  0x34   : > { %s337_s20 = scalar_lea.vmem [#allocation2], %s1030_s23  ;;  %s380_s5 = sshll.u32 %s378_s22, 4  ;;  %s381_s5 = int_to_ptr.hbm [resolvable:$true] %s380_s5 }
  0x35   : > { %s346_s9 = sshll.u32 %s337_s20, 4  ;;  %s382_s12 = sshll.u32 %s375_s7, 4  ;;  %s347_s9 = int_to_ptr.vmem [resolvable:$true] %s346_s9  ;;  %s383_s12 = int_to_ptr.vmem [resolvable:$true] %s382_s12 }
  0x36   : > { %1100 = dma.hbm_to_vmem [thread:$0]  (!%p1612_p6), %s345_s18, 128, %s347_s9, %s334_s8  }
  0x37   : > { %1106 = dma.hbm_to_vmem [thread:$0]  (!%p1612_p6), %s381_s5, 16, %s383_s12, %s354_s11  }
  0x38   : > { %391 = sbr.rel (%p1552_p3) target bundleno = 1229 (0x4cd), region = 56  ;;  %s1646_s1 = sand.u32 (!%p1552_p3), 1, %s1429_s10  }
  0x39   : > { %s1649_s9 = sshll.u32 (!%p1552_p3), %s1646_s1, 3  ;;  %s394_s23 = scalar_lea.sflag (!%p1552_p3), [#allocation3], %s1646_s1 }
  0x3a   : > { %s397_s24 = scalar_lea.vmem (!%p1552_p3), [#allocation2], %s1649_s9 }
  0x3d   : > { %1408 = dma.done.wait (%p1586_p12), %s394_s23, 128  }
  0x3e   : > { %1410 = vsyncadd (%p1586_p12), %s394_s23, 4294967168  ;;  %s403_s5 = sand.u32 1, %s1544_s15   ;;  %s407_s11 = scalar_lea.vmem [#allocation5], %s1649_s9 }
  0x3f   : > { %s404_s7 = scalar_lea.sflag [#allocation6], %s403_s5 }
  0x40   : > { %1412 = dma.done.wait (%p1586_p12), %s404_s7, 144  }
  0x41   : > { %1414 = vsyncadd (%p1586_p12), %s404_s7, 4294967152  ;;  %s416_s12 = scalar_lea.vmem [#allocation7], %s1646_s1 }
  0x42   : > { %1416 = dma.done.wait (%p64_p1), [#allocation9], 512  }
  0x43   : > { %1418 = vsyncadd (%p64_p1), [#allocation9], 4294966784  ;;  %v1071_v0 = vld [vmem:[#allocation8 + $0x8] sm:$0xff]  ;;  %v1070_v1 = vld [vmem:[#allocation8] sm:$0xff]  ;;  %vm496_vm0 = vcmask 261120   ;;  %s1451_s21 = smov 104  }
  0x44   : > { %v1668_v2 = vld [vmem:[%s397_s24] sm:$0xff]  ;;  %506 = vmatpush.bf16.msra.mxu0 %v1071_v0  ;;  %v1072_v4 = vld [vmem:[#allocation10] sm:$0xff]  ;;  %s1452_s25 = smov 120   ;;  %s1453_s3 = smov 96   ;;  %vm594_vm1 = vcmask 1043456   ;;  %vm590_vm2 = vcmask 64512  }
  0x45   : > { %v1073_v3 = vld [vmem:[#allocation10 + $0x8] sm:$0xff]  ;;  %v475_v6 = vpack.c.bf16 %v1668_v2, %v1668_v2  ;;  %s1454_s26 = smov 112   ;;  %s1455_s30 = smov 88   ;;  %v1456_v38 = vmov 0.0   ;;  %vm824_vm4 = vcmask 130048   ;;  %vm826_vm5 = vcmask 195584  }
  0x46   : > { %543 = vmatpush.bf16.msra.mxu1 %v1073_v3  ;;  %v473_v5 = vld [vmem:[%s407_s11] sm:$0xff]  ;;  %v1181_v8 = vld [vmem:[%s1766_s4] ss:$0 sm:$0xff]  ;;  %s1457_s27 = smov 72   ;;  %s1458_s16 = smov 80  }
  0x47   : > { %v518_v7 = vpack.c.bf16 %v473_v5, %v473_v5  ;;  %v1182_v9 = vld [vmem:[%s1768_s6] ss:$0 sm:$0xff]  ;;  %s1459_s18 = smov 8   ;;  %s1460_s20 = smov 16  }
  0x48   : > { %507 = vmatpush.bf16.msra.mxu0 %v1070_v1  ;;  %v474_v37 = vld [vmem:[%s416_s12] sm:$0x1]  ;;  %s1461_s8 = smov 24   ;;  %s1809_s14 = sld [smem:[#allocation18_spill]] }
  0x49   : > { %vm550_vm3 = vcmp.gt.f32.partialorder %v474_v37, 0.0  ;;  %s1810_s24 = sld [smem:[#allocation27_spill]] }
  0x4a   : > { %544 = vmatpush.bf16.msra.mxu1 %v1072_v4  ;;  %v551_v39 = vsel %vm550_vm3, -inf, %v1456_v38  ;;  %s1811_s11 = sld [smem:[#allocation29_spill]] }
  0x4b   : > { %1048 = vmatmul.msk.bf16.vlgmr.msra.gmra.mxu0 %vm496_vm0, %v475_v6  ;;  %v588_v40 = vperm.slane %v551_v39, 0 }
  0x4d   : > { %1057 = vmatmul.msk.bf16.vlgmr.msra.gmra.mxu1 %vm496_vm0, %v518_v7 }
  0x4e   : > { %s1067_s28 = sshll.u32 %s1809_s14, 3 }
  0x50   : > { %s1812_s15 = smov %s1811_s11  ;;  %s881_s12 = scalar_lea.hbm %s1811_s11, %s1067_s28 }
  0xc8   : > { %v509_v10 = vpop.f32.mrf.mxu0 }
  0xc9   : > { %v510_v11 = vadd.f32 %v1181_v8, %v509_v10 }
  0xca   : > { %v546_v12 = vpop.f32.mrf.mxu1 }
  0xcb   : > { %v547_v13 = vadd.f32 %v1182_v9, %v546_v12  ;;  %v584_v14 = vpack.c.bf16 %v510_v11, %v510_v11 }
  0xcd   : > { %v1680_v15 = vpack.c.bf16 %v547_v13, %v547_v13  ;;  %757 = vrot.lane.b32.xlu1 %v584_v14, %s1451_s21  ;;  %647 = vrot.lane.b32.xlu0 %v584_v14, %s1452_s25  ;;  %s1814_s21 = sld [smem:[#allocation28_spill]]  ;;  %s470_s25 = scalar_lea.vmem [#allocation11], %s1649_s9 }
  0xce   : > { %s1375_s9 = scalar_lea.hbm %s1812_s15, 16 }
  0xcf   : > { %622 = vrot.lane.b32.xlu2 %v1680_v15, %s1453_s3  ;;  %s883_s3 = sshll.u32 %s470_s25, 4  ;;  %s884_s3 = int_to_ptr.vmem [resolvable:$true] %s883_s3 }
  0xd0   : > { %v511_v16 = vpop.f32.mrf.mxu0 }
  0xd2   : > { %v548_v17 = vpop.f32.mrf.mxu1 }
  0xd5   : > { %702 = vrot.lane.b32.xlu1 %v584_v14, %s1454_s26  ;;  %s885_s26 = sshll.u32 %s881_s12, 4  ;;  %s886_s26 = int_to_ptr.hbm [resolvable:$true] %s885_s26 }
  0xd7   : > { %678 = vrot.lane.b32.xlu2 %v1680_v15, %s1455_s30  ;;  %s870_s30 = scalar_lea.sflag [#allocation4], %s1646_s1 }
  0xef   : > { %552 = vxpose.xlu0.b32.start.end [1/1] (short) (narrow) %v547_v13, 32 }
 0x129   : > { %v623_v18 = vpop.permute.xlu2 %622 }
 0x12a   : > { %v628_v19 = vsel %vm594_vm1, %v623_v18, 0 }
 0x12b   : > { %637 = vmatpush.bf16.msra.mxu3 %v628_v19 }
 0x131   : > { %v679_v20 = vpop.permute.xlu2 %678 }
 0x132   : > { %v684_v21 = vsel %vm594_vm1, %v679_v20, 0 }
 0x133   : > { %693 = vmatpush.bf16.msrb.mxu3 %v684_v21 }
 0x13f   : > { %v648_v22 = vpop.permute.xlu0 %647  ;;  %v758_v29 = vpop.permute.xlu1 %757 }
 0x147   : > { %v703_v33 = vpop.permute.xlu1 %702 }
 0x193   : > { %v568_v23 = vpop.trf.xlu0 }
 0x194   : > { %v585_v24 = vpack.c.bf16 %v568_v23, %v568_v23 }
 0x196   : > { %v596_v25 = vsel %vm594_vm1, %v585_v24, 0 }
 0x197   : > { %605 = vmatpush.bf16.msra.mxu2 %v596_v25 }
 0x19a   : > { %1058 = vmatmul.msk.bf16.vlgmr.msra.gmra.mxu2 %vm590_vm2, %v584_v14 }
 0x19b   : > { %v569_v26 = vpop.trf.xlu0 }
 0x19c   : > { %v645_v27 = vpack.c.bf16 %v569_v26, %v569_v26 }
 0x19e   : > { %v653_v28 = vsel %vm594_vm1, %v645_v27, 0 }
 0x19f   : > { %662 = vmatpush.bf16.msrb.mxu2 %v653_v28 }
 0x1a3   : > { %v570_v30 = vpop.trf.xlu0 }
 0x1a4   : > { %v701_v31 = vpack.c.bf16 %v570_v30, %v570_v30 }
 0x1a6   : > { %v708_v32 = vsel %vm594_vm1, %v701_v31, 0 }
 0x1a7   : > { %717 = vmatpush.bf16.msrb.mxu0 %v708_v32 }
 0x1aa   : > { %1060 = vmatmul.msk.bf16.vlgmr.msrb.gmra.mxu2 %vm590_vm2, %v648_v22  ;;  %1062 = vmatmul.msk.bf16.vlgmr.msrb.gmra.mxu0 %vm590_vm2, %v703_v33 }
 0x1ab   : > { %v571_v34 = vpop.trf.xlu0 }
 0x1ac   : > { %v756_v35 = vpack.c.bf16 %v571_v34, %v571_v34 }
 0x1ae   : > { %v763_v36 = vsel %vm594_vm1, %v756_v35, 0 }
 0x1af   : > { %772 = vmatpush.bf16.msra.mxu2 %v763_v36 }
 0x1ba   : > { %1064 = vmatmul.msk.bf16.vlgmr.msra.gmra.mxu2 %vm590_vm2, %v758_v29 }
 0x21d   : > { %v607_v41 = vpop.f32.mrf.mxu2 }
 0x21e   : > { %v608_v42 = vadd.f32 %v607_v41, %v588_v40 }
 0x220   : > { %v611_v43 = vsel %vm590_vm2, %v608_v42, -inf }
 0x221   : > { %612 = vmax.xlane.f32.xlu2 %v611_v43 }
 0x225   : > { %v609_v44 = vpop.f32.mrf.mxu2 }
 0x227   : > { %v719_v45 = vpop.f32.mrf.mxu0 }
 0x228   : > { %v720_v46 = vadd.f32 %v719_v45, %v588_v40 }
 0x22a   : > { %v723_v47 = vsel %vm590_vm2, %v720_v46, -inf }
 0x22b   : > { %724 = vmax.xlane.f32.xlu0 %v723_v47 }
 0x22d   : > { %v664_v48 = vpop.f32.mrf.mxu2 }
 0x22e   : > { %v665_v49 = vadd.f32 %v664_v48, %v588_v40 }
 0x22f   : > { %v721_v50 = vpop.f32.mrf.mxu0 }
 0x230   : > { %v668_v51 = vsel %vm590_vm2, %v665_v49, -inf  ;;  %v1462_v50 = vmov 32.0  }
 0x231   : > { %669 = vmax.xlane.f32.xlu1 %v668_v51 }
 0x235   : > { %v666_v52 = vpop.f32.mrf.mxu2 }
 0x23d   : > { %v774_v53 = vpop.f32.mrf.mxu2 }
 0x23e   : > { %v775_v54 = vadd.f32 %v774_v53, %v588_v40 }
 0x240   : > { %v778_v55 = vsel %vm590_vm2, %v775_v54, -inf }
 0x241   : > { %779 = vmax.xlane.f32.xlu2 %v778_v55 }
 0x245   : > { %v776_v56 = vpop.f32.mrf.mxu2 }
 0x24a   : > { %788 = vrot.lane.b32.xlu1 %v1680_v15, %s1457_s27  ;;  %s1369_s27 = sshra.s32 %s886_s26, 4  ;;  %s1370_s27 = int_to_ptr.hbm [resolvable:$true] %s1369_s27 }
 0x24b   : > { %p1376_p6 = scmp.lt.s32.totalorder %s1370_s27, %s1812_s15 }
 0x259   : > { %733 = vrot.lane.b32.xlu2 %v1680_v15, %s1458_s16  ;;  %s1371_s16 = scalar_lea.hbm %s1370_s27, 8 }
 0x25a   : > { %p1372_p1 = scmp.ne.s32.totalorder %s1370_s27, %s1371_s16  ;;  %p1377_p8 = scmp.lt.s32.totalorder %s1375_s9, %s1371_s16 }
 0x25c   : > { %p1373_p3 = pnand %p1372_p1, %p1593_p4  ;;  %p1378_p10 = por %p1377_p8, %p1376_p6 }
 0x25e   : > { %p1374_p5 = pneg %p1373_p3 }
 0x260   : > { %p1379_p11 = pnand %p1378_p10, %p1374_p5 }
 0x294   : > { %v613_v57 = vpop.xlane.xlu2 %612 }
 0x295   : > { %v614_v58 = vsub.f32 %v608_v42, %v613_v57 }
 0x297   : > { %v615_v59 = vmul.f32 1.442695, %v614_v58 }
 0x299   : > { %1185 = vpow2.f32 %v615_v59 }
 0x29e   : > { %v725_v60 = vpop.xlane.xlu0 %724 }
 0x29f   : > { %v1186_v61 = vpop.eup %1185  ;;  %v726_v62 = vsub.f32 %v720_v46, %v725_v60 }
 0x2a0   : > { %v617_v63 = vsel %vm590_vm2, %v1186_v61, 0.0  ;;  %v620_v0 = vpack.c.bf16 %v1186_v61, %v1186_v61 }
 0x2a1   : > { %v727_v1 = vmul.f32 1.442695, %v726_v62  ;;  %618 = vadd.xlane.f32.xlu1 %v617_v63 }
 0x2a2   : > { %1059 = vmatmul.msk.bf16.vlgmr.msra.gmra.mxu3 %vm590_vm2, %v620_v0 }
 0x2a3   : > { %1187 = vpow2.f32 %v727_v1 }
 0x2a4   : > { %v670_v3 = vpop.xlane.xlu1 %669 }
 0x2a5   : > { %v671_v4 = vsub.f32 %v665_v49, %v670_v3 }
 0x2a7   : > { %v672_v5 = vmul.f32 1.442695, %v671_v4 }
 0x2a9   : > { %v1188_v6 = vpop.eup %1187  ;;  %1189 = vpow2.f32 %v672_v5 }
 0x2aa   : > { %v729_v7 = vsel %vm590_vm2, %v1188_v6, 0.0  ;;  %v732_v19 = vpack.c.bf16 %v1188_v6, %v1188_v6 }
 0x2ab   : > { %730 = vadd.xlane.f32.xlu2 %v729_v7  ;;  %v1183_v7 = vld [vmem:[%s1810_s24] ss:$0 sm:$0xff] }
 0x2af   : > { %v1190_v8 = vpop.eup %1189 }
 0x2b0   : > { %v674_v9 = vsel %vm590_vm2, %v1190_v8, 0.0  ;;  %v677_v10 = vpack.c.bf16 %v1190_v8, %v1190_v8 }
 0x2b1   : > { %675 = vadd.xlane.f32.xlu1 %v674_v9 }
 0x2b2   : > { %1061 = vmatmul.msk.bf16.vlgmr.msrb.gmra.mxu3 %vm590_vm2, %v677_v10  ;;  %v1184_v10 = vld [vmem:[%s1814_s21] ss:$0 sm:$0xff] }
 0x2b4   : > { %v780_v11 = vpop.xlane.xlu2 %779 }
 0x2b5   : > { %v781_v12 = vsub.f32 %v775_v54, %v780_v11 }
 0x2b7   : > { %v782_v13 = vmul.f32 1.442695, %v781_v12 }
 0x2b9   : > { %1191 = vpow2.f32 %v782_v13 }
 0x2bc   : > { %v789_v14 = vpop.permute.xlu1 %788  ;;  %v734_v15 = vpop.permute.xlu2 %733 }
 0x2bd   : > { %v794_v16 = vsel %vm594_vm1, %v789_v14, 0  ;;  %v739_v17 = vsel %vm594_vm1, %v734_v15, 0 }
 0x2be   : > { %748 = vmatpush.bf16.msrb.mxu1 %v739_v17  ;;  %803 = vmatpush.bf16.msra.mxu3 %v794_v16 }
 0x2bf   : > { %v1192_v18 = vpop.eup %1191 }
 0x2c0   : > { %v787_v20 = vpack.c.bf16 %v1192_v18, %v1192_v18  ;;  %v784_v21 = vsel %vm590_vm2, %v1192_v18, 0.0 }
 0x2c1   : > { %785 = vadd.xlane.f32.xlu1 %v784_v21  ;;  %1063 = vmatmul.msk.bf16.vlgmr.msrb.gmra.mxu1 %vm590_vm2, %v732_v19 }
 0x2c2   : > { %1065 = vmatmul.msk.bf16.vlgmr.msra.gmra.mxu3 %vm590_vm2, %v787_v20 }
 0x314   : > { %v619_v22 = vpop.xlane.xlu1 %618 }
 0x315   : > { %1193 = vrcp.f32 %v619_v22 }
 0x31b   : > { %v1194_v23 = vpop.eup %1193 }
 0x31e   : > { %v731_v29 = vpop.xlane.xlu2 %730 }
 0x324   : > { %v676_v26 = vpop.xlane.xlu1 %675 }
 0x325   : > { %v639_v24 = vpop.f32.mrf.mxu3  ;;  %1195 = vrcp.f32 %v676_v26 }
 0x326   : > { %v644_v25 = vmul.f32 %v1194_v23, %v639_v24  ;;  %1197 = vrcp.f32 %v731_v29 }
 0x32b   : > { %v1196_v28 = vpop.eup %1195 }
 0x32c   : > { %v1198_v34 = vpop.eup %1197 }
 0x32d   : > { %v641_v27 = vpop.f32.mrf.mxu3 }
 0x334   : > { %v786_v32 = vpop.xlane.xlu1 %785 }
 0x335   : > { %v695_v30 = vpop.f32.mrf.mxu3  ;;  %1199 = vrcp.f32 %v786_v32 }
 0x336   : > { %v700_v31 = vmul.f32 %v1196_v28, %v695_v30  ;;  %1201 = vrcp.f32 %v1462_v50 }
 0x338   : > { %812 = vrot.lane.b32.xlu1 %v700_v31, %s1459_s18 }
 0x33b   : > { %v1200_v37 = vpop.eup %1199 }
 0x33c   : > { %v1202_v51 = vpop.eup %1201 }
 0x33d   : > { %v697_v33 = vpop.f32.mrf.mxu3  ;;  %v833_v52 = vmul.f32 32.0, %v1202_v51  ;;  %vm837_vm6 = vweird.f32 %v1202_v51 }
 0x33e   : > { %v750_v35 = vpop.f32.mrf.mxu1 }
 0x33f   : > { %v755_v36 = vmul.f32 %v1198_v34, %v750_v35  ;;  %v834_v53 = vsub.f32 1.0, %v833_v52 }
 0x341   : > { %816 = vrot.lane.b32.xlu2 %v755_v36, %s1460_s20  ;;  %v835_v54 = vmul.f32 %v1202_v51, %v834_v53 }
 0x343   : > { %v836_v55 = vadd.f32 %v1202_v51, %v835_v54 }
 0x345   : > { %v805_v38 = vpop.f32.mrf.mxu3  ;;  %v838_v56 = vsel %vm837_vm6, %v1202_v51, %v836_v55 }
 0x346   : > { %v810_v39 = vmul.f32 %v1200_v37, %v805_v38  ;;  %v752_v40 = vpop.f32.mrf.mxu1 }
 0x348   : > { %820 = vrot.lane.b32.xlu1 %v810_v39, %s1461_s8 }
 0x34d   : > { %v807_v41 = vpop.f32.mrf.mxu3 }
 0x39b   : > { %v817_v44 = vpop.permute.xlu2 %816 }
 0x3aa   : > { %v813_v42 = vpop.permute.xlu1 %812 }
 0x3ab   : > { %v823_v43 = vsel %vm590_vm2, %v644_v25, %v813_v42 }
 0x3ac   : > { %v825_v46 = vsel %vm824_vm4, %v823_v43, %v817_v44 }
 0x3ba   : > { %v821_v45 = vpop.permute.xlu1 %820 }
 0x3bb   : > { %v827_v47 = vsel %vm826_vm5, %v825_v46, %v821_v45 }
 0x3bc   : > { %v828_v48 = vadd.f32 %v827_v47, %v1668_v2 }
 0x3be   : > { %v829_v49 = vsel %vm496_vm0, %v828_v48, 0.0 }
 0x3bf   : > { %830 = vadd.xlane.f32.xlu2 %v829_v49 }
 0x432   : > { %v831_v57 = vpop.xlane.xlu2 %830 }
 0x433   : > { %v839_v58 = vmul.f32 %v838_v56, %v831_v57 }
 0x435   : > { %v840_v59 = vsub.f32 %v828_v48, %v839_v58 }
 0x437   : > { %v841_v60 = vmul.f32 %v840_v59, %v840_v59 }
 0x439   : > { %v842_v61 = vsel %vm496_vm0, %v841_v60, 0.0 }
 0x43a   : > { %843 = vadd.xlane.f32.xlu1 %v842_v61 }
 0x4ad   : > { %v844_v2 = vpop.xlane.xlu1 %843 }
 0x4ae   : > { %v845_v62 = vmul.f32 %v844_v2, %v838_v56 }
 0x4b0   : > { %v846_v63 = vadd.f32 1e-05, %v845_v62 }
 0x4b2   : > { %1203 = vrsqrt.f32 %v846_v63  ;;  %vm853_vm8 = vweird.f32 %v846_v63 }
 0x4b8   : > { %v1204_v0 = vpop.eup %1203 }
 0x4b9   : > { %v848_v1 = vmul.f32 %v1204_v0, %v846_v63  ;;  %vm854_vm7 = vweird.f32 %v1204_v0 }
 0x4ba   : > { %vm855_vm9 = vmor %vm853_vm8, %vm854_vm7 }
 0x4bb   : > { %v849_v3 = vmul.f32 %v1204_v0, %v848_v1 }
 0x4bd   : > { %v850_v4 = vmul.f32 0.5, %v849_v3 }
 0x4bf   : > { %v851_v5 = vsub.f32 1.5, %v850_v4 }
 0x4c1   : > { %v852_v6 = vmul.f32 %v1204_v0, %v851_v5 }
 0x4c3   : > { %v856_v8 = vsel %vm855_vm9, %v1204_v0, %v852_v6 }
 0x4c4   : > { %v857_v9 = vmul.f32 %v856_v8, %v840_v59 }
 0x4c6   : > { %v862_v11 = vmul.f32 %v1183_v7, %v857_v9 }
 0x4c8   : > { %v867_v12 = vadd.f32 %v1184_v10, %v862_v11 }
 0x4ca   : > { %868 = vst.msk [vmem:[%s470_s25] sm:$0xff] %vm496_vm0, %v867_v12 }
 0x4cb   : > { %1382 = shalt.err (!%p1379_p11)
}
 0x4cc   : > { %1088 = dma.vmem_to_hbm [thread:$0]  (%p1593_p4), %s884_s3, 128, %s886_s26, %s870_s30  }
 0x4cd PF: > { %s1815_s1 = sld [smem:[#allocation16_spill]] }
 0x4ce   : > { %s1817_s22 = sld [smem:[#allocation19_spill]] }
 0x4d3   : > { %s897_s23 = sand.u32 1, %s1815_s1  }
 0x4d4   : > { %p1818_p12 = scmp.ge.s32.totalorder %s1817_s22, 2  ;;  %s898_s24 = scalar_lea.sflag [#allocation4], %s897_s23 }
 0x4d6   : > { %p1108_p13 = pnand %p1818_p12, %p1601_p9 }
 0x4d8   : > { %p1109_p0 = pneg %p1108_p13 }
 0x4da   : > { %1420 = dma.done.wait (%p1109_p0), %s898_s24, 128  }
 0x4db   : > { %1422 = vsyncadd (%p1109_p0), %s898_s24, 4294967168  ;;  %s29_s14 = sadd.s32 1, %s1817_s22   ;;  %s1819_s5 = sld [smem:[#allocation17_spill]] }
 0x4dc   : > { %p26_p2 = scmp.ge.s32.totalorder %s29_s14, 4   ;;  %s1820_s11 = sld [smem:[#allocation22_spill]] }
 0x4dd   : > { %s1821_s7 = sld [smem:[#allocation20_spill]]  ;;  %s1822_s30 = smov %s1429_s10 }
 0x4de   : > { %s1824_s12 = smov %s1441_s13 }
 0x4df   :  { %28 = sbr.rel (!%p26_p2) target bundleno = 16 (0x10), region = 133 }
 0x4e1   : > { %s1823_s10 = smov %s1819_s5 }
 0x4e3   : > { %s1825_s13 = smov %s1821_s7 }
 0x4e4   :  { %904 = vsyncpa [#allocation3], 1 }
 0x4e5   :  { %906 = vsyncpa [#allocation3 + $0x1], 1 }
 0x4e6   :  { %907 = vsyncpa [#allocation6], 1 }
 0x4e7   :  { %909 = vsyncpa [#allocation6 + $0x1], 1 }
 0x4e8   :  { %910 = vsyncpa [#allocation9], 1 }
 0x4e9   :  { %911 = vsyncpa [#allocation4], 1 }
 0x4ea   :  { %913 = vsyncpa [#allocation4 + $0x1], 1 }

</bundles_post_ra>
